<compile_context>
chip_gen: v7x
topology: tpu7x:2x2x1
jax: 0.10.0
libtpu: 0.0.40
codegen_flags: <defaults>
</compile_context>

<pallas_src>
import functools

import jax
import jax.numpy as jnp
import numpy as np
from jax.experimental import pallas as pl
from jax.experimental.pallas import tpu as pltpu

_SELU_SCALE = 1.0507009873554805  # SELU(t) == _SELU_SCALE * t for t >= 0 (post-ReLU)


def _fan_kernel(x_ref, zp_ref,
                wsq1_ref, bsq1_ref, wexp1_ref, bexp1_ref,
                wsq2_ref, bsq2_ref, wexp2_ref, bexp2_ref,
                aw_ref, out_ref, patch_ref, gates_ref,
                *, stride, l1, l2, wx, row_taps, eps):
    """One batch element.  All activations are (channels, flat_spatial) with the
    flattened spatial dim on the lane axis; `stride` is the row stride (width of
    the reflection-padded z image) shared by every flat gate buffer."""
    cx = out_ref.shape[1]
    s1_n = wsq1_ref.shape[0] // 2
    s2_n = wsq2_ref.shape[1]

    def im2col(src, n_sq, l_out):
        # tap (dy, dx) of a valid 3x3 conv on the strided-flat map is the
        # lane-contiguous slice starting at dy*stride + dx.
        for k in range(9):
            dy, dx = divmod(k, 3)
            st = dy * stride + dx
            patch_ref[k * n_sq:(k + 1) * n_sq, :l_out] = src[:, st:st + l_out]

    # Fire1 squeeze fused over both gates (they share the zp operand):
    # ONE (2*S1, Cz)@(Cz, Lz) MXU matmul, bf16 operands, f32 accumulate.
    sq1 = jnp.dot(wsq1_ref[...], zp_ref[0], preferred_element_type=jnp.float32)
    sq1 = jnp.maximum(sq1 + bsq1_ref[...], 0.0).astype(jnp.bfloat16)

    for g in range(2):                                 # g=0: mul_gate, g=1: add_gate
        # Fire1: expand1x1 + expand3x3 + channel concat fused into ONE matmul
        # over the im2col patch (the 1x1 rows only use the centre tap);
        # single combined bias + ReLU epilogue.
        im2col(sq1[g * s1_n:(g + 1) * s1_n], s1_n, l1)
        h = jnp.dot(wexp1_ref[g], patch_ref[:9 * s1_n, :l1],
                    preferred_element_type=jnp.float32)
        h = jnp.maximum(h + bexp1_ref[g], 0.0)         # (Cz, l1) f32
        # SELU o ReLU == _SELU_SCALE * ReLU; the scale is folded into wsq2.
        s2 = jnp.dot(wsq2_ref[g], h.astype(jnp.bfloat16),
                     preferred_element_type=jnp.float32)
        s2 = jnp.maximum(s2 + bsq2_ref[g], 0.0).astype(jnp.bfloat16)
        im2col(s2, s2_n, l2)
        o = jnp.dot(wexp2_ref[g], patch_ref[:9 * s2_n, :l2],
                    preferred_element_type=jnp.float32)
        gates_ref[g * cx:(g + 1) * cx, :] = jnp.maximum(o + bexp2_ref[g], 0.0)

    # InstanceNorm2d(affine=False) stats in ONE pass (E[x^2] - mean^2); fold the
    # rsqrt into a per-channel scale/shift so the apply is a single FMA chain.
    x = x_ref[0]                                       # (Cx, Hx*Wx) f32
    mean = jnp.mean(x, axis=1, keepdims=True)
    var = jnp.maximum(jnp.mean(x * x, axis=1, keepdims=True) - mean * mean, 0.0)
    inv = jax.lax.rsqrt(var + eps)
    shift = -mean * inv

    # Separable bilinear upsample (align_corners=False): per output row, a
    # 2-tap height blend (VPU) + ONE width matmul shared by both gates
    # ((2*Cx, Wp)@(Wp, Wx), bf16 on the MXU).  Junk columns of the strided
    # gate buffer hit all-zero rows of `aw`, so they never contribute.
    aw = aw_ref[...]                                   # (Wp, Wx) bf16
    for p, (r0, r1, w0, w1) in enumerate(row_taps):
        row = gates_ref[:, r0 * stride:(r0 + 1) * stride]
        if r1 != r0:
            row = w0 * row + w1 * gates_ref[:, r1 * stride:(r1 + 1) * stride]
        gb = jnp.dot(row.astype(jnp.bfloat16), aw,
                     preferred_element_type=jnp.float32)   # (2*Cx, Wx) f32
        gamma = jnp.tanh(gb[:cx])
        beta = gb[cx:]
        xr = x[:, p * wx:(p + 1) * wx]
        out_ref[0, :, p * wx:(p + 1) * wx] = (
            (xr * inv + shift) * gamma + beta).astype(out_ref.dtype)


def _bilinear_matrix(out_size, in_size):
    """Interpolation matrix matching nn.Upsample(mode='bilinear',
    align_corners=False): half-pixel centres, edge clamped."""
    mat = np.zeros((out_size, in_size), np.float32)
    ratio = in_size / out_size
    for i in range(out_size):
        src = max((i + 0.5) * ratio - 0.5, 0.0)
        i0 = min(int(np.floor(src)), in_size - 1)
        i1 = min(i0 + 1, in_size - 1)
        w1 = src - i0
        mat[i, i0] += 1.0 - w1
        mat[i, i1] += w1
    return mat


def _height_taps(out_size, in_size):
    """Static per-output-row (r0, r1, w0, w1) bilinear taps (same formula as
    _bilinear_matrix, kept as Python scalars so the kernel row loop is static)."""
    taps = []
    ratio = in_size / out_size
    for i in range(out_size):
        src = max((i + 0.5) * ratio - 0.5, 0.0)
        i0 = min(int(np.floor(src)), in_size - 1)
        i1 = min(i0 + 1, in_size - 1)
        w1 = float(src - i0)
        taps.append((i0, i1, 1.0 - w1, w1))
    return tuple(taps)


def feature_aware_norm_forward(x, z, kparams, *, scale):
    """Pallas FeatureAwareNorm forward.  x: (N,Cx,Hx,Wx), z: (N,Cz,Hz,Wz)."""
    n, cx, hx, wx = x.shape
    _, cz, hz, wz = z.shape
    assert hx == hz * scale and wx == wz * scale
    hp, wp = hz + 4, wz + 4            # ReflectionPad2d(2)
    stride = wp                        # row stride of all flat gate buffers
    l2 = hz * wp                       # fire2 out, padded to whole rows of wp
    l1 = l2 + 2 * wp + 2               # fire1 out length fire2's im2col needs
    lz = l1 + 2 * wp + 2               # padded-z length fire1 needs (= hp*wp + 4)
    hw_x = hx * wx

    # ReflectionPad2d(2) on the (small) z tensor; free reshapes, no transposes.
    # The 4 appended zero lanes only ever feed junk output lanes (never read).
    # TODO(synk): Dropout(p=0.25) layers are identity here (eval/inference mode);
    # train-mode stochastic masking is not implemented.
    zp = jnp.pad(z, ((0, 0), (0, 0), (2, 2), (2, 2)), mode='reflect')
    zp_flat = jnp.pad(zp.reshape(n, cz, hp * wp),
                      ((0, 0), (0, 0), (0, lz - hp * wp))).astype(jnp.bfloat16)
    x_flat = x.reshape(n, cx, hw_x)

    # Width-interpolation matrix (Wp, Wx); rows for the padded / junk columns
    # are zero.  (The full dense (l2, Hx*Wx) upsample matrix is gone.)
    aw_np = np.zeros((wp, wx), np.float32)
    aw_np[:wz, :] = _bilinear_matrix(wx, wz).T
    aw = jnp.asarray(aw_np, jnp.bfloat16)
    row_taps = _height_taps(hx, hz)

    wsq1, bsq1, wexp1, bexp1, wsq2, bsq2, wexp2, bexp2 = kparams
    s1 = wsq1.shape[0] // 2
    s2 = wsq2.shape[1]
    s_max = max(s1, s2)

    kernel = functools.partial(_fan_kernel, stride=stride, l1=l1, l2=l2,
                               wx=wx, row_taps=row_taps, eps=1e-5)
    const = lambda shape: pl.BlockSpec(shape, lambda i: (0,) * len(shape))
    # TODO(synk): at large Hx*Wx add a spatial-tile grid axis (two-pass
    # InstanceNorm) + explicit vmem_limit_bytes for v7x's 64 MiB VMEM, and mark
    # the constant operands single-buffered (pipeline_mode=pl.Buffered(1)).
    # TODO(synk): for N == 1 on v7x add a second "parallel" grid axis (e.g. a
    # Cx split of the gate channels) so both TensorCores are used.
    out_flat = pl.pallas_call(
        kernel,
        out_shape=jax.ShapeDtypeStruct((n, cx, hw_x), jnp.float32),
        grid=(n,),
        in_specs=[
            pl.BlockSpec((1, cx, hw_x), lambda i: (i, 0, 0)),
            pl.BlockSpec((1, cz, lz), lambda i: (i, 0, 0)),
            const(wsq1.shape), const(bsq1.shape),
            const(wexp1.shape), const(bexp1.shape),
            const(wsq2.shape), const(bsq2.shape),
            const(wexp2.shape), const(bexp2.shape),
            const(aw.shape),
        ],
        out_specs=pl.BlockSpec((1, cx, hw_x), lambda i: (i, 0, 0)),
        scratch_shapes=[pltpu.VMEM((9 * s_max, l1), jnp.bfloat16),   # shared im2col
                        pltpu.VMEM((2 * cx, l2), jnp.float32)],      # stacked gates
        compiler_params=pltpu.CompilerParams(
            dimension_semantics=("parallel",)),          # batch over TCs (v7x)
    )(x_flat, zp_flat, wsq1, bsq1, wexp1, bexp1, wsq2, bsq2, wexp2, bexp2, aw)

    return out_flat.reshape(n, cx, hx, wx)               # free reshape back to NCHW


# --------------------------- parameters ------------------------------------

def init_fan_params(key, in_x, in_z):
    """Random params in PyTorch Conv2d layout: 1x1 (out,in), 3x3 (out,in,3,3).
    Weights are rounded to bf16 (the MXU operand dtype) so the pure-f32
    reference and the bf16-operand kernel share identical weight values."""
    def conv(key, cout, cin, k):
        kw, kb = jax.random.split(key)
        w = jax.random.normal(kw, (cout, cin, k, k), jnp.float32) / np.sqrt(cin * k * k)
        w = w.astype(jnp.bfloat16).astype(jnp.float32)
        b = 0.05 * jax.random.normal(kb, (cout,), jnp.float32)
        return w, b

    def fire(key, cin, sq, e1, e3):
        k1, k2, k3 = jax.random.split(key, 3)
        wsq, bsq = conv(k1, sq, cin, 1)
        we1, be1 = conv(k2, e1, sq, 1)
        we3, be3 = conv(k3, e3, sq, 3)
        return dict(wsq=wsq[:, :, 0, 0], bsq=bsq,
                    we1=we1[:, :, 0, 0], be1=be1, we3=we3, be3=be3)

    km1, km2, ka1, ka2 = jax.random.split(key, 4)
    sz = in_z // 2
    return dict(
        mul=dict(fire1=fire(km1, in_z, sz, in_z // 2, in_z // 2),
                 fire2=fire(km2, in_z, sz, in_x // 2, in_x // 2)),
        add=dict(fire1=fire(ka1, in_z, sz, in_z // 2, in_z // 2),
                 fire2=fire(ka2, in_z, sz, in_x // 2, in_x // 2)))


def _expand_weights(fire_params_list):
    """Per-gate combined expand weights (E1+E3, 9S) whose centre-tap columns
    hold the 1x1-expand weights, plus the concatenated column biases."""
    wexp, bexp = [], []
    for fp in fire_params_list:
        e1, e3, s = fp['we1'].shape[0], fp['we3'].shape[0], fp['wsq'].shape[0]
        wc = jnp.zeros((e1 + e3, 9, s), jnp.float32)
        wc = wc.at[:e1, 4, :].set(fp['we1'])                 # centre tap only
        wc = wc.at[e1:, :, :].set(
            jnp.transpose(fp['we3'], (0, 2, 3, 1)).reshape(e3, 9, s))
        wexp.append(wc.reshape(e1 + e3, 9 * s))
        bexp.append(jnp.concatenate([fp['be1'], fp['be3']]))
    return (jnp.stack(wexp).astype(jnp.bfloat16),
            jnp.stack(bexp)[..., None].astype(jnp.float32))


def prepare_params(params):
    """Kernel-ready weights: MXU operands in bf16, biases in f32.  Fire1's
    squeeze is stacked across the (mul, add) gates -> (2*S, Cin) for the fused
    squeeze matmul; the SELU scale is folded into the fire2 squeeze weights."""
    f1 = [params['mul']['fire1'], params['add']['fire1']]
    f2 = [params['mul']['fire2'], params['add']['fire2']]
    wsq1 = jnp.concatenate([fp['wsq'] for fp in f1], axis=0).astype(jnp.bfloat16)
    bsq1 = jnp.concatenate([fp['bsq'] for fp in f1])[:, None].astype(jnp.float32)
    wexp1, bexp1 = _expand_weights(f1)
    wsq2 = jnp.stack([_SELU_SCALE * fp['wsq'] for fp in f2]).astype(jnp.bfloat16)
    bsq2 = jnp.stack([fp['bsq'] for fp in f2])[..., None].astype(jnp.float32)
    wexp2, bexp2 = _expand_weights(f2)
    return (wsq1, bsq1, wexp1, bexp1, wsq2, bsq2, wexp2, bexp2)


# --------------------------- pure-JAX reference -----------------------------

def _conv_ref(x, w, b):
    y = jax.lax.conv_general_dilated(
        x, w, (1, 1), 'VALID', dimension_numbers=('NCHW', 'OIHW', 'NCHW'),
        precision=jax.lax.Precision.HIGHEST)
    return y + b[None, :, None, None]


def _fire_ref(x, fp):
    s = jax.nn.relu(_conv_ref(x, fp['wsq'][:, :, None, None], fp['bsq']))
    e1 = jax.nn.relu(_conv_ref(s[:, :, 1:-1, 1:-1],
                               fp['we1'][:, :, None, None], fp['be1']))
    e3 = jax.nn.relu(_conv_ref(s, fp['we3'], fp['be3']))
    return jnp.concatenate([e1, e3], axis=1)


def fan_reference(x, z, params):
    _, _, hx, wx = x.shape
    hz, wz = z.shape[2], z.shape[3]
    a_h = jnp.asarray(_bilinear_matrix(hx, hz))
    a_w = jnp.asarray(_bilinear_matrix(wx, wz))

    def gate(prm):
        zp = jnp.pad(z, ((0, 0), (0, 0), (2, 2), (2, 2)), mode='reflect')
        h = jax.nn.selu(_fire_ref(zp, prm['fire1']))
        h = _fire_ref(h, prm['fire2'])
        return jnp.einsum('ph,nchw,qw->ncpq', a_h, h, a_w,
                          precision=jax.lax.Precision.HIGHEST)

    gamma = jnp.tanh(gate(params['mul']))
    beta = gate(params['add'])
    mean = x.mean(axis=(2, 3), keepdims=True)
    var = ((x - mean) ** 2).mean(axis=(2, 3), keepdims=True)
    x_hat = (x - mean) / jnp.sqrt(var + 1e-5)
    return x_hat * gamma + beta


if __name__ == "__main__":
    # FeatureAwareNorm(in_x=16, in_z=16, scale=2): x (2,16,16,16), z (2,16,8,8)
    N, IN_X, IN_Z, SCALE = 2, 16, 16, 2
    HZ = WZ = 8
    HX, WX = HZ * SCALE, WZ * SCALE

    key = jax.random.PRNGKey(0)
    kx, kz, kp = jax.random.split(key, 3)
    x = jax.random.normal(kx, (N, IN_X, HX, WX), jnp.float32)
    # z is rounded to bf16 so the kernel (bf16 MXU operands) and the f32
    # reference see identical input values; the remaining diff is activation
    # quantisation inside the gate path.
    z = jax.random.normal(kz, (N, IN_Z, HZ, WZ), jnp.float32)
    z = z.astype(jnp.bfloat16).astype(jnp.float32)
    params = init_fan_params(kp, IN_X, IN_Z)
    kparams = prepare_params(params)

    fwd = jax.jit(functools.partial(feature_aware_norm_forward, scale=SCALE))
    out = jax.block_until_ready(fwd(x, z, kparams))

    ref = fan_reference(x, z, params)
    assert out.shape == (N, IN_X, HX, WX), out.shape
    err_max = float(jnp.max(jnp.abs(out - ref)))
    err_mean = float(jnp.mean(jnp.abs(out - ref)))
    # Tolerances sized for bf16 MXU operands (~2^-9 relative per matmul input
    # over a 5-matmul chain at O(1..5) magnitudes); the pure-f32 path matched
    # to <1e-5 in the previous version.
    assert err_max < 1e-1 and err_mean < 1e-2, (err_max, err_mean)

    print("KERNEL_OK")
</pallas_src>

<mosaic_0001>
module attributes {stable_mosaic.version = 11 : i64} {
  func.func @_fan_kernel(%arg0: i32, %arg1: memref<1x16x256xf32, #tpu.memory_space<vmem>>, %arg2: memref<1x16x148xbf16, #tpu.memory_space<vmem>>, %arg3: memref<16x16xbf16, #tpu.memory_space<vmem>>, %arg4: memref<16x1xf32, #tpu.memory_space<vmem>>, %arg5: memref<2x16x72xbf16, #tpu.memory_space<vmem>>, %arg6: memref<2x16x1xf32, #tpu.memory_space<vmem>>, %arg7: memref<2x8x16xbf16, #tpu.memory_space<vmem>>, %arg8: memref<2x8x1xf32, #tpu.memory_space<vmem>>, %arg9: memref<2x16x72xbf16, #tpu.memory_space<vmem>>, %arg10: memref<2x16x1xf32, #tpu.memory_space<vmem>>, %arg11: memref<12x16xbf16, #tpu.memory_space<vmem>>, %arg12: memref<1x16x256xf32, #tpu.memory_space<vmem>>, %arg13: memref<72x122xbf16, #tpu.memory_space<vmem>>, %arg14: memref<32x96xf32, #tpu.memory_space<vmem>>) attributes {dimension_semantics = [#tpu.dimension_semantics<parallel>], iteration_bounds = array<i64: 2>, scalar_prefetch = 0 : i64, scratch_operands = 2 : i64, tpu.core_type = #tpu.core_type<tc>, window_params = [{transform_indices = @transform_0, window_bounds = array<i64: 1, 16, 256>}, {transform_indices = @transform_1, window_bounds = array<i64: 1, 16, 148>}, {pipeline_mode = #tpu.pipeline_mode<synchronous>, transform_indices = @transform_2, window_bounds = array<i64: 16, 16>}, {pipeline_mode = #tpu.pipeline_mode<synchronous>, transform_indices = @transform_3, window_bounds = array<i64: 16, 1>}, {pipeline_mode = #tpu.pipeline_mode<synchronous>, transform_indices = @transform_4, window_bounds = array<i64: 2, 16, 72>}, {pipeline_mode = #tpu.pipeline_mode<synchronous>, transform_indices = @transform_5, window_bounds = array<i64: 2, 16, 1>}, {pipeline_mode = #tpu.pipeline_mode<synchronous>, transform_indices = @transform_6, window_bounds = array<i64: 2, 8, 16>}, {pipeline_mode = #tpu.pipeline_mode<synchronous>, transform_indices = @transform_7, window_bounds = array<i64: 2, 8, 1>}, {pipeline_mode = #tpu.pipeline_mode<synchronous>, transform_indices = @transform_8, window_bounds = array<i64: 2, 16, 72>}, {pipeline_mode = #tpu.pipeline_mode<synchronous>, transform_indices = @transform_9, window_bounds = array<i64: 2, 16, 1>}, {pipeline_mode = #tpu.pipeline_mode<synchronous>, transform_indices = @transform_10, window_bounds = array<i64: 12, 16>}, {transform_indices = @transform_11, window_bounds = array<i64: 1, 16, 256>}]} {
    %c0 = arith.constant 0 : index
    %c0_0 = arith.constant 0 : index
    %0 = vector.load %arg3[%c0, %c0_0] : memref<16x16xbf16, #tpu.memory_space<vmem>>, vector<16x16xbf16>
    %c0_1 = arith.constant 0 : index
    %c0_2 = arith.constant 0 : index
    %c0_3 = arith.constant 0 : index
    %1 = vector.load %arg2[%c0_1, %c0_2, %c0_3] : memref<1x16x148xbf16, #tpu.memory_space<vmem>>, vector<1x16x148xbf16>
    %2 = vector.shape_cast %1 : vector<1x16x148xbf16> to vector<16x148xbf16>
    %cst = arith.constant dense<0.000000e+00> : vector<16x148xf32>
    %3 = tpu.matmul %0, %2, %cst {dimension_numbers = #tpu.dot_dimension_numbers<[1], [0], [0], [1], [0, 0, 1, 1], [], []>} : vector<16x16xbf16>, vector<16x148xbf16>, vector<16x148xf32> -> vector<16x148xf32>
    %c0_4 = arith.constant 0 : index
    %c0_5 = arith.constant 0 : index
    %4 = vector.load %arg4[%c0_4, %c0_5] : memref<16x1xf32, #tpu.memory_space<vmem>>, vector<16x1xf32>
    %5 = vector.broadcast %4 : vector<16x1xf32> to vector<16x148xf32>
    %6 = arith.addf %3, %5 : vector<16x148xf32>
    %cst_6 = arith.constant 0.000000e+00 : f32
    %7 = vector.broadcast %cst_6 : f32 to vector<16x148xf32>
    %8 = arith.maximumf %6, %7 : vector<16x148xf32>
    %9 = arith.truncf %8 : vector<16x148xf32> to vector<16x148xbf16>
    %10 = vector.extract_strided_slice %9 {offsets = [0, 0], sizes = [8, 148], strides = [1, 1]} : vector<16x148xbf16> to vector<8x148xbf16>
    %11 = vector.extract_strided_slice %10 {offsets = [0, 0], sizes = [8, 122], strides = [1, 1]} : vector<8x148xbf16> to vector<8x122xbf16>
    %c0_7 = arith.constant 0 : index
    %c0_8 = arith.constant 0 : index
    %12 = vector.load %arg13[%c0_7, %c0_8] : memref<72x122xbf16, #tpu.memory_space<vmem>>, vector<8x122xbf16>
    tpu.vector_store %arg13[%c0_7, %c0_8], %11 {strides = array<i32>} : memref<72x122xbf16, #tpu.memory_space<vmem>>, vector<8x122xbf16>,
    %13 = vector.extract_strided_slice %10 {offsets = [0, 1], sizes = [8, 122], strides = [1, 1]} : vector<8x148xbf16> to vector<8x122xbf16>
    %c8 = arith.constant 8 : index
    %c0_9 = arith.constant 0 : index
    %14 = vector.load %arg13[%c8, %c0_9] : memref<72x122xbf16, #tpu.memory_space<vmem>>, vector<8x122xbf16>
    tpu.vector_store %arg13[%c8, %c0_9], %13 {strides = array<i32>} : memref<72x122xbf16, #tpu.memory_space<vmem>>, vector<8x122xbf16>,
    %15 = vector.extract_strided_slice %10 {offsets = [0, 2], sizes = [8, 122], strides = [1, 1]} : vector<8x148xbf16> to vector<8x122xbf16>
    %c16 = arith.constant 16 : index
    %c0_10 = arith.constant 0 : index
    %16 = vector.load %arg13[%c16, %c0_10] : memref<72x122xbf16, #tpu.memory_space<vmem>>, vector<8x122xbf16>
    tpu.vector_store %arg13[%c16, %c0_10], %15 {strides = array<i32>} : memref<72x122xbf16, #tpu.memory_space<vmem>>, vector<8x122xbf16>,
    %17 = vector.extract_strided_slice %10 {offsets = [0, 12], sizes = [8, 122], strides = [1, 1]} : vector<8x148xbf16> to vector<8x122xbf16>
    %c24 = arith.constant 24 : index
    %c0_11 = arith.constant 0 : index
    %18 = vector.load %arg13[%c24, %c0_11] : memref<72x122xbf16, #tpu.memory_space<vmem>>, vector<8x122xbf16>
    tpu.vector_store %arg13[%c24, %c0_11], %17 {strides = array<i32>} : memref<72x122xbf16, #tpu.memory_space<vmem>>, vector<8x122xbf16>,
    %19 = vector.extract_strided_slice %10 {offsets = [0, 13], sizes = [8, 122], strides = [1, 1]} : vector<8x148xbf16> to vector<8x122xbf16>
    %c32 = arith.constant 32 : index
    %c0_12 = arith.constant 0 : index
    %20 = vector.load %arg13[%c32, %c0_12] : memref<72x122xbf16, #tpu.memory_space<vmem>>, vector<8x122xbf16>
    tpu.vector_store %arg13[%c32, %c0_12], %19 {strides = array<i32>} : memref<72x122xbf16, #tpu.memory_space<vmem>>, vector<8x122xbf16>,
    %21 = vector.extract_strided_slice %10 {offsets = [0, 14], sizes = [8, 122], strides = [1, 1]} : vector<8x148xbf16> to vector<8x122xbf16>
    %c40 = arith.constant 40 : index
    %c0_13 = arith.constant 0 : index
    %22 = vector.load %arg13[%c40, %c0_13] : memref<72x122xbf16, #tpu.memory_space<vmem>>, vector<8x122xbf16>
    tpu.vector_store %arg13[%c40, %c0_13], %21 {strides = array<i32>} : memref<72x122xbf16, #tpu.memory_space<vmem>>, vector<8x122xbf16>,
    %23 = vector.extract_strided_slice %10 {offsets = [0, 24], sizes = [8, 122], strides = [1, 1]} : vector<8x148xbf16> to vector<8x122xbf16>
    %c48 = arith.constant 48 : index
    %c0_14 = arith.constant 0 : index
    %24 = vector.load %arg13[%c48, %c0_14] : memref<72x122xbf16, #tpu.memory_space<vmem>>, vector<8x122xbf16>
    tpu.vector_store %arg13[%c48, %c0_14], %23 {strides = array<i32>} : memref<72x122xbf16, #tpu.memory_space<vmem>>, vector<8x122xbf16>,
    %25 = vector.extract_strided_slice %10 {offsets = [0, 25], sizes = [8, 122], strides = [1, 1]} : vector<8x148xbf16> to vector<8x122xbf16>
    %c56 = arith.constant 56 : index
    %c0_15 = arith.constant 0 : index
    %26 = vector.load %arg13[%c56, %c0_15] : memref<72x122xbf16, #tpu.memory_space<vmem>>, vector<8x122xbf16>
    tpu.vector_store %arg13[%c56, %c0_15], %25 {strides = array<i32>} : memref<72x122xbf16, #tpu.memory_space<vmem>>, vector<8x122xbf16>,
    %27 = vector.extract_strided_slice %10 {offsets = [0, 26], sizes = [8, 122], strides = [1, 1]} : vector<8x148xbf16> to vector<8x122xbf16>
    %c64 = arith.constant 64 : index
    %c0_16 = arith.constant 0 : index
    %28 = vector.load %arg13[%c64, %c0_16] : memref<72x122xbf16, #tpu.memory_space<vmem>>, vector<8x122xbf16>
    tpu.vector_store %arg13[%c64, %c0_16], %27 {strides = array<i32>} : memref<72x122xbf16, #tpu.memory_space<vmem>>, vector<8x122xbf16>,
    %c0_17 = arith.constant 0 : index
    %c0_18 = arith.constant 0 : index
    %c0_19 = arith.constant 0 : index
    %29 = vector.load %arg5[%c0_17, %c0_18, %c0_19] : memref<2x16x72xbf16, #tpu.memory_space<vmem>>, vector<1x16x72xbf16>
    %30 = vector.shape_cast %29 : vector<1x16x72xbf16> to vector<16x72xbf16>
    %c0_20 = arith.constant 0 : index
    %c0_21 = arith.constant 0 : index
    %31 = vector.load %arg13[%c0_20, %c0_21] : memref<72x122xbf16, #tpu.memory_space<vmem>>, vector<72x122xbf16>
    %cst_22 = arith.constant dense<0.000000e+00> : vector<16x122xf32>
    %32 = tpu.matmul %30, %31, %cst_22 {dimension_numbers = #tpu.dot_dimension_numbers<[1], [0], [0], [1], [0, 0, 1, 1], [], []>} : vector<16x72xbf16>, vector<72x122xbf16>, vector<16x122xf32> -> vector<16x122xf32>
    %c0_23 = arith.constant 0 : index
    %c0_24 = arith.constant 0 : index
    %c0_25 = arith.constant 0 : index
    %33 = vector.load %arg6[%c0_23, %c0_24, %c0_25] : memref<2x16x1xf32, #tpu.memory_space<vmem>>, vector<1x16x1xf32>
    %34 = vector.shape_cast %33 : vector<1x16x1xf32> to vector<16x1xf32>
    %35 = vector.broadcast %34 : vector<16x1xf32> to vector<16x122xf32>
    %36 = arith.addf %32, %35 : vector<16x122xf32>
    %cst_26 = arith.constant 0.000000e+00 : f32
    %37 = vector.broadcast %cst_26 : f32 to vector<16x122xf32>
    %38 = arith.maximumf %36, %37 : vector<16x122xf32>
    %c0_27 = arith.constant 0 : index
    %c0_28 = arith.constant 0 : index
    %c0_29 = arith.constant 0 : index
    %39 = vector.load %arg7[%c0_27, %c0_28, %c0_29] : memref<2x8x16xbf16, #tpu.memory_space<vmem>>, vector<1x8x16xbf16>
    %40 = vector.shape_cast %39 : vector<1x8x16xbf16> to vector<8x16xbf16>
    %41 = arith.truncf %38 : vector<16x122xf32> to vector<16x122xbf16>
    %cst_30 = arith.constant dense<0.000000e+00> : vector<8x122xf32>
    %42 = tpu.matmul %40, %41, %cst_30 {dimension_numbers = #tpu.dot_dimension_numbers<[1], [0], [0], [1], [0, 0, 1, 1], [], []>} : vector<8x16xbf16>, vector<16x122xbf16>, vector<8x122xf32> -> vector<8x122xf32>
    %c0_31 = arith.constant 0 : index
    %c0_32 = arith.constant 0 : index
    %c0_33 = arith.constant 0 : index
    %43 = vector.load %arg8[%c0_31, %c0_32, %c0_33] : memref<2x8x1xf32, #tpu.memory_space<vmem>>, vector<1x8x1xf32>
    %44 = vector.shape_cast %43 : vector<1x8x1xf32> to vector<8x1xf32>
    %45 = vector.broadcast %44 : vector<8x1xf32> to vector<8x122xf32>
    %46 = arith.addf %42, %45 : vector<8x122xf32>
    %cst_34 = arith.constant 0.000000e+00 : f32
    %47 = vector.broadcast %cst_34 : f32 to vector<8x122xf32>
    %48 = arith.maximumf %46, %47 : vector<8x122xf32>
    %49 = arith.truncf %48 : vector<8x122xf32> to vector<8x122xbf16>
    %50 = vector.extract_strided_slice %49 {offsets = [0, 0], sizes = [8, 96], strides = [1, 1]} : vector<8x122xbf16> to vector<8x96xbf16>
    %c0_35 = arith.constant 0 : index
    %c0_36 = arith.constant 0 : index
    %51 = vector.load %arg13[%c0_35, %c0_36] : memref<72x122xbf16, #tpu.memory_space<vmem>>, vector<8x96xbf16>
    tpu.vector_store %arg13[%c0_35, %c0_36], %50 {strides = array<i32>} : memref<72x122xbf16, #tpu.memory_space<vmem>>, vector<8x96xbf16>,
    %52 = vector.extract_strided_slice %49 {offsets = [0, 1], sizes = [8, 96], strides = [1, 1]} : vector<8x122xbf16> to vector<8x96xbf16>
    %c8_37 = arith.constant 8 : index
    %c0_38 = arith.constant 0 : index
    %53 = vector.load %arg13[%c8_37, %c0_38] : memref<72x122xbf16, #tpu.memory_space<vmem>>, vector<8x96xbf16>
    tpu.vector_store %arg13[%c8_37, %c0_38], %52 {strides = array<i32>} : memref<72x122xbf16, #tpu.memory_space<vmem>>, vector<8x96xbf16>,
    %54 = vector.extract_strided_slice %49 {offsets = [0, 2], sizes = [8, 96], strides = [1, 1]} : vector<8x122xbf16> to vector<8x96xbf16>
    %c16_39 = arith.constant 16 : index
    %c0_40 = arith.constant 0 : index
    %55 = vector.load %arg13[%c16_39, %c0_40] : memref<72x122xbf16, #tpu.memory_space<vmem>>, vector<8x96xbf16>
    tpu.vector_store %arg13[%c16_39, %c0_40], %54 {strides = array<i32>} : memref<72x122xbf16, #tpu.memory_space<vmem>>, vector<8x96xbf16>,
    %56 = vector.extract_strided_slice %49 {offsets = [0, 12], sizes = [8, 96], strides = [1, 1]} : vector<8x122xbf16> to vector<8x96xbf16>
    %c24_41 = arith.constant 24 : index
    %c0_42 = arith.constant 0 : index
    %57 = vector.load %arg13[%c24_41, %c0_42] : memref<72x122xbf16, #tpu.memory_space<vmem>>, vector<8x96xbf16>
    tpu.vector_store %arg13[%c24_41, %c0_42], %56 {strides = array<i32>} : memref<72x122xbf16, #tpu.memory_space<vmem>>, vector<8x96xbf16>,
    %58 = vector.extract_strided_slice %49 {offsets = [0, 13], sizes = [8, 96], strides = [1, 1]} : vector<8x122xbf16> to vector<8x96xbf16>
    %c32_43 = arith.constant 32 : index
    %c0_44 = arith.constant 0 : index
    %59 = vector.load %arg13[%c32_43, %c0_44] : memref<72x122xbf16, #tpu.memory_space<vmem>>, vector<8x96xbf16>
    tpu.vector_store %arg13[%c32_43, %c0_44], %58 {strides = array<i32>} : memref<72x122xbf16, #tpu.memory_space<vmem>>, vector<8x96xbf16>,
    %60 = vector.extract_strided_slice %49 {offsets = [0, 14], sizes = [8, 96], strides = [1, 1]} : vector<8x122xbf16> to vector<8x96xbf16>
    %c40_45 = arith.constant 40 : index
    %c0_46 = arith.constant 0 : index
    %61 = vector.load %arg13[%c40_45, %c0_46] : memref<72x122xbf16, #tpu.memory_space<vmem>>, vector<8x96xbf16>
    tpu.vector_store %arg13[%c40_45, %c0_46], %60 {strides = array<i32>} : memref<72x122xbf16, #tpu.memory_space<vmem>>, vector<8x96xbf16>,
    %62 = vector.extract_strided_slice %49 {offsets = [0, 24], sizes = [8, 96], strides = [1, 1]} : vector<8x122xbf16> to vector<8x96xbf16>
    %c48_47 = arith.constant 48 : index
    %c0_48 = arith.constant 0 : index
    %63 = vector.load %arg13[%c48_47, %c0_48] : memref<72x122xbf16, #tpu.memory_space<vmem>>, vector<8x96xbf16>
    tpu.vector_store %arg13[%c48_47, %c0_48], %62 {strides = array<i32>} : memref<72x122xbf16, #tpu.memory_space<vmem>>, vector<8x96xbf16>,
    %64 = vector.extract_strided_slice %49 {offsets = [0, 25], sizes = [8, 96], strides = [1, 1]} : vector<8x122xbf16> to vector<8x96xbf16>
    %c56_49 = arith.constant 56 : index
    %c0_50 = arith.constant 0 : index
    %65 = vector.load %arg13[%c56_49, %c0_50] : memref<72x122xbf16, #tpu.memory_space<vmem>>, vector<8x96xbf16>
    tpu.vector_store %arg13[%c56_49, %c0_50], %64 {strides = array<i32>} : memref<72x122xbf16, #tpu.memory_space<vmem>>, vector<8x96xbf16>,
    %66 = vector.extract_strided_slice %49 {offsets = [0, 26], sizes = [8, 96], strides = [1, 1]} : vector<8x122xbf16> to vector<8x96xbf16>
    %c64_51 = arith.constant 64 : index
    %c0_52 = arith.constant 0 : index
    %67 = vector.load %arg13[%c64_51, %c0_52] : memref<72x122xbf16, #tpu.memory_space<vmem>>, vector<8x96xbf16>
    tpu.vector_store %arg13[%c64_51, %c0_52], %66 {strides = array<i32>} : memref<72x122xbf16, #tpu.memory_space<vmem>>, vector<8x96xbf16>,
    %c0_53 = arith.constant 0 : index
    %c0_54 = arith.constant 0 : index
    %c0_55 = arith.constant 0 : index
    %68 = vector.load %arg9[%c0_53, %c0_54, %c0_55] : memref<2x16x72xbf16, #tpu.memory_space<vmem>>, vector<1x16x72xbf16>
    %69 = vector.shape_cast %68 : vector<1x16x72xbf16> to vector<16x72xbf16>
    %c0_56 = arith.constant 0 : index
    %c0_57 = arith.constant 0 : index
    %70 = vector.load %arg13[%c0_56, %c0_57] : memref<72x122xbf16, #tpu.memory_space<vmem>>, vector<72x96xbf16>
    %cst_58 = arith.constant dense<0.000000e+00> : vector<16x96xf32>
    %71 = tpu.matmul %69, %70, %cst_58 {dimension_numbers = #tpu.dot_dimension_numbers<[1], [0], [0], [1], [0, 0, 1, 1], [], []>} : vector<16x72xbf16>, vector<72x96xbf16>, vector<16x96xf32> -> vector<16x96xf32>
    %c0_59 = arith.constant 0 : index
    %c0_60 = arith.constant 0 : index
    %c0_61 = arith.constant 0 : index
    %72 = vector.load %arg10[%c0_59, %c0_60, %c0_61] : memref<2x16x1xf32, #tpu.memory_space<vmem>>, vector<1x16x1xf32>
    %73 = vector.shape_cast %72 : vector<1x16x1xf32> to vector<16x1xf32>
    %74 = vector.broadcast %73 : vector<16x1xf32> to vector<16x96xf32>
    %75 = arith.addf %71, %74 : vector<16x96xf32>
    %cst_62 = arith.constant 0.000000e+00 : f32
    %76 = vector.broadcast %cst_62 : f32 to vector<16x96xf32>
    %77 = arith.maximumf %75, %76 : vector<16x96xf32>
    %c0_63 = arith.constant 0 : index
    %c0_64 = arith.constant 0 : index
    %78 = vector.load %arg14[%c0_63, %c0_64] : memref<32x96xf32, #tpu.memory_space<vmem>>, vector<16x96xf32>
    tpu.vector_store %arg14[%c0_63, %c0_64], %77 {strides = array<i32>} : memref<32x96xf32, #tpu.memory_space<vmem>>, vector<16x96xf32>,
    %79 = vector.extract_strided_slice %9 {offsets = [8, 0], sizes = [8, 148], strides = [1, 1]} : vector<16x148xbf16> to vector<8x148xbf16>
    %80 = vector.extract_strided_slice %79 {offsets = [0, 0], sizes = [8, 122], strides = [1, 1]} : vector<8x148xbf16> to vector<8x122xbf16>
    %c0_65 = arith.constant 0 : index
    %c0_66 = arith.constant 0 : index
    %81 = vector.load %arg13[%c0_65, %c0_66] : memref<72x122xbf16, #tpu.memory_space<vmem>>, vector<8x122xbf16>
    tpu.vector_store %arg13[%c0_65, %c0_66], %80 {strides = array<i32>} : memref<72x122xbf16, #tpu.memory_space<vmem>>, vector<8x122xbf16>,
    %82 = vector.extract_strided_slice %79 {offsets = [0, 1], sizes = [8, 122], strides = [1, 1]} : vector<8x148xbf16> to vector<8x122xbf16>
    %c8_67 = arith.constant 8 : index
    %c0_68 = arith.constant 0 : index
    %83 = vector.load %arg13[%c8_67, %c0_68] : memref<72x122xbf16, #tpu.memory_space<vmem>>, vector<8x122xbf16>
    tpu.vector_store %arg13[%c8_67, %c0_68], %82 {strides = array<i32>} : memref<72x122xbf16, #tpu.memory_space<vmem>>, vector<8x122xbf16>,
    %84 = vector.extract_strided_slice %79 {offsets = [0, 2], sizes = [8, 122], strides = [1, 1]} : vector<8x148xbf16> to vector<8x122xbf16>
    %c16_69 = arith.constant 16 : index
    %c0_70 = arith.constant 0 : index
    %85 = vector.load %arg13[%c16_69, %c0_70] : memref<72x122xbf16, #tpu.memory_space<vmem>>, vector<8x122xbf16>
    tpu.vector_store %arg13[%c16_69, %c0_70], %84 {strides = array<i32>} : memref<72x122xbf16, #tpu.memory_space<vmem>>, vector<8x122xbf16>,
    %86 = vector.extract_strided_slice %79 {offsets = [0, 12], sizes = [8, 122], strides = [1, 1]} : vector<8x148xbf16> to vector<8x122xbf16>
    %c24_71 = arith.constant 24 : index
    %c0_72 = arith.constant 0 : index
    %87 = vector.load %arg13[%c24_71, %c0_72] : memref<72x122xbf16, #tpu.memory_space<vmem>>, vector<8x122xbf16>
    tpu.vector_store %arg13[%c24_71, %c0_72], %86 {strides = array<i32>} : memref<72x122xbf16, #tpu.memory_space<vmem>>, vector<8x122xbf16>,
    %88 = vector.extract_strided_slice %79 {offsets = [0, 13], sizes = [8, 122], strides = [1, 1]} : vector<8x148xbf16> to vector<8x122xbf16>
    %c32_73 = arith.constant 32 : index
    %c0_74 = arith.constant 0 : index
    %89 = vector.load %arg13[%c32_73, %c0_74] : memref<72x122xbf16, #tpu.memory_space<vmem>>, vector<8x122xbf16>
    tpu.vector_store %arg13[%c32_73, %c0_74], %88 {strides = array<i32>} : memref<72x122xbf16, #tpu.memory_space<vmem>>, vector<8x122xbf16>,
    %90 = vector.extract_strided_slice %79 {offsets = [0, 14], sizes = [8, 122], strides = [1, 1]} : vector<8x148xbf16> to vector<8x122xbf16>
    %c40_75 = arith.constant 40 : index
    %c0_76 = arith.constant 0 : index
    %91 = vector.load %arg13[%c40_75, %c0_76] : memref<72x122xbf16, #tpu.memory_space<vmem>>, vector<8x122xbf16>
    tpu.vector_store %arg13[%c40_75, %c0_76], %90 {strides = array<i32>} : memref<72x122xbf16, #tpu.memory_space<vmem>>, vector<8x122xbf16>,
    %92 = vector.extract_strided_slice %79 {offsets = [0, 24], sizes = [8, 122], strides = [1, 1]} : vector<8x148xbf16> to vector<8x122xbf16>
    %c48_77 = arith.constant 48 : index
    %c0_78 = arith.constant 0 : index
    %93 = vector.load %arg13[%c48_77, %c0_78] : memref<72x122xbf16, #tpu.memory_space<vmem>>, vector<8x122xbf16>
    tpu.vector_store %arg13[%c48_77, %c0_78], %92 {strides = array<i32>} : memref<72x122xbf16, #tpu.memory_space<vmem>>, vector<8x122xbf16>,
    %94 = vector.extract_strided_slice %79 {offsets = [0, 25], sizes = [8, 122], strides = [1, 1]} : vector<8x148xbf16> to vector<8x122xbf16>
    %c56_79 = arith.constant 56 : index
    %c0_80 = arith.constant 0 : index
    %95 = vector.load %arg13[%c56_79, %c0_80] : memref<72x122xbf16, #tpu.memory_space<vmem>>, vector<8x122xbf16>
    tpu.vector_store %arg13[%c56_79, %c0_80], %94 {strides = array<i32>} : memref<72x122xbf16, #tpu.memory_space<vmem>>, vector<8x122xbf16>,
    %96 = vector.extract_strided_slice %79 {offsets = [0, 26], sizes = [8, 122], strides = [1, 1]} : vector<8x148xbf16> to vector<8x122xbf16>
    %c64_81 = arith.constant 64 : index
    %c0_82 = arith.constant 0 : index
    %97 = vector.load %arg13[%c64_81, %c0_82] : memref<72x122xbf16, #tpu.memory_space<vmem>>, vector<8x122xbf16>
    tpu.vector_store %arg13[%c64_81, %c0_82], %96 {strides = array<i32>} : memref<72x122xbf16, #tpu.memory_space<vmem>>, vector<8x122xbf16>,
    %c1 = arith.constant 1 : index
    %c0_83 = arith.constant 0 : index
    %c0_84 = arith.constant 0 : index
    %98 = vector.load %arg5[%c1, %c0_83, %c0_84] : memref<2x16x72xbf16, #tpu.memory_space<vmem>>, vector<1x16x72xbf16>
    %99 = vector.shape_cast %98 : vector<1x16x72xbf16> to vector<16x72xbf16>
    %c0_85 = arith.constant 0 : index
    %c0_86 = arith.constant 0 : index
    %100 = vector.load %arg13[%c0_85, %c0_86] : memref<72x122xbf16, #tpu.memory_space<vmem>>, vector<72x122xbf16>
    %cst_87 = arith.constant dense<0.000000e+00> : vector<16x122xf32>
    %101 = tpu.matmul %99, %100, %cst_87 {dimension_numbers = #tpu.dot_dimension_numbers<[1], [0], [0], [1], [0, 0, 1, 1], [], []>} : vector<16x72xbf16>, vector<72x122xbf16>, vector<16x122xf32> -> vector<16x122xf32>
    %c1_88 = arith.constant 1 : index
    %c0_89 = arith.constant 0 : index
    %c0_90 = arith.constant 0 : index
    %102 = vector.load %arg6[%c1_88, %c0_89, %c0_90] : memref<2x16x1xf32, #tpu.memory_space<vmem>>, vector<1x16x1xf32>
    %103 = vector.shape_cast %102 : vector<1x16x1xf32> to vector<16x1xf32>
    %104 = vector.broadcast %103 : vector<16x1xf32> to vector<16x122xf32>
    %105 = arith.addf %101, %104 : vector<16x122xf32>
    %cst_91 = arith.constant 0.000000e+00 : f32
    %106 = vector.broadcast %cst_91 : f32 to vector<16x122xf32>
    %107 = arith.maximumf %105, %106 : vector<16x122xf32>
    %c1_92 = arith.constant 1 : index
    %c0_93 = arith.constant 0 : index
    %c0_94 = arith.constant 0 : index
    %108 = vector.load %arg7[%c1_92, %c0_93, %c0_94] : memref<2x8x16xbf16, #tpu.memory_space<vmem>>, vector<1x8x16xbf16>
    %109 = vector.shape_cast %108 : vector<1x8x16xbf16> to vector<8x16xbf16>
    %110 = arith.truncf %107 : vector<16x122xf32> to vector<16x122xbf16>
    %cst_95 = arith.constant dense<0.000000e+00> : vector<8x122xf32>
    %111 = tpu.matmul %109, %110, %cst_95 {dimension_numbers = #tpu.dot_dimension_numbers<[1], [0], [0], [1], [0, 0, 1, 1], [], []>} : vector<8x16xbf16>, vector<16x122xbf16>, vector<8x122xf32> -> vector<8x122xf32>
    %c1_96 = arith.constant 1 : index
    %c0_97 = arith.constant 0 : index
    %c0_98 = arith.constant 0 : index
    %112 = vector.load %arg8[%c1_96, %c0_97, %c0_98] : memref<2x8x1xf32, #tpu.memory_space<vmem>>, vector<1x8x1xf32>
    %113 = vector.shape_cast %112 : vector<1x8x1xf32> to vector<8x1xf32>
    %114 = vector.broadcast %113 : vector<8x1xf32> to vector<8x122xf32>
    %115 = arith.addf %111, %114 : vector<8x122xf32>
    %cst_99 = arith.constant 0.000000e+00 : f32
    %116 = vector.broadcast %cst_99 : f32 to vector<8x122xf32>
    %117 = arith.maximumf %115, %116 : vector<8x122xf32>
    %118 = arith.truncf %117 : vector<8x122xf32> to vector<8x122xbf16>
    %119 = vector.extract_strided_slice %118 {offsets = [0, 0], sizes = [8, 96], strides = [1, 1]} : vector<8x122xbf16> to vector<8x96xbf16>
    %c0_100 = arith.constant 0 : index
    %c0_101 = arith.constant 0 : index
    %120 = vector.load %arg13[%c0_100, %c0_101] : memref<72x122xbf16, #tpu.memory_space<vmem>>, vector<8x96xbf16>
    tpu.vector_store %arg13[%c0_100, %c0_101], %119 {strides = array<i32>} : memref<72x122xbf16, #tpu.memory_space<vmem>>, vector<8x96xbf16>,
    %121 = vector.extract_strided_slice %118 {offsets = [0, 1], sizes = [8, 96], strides = [1, 1]} : vector<8x122xbf16> to vector<8x96xbf16>
    %c8_102 = arith.constant 8 : index
    %c0_103 = arith.constant 0 : index
    %122 = vector.load %arg13[%c8_102, %c0_103] : memref<72x122xbf16, #tpu.memory_space<vmem>>, vector<8x96xbf16>
    tpu.vector_store %arg13[%c8_102, %c0_103], %121 {strides = array<i32>} : memref<72x122xbf16, #tpu.memory_space<vmem>>, vector<8x96xbf16>,
    %123 = vector.extract_strided_slice %118 {offsets = [0, 2], sizes = [8, 96], strides = [1, 1]} : vector<8x122xbf16> to vector<8x96xbf16>
    %c16_104 = arith.constant 16 : index
    %c0_105 = arith.constant 0 : index
    %124 = vector.load %arg13[%c16_104, %c0_105] : memref<72x122xbf16, #tpu.memory_space<vmem>>, vector<8x96xbf16>
    tpu.vector_store %arg13[%c16_104, %c0_105], %123 {strides = array<i32>} : memref<72x122xbf16, #tpu.memory_space<vmem>>, vector<8x96xbf16>,
    %125 = vector.extract_strided_slice %118 {offsets = [0, 12], sizes = [8, 96], strides = [1, 1]} : vector<8x122xbf16> to vector<8x96xbf16>
    %c24_106 = arith.constant 24 : index
    %c0_107 = arith.constant 0 : index
    %126 = vector.load %arg13[%c24_106, %c0_107] : memref<72x122xbf16, #tpu.memory_space<vmem>>, vector<8x96xbf16>
    tpu.vector_store %arg13[%c24_106, %c0_107], %125 {strides = array<i32>} : memref<72x122xbf16, #tpu.memory_space<vmem>>, vector<8x96xbf16>,
    %127 = vector.extract_strided_slice %118 {offsets = [0, 13], sizes = [8, 96], strides = [1, 1]} : vector<8x122xbf16> to vector<8x96xbf16>
    %c32_108 = arith.constant 32 : index
    %c0_109 = arith.constant 0 : index
    %128 = vector.load %arg13[%c32_108, %c0_109] : memref<72x122xbf16, #tpu.memory_space<vmem>>, vector<8x96xbf16>
    tpu.vector_store %arg13[%c32_108, %c0_109], %127 {strides = array<i32>} : memref<72x122xbf16, #tpu.memory_space<vmem>>, vector<8x96xbf16>,
    %129 = vector.extract_strided_slice %118 {offsets = [0, 14], sizes = [8, 96], strides = [1, 1]} : vector<8x122xbf16> to vector<8x96xbf16>
    %c40_110 = arith.constant 40 : index
    %c0_111 = arith.constant 0 : index
    %130 = vector.load %arg13[%c40_110, %c0_111] : memref<72x122xbf16, #tpu.memory_space<vmem>>, vector<8x96xbf16>
    tpu.vector_store %arg13[%c40_110, %c0_111], %129 {strides = array<i32>} : memref<72x122xbf16, #tpu.memory_space<vmem>>, vector<8x96xbf16>,
    %131 = vector.extract_strided_slice %118 {offsets = [0, 24], sizes = [8, 96], strides = [1, 1]} : vector<8x122xbf16> to vector<8x96xbf16>
    %c48_112 = arith.constant 48 : index
    %c0_113 = arith.constant 0 : index
    %132 = vector.load %arg13[%c48_112, %c0_113] : memref<72x122xbf16, #tpu.memory_space<vmem>>, vector<8x96xbf16>
    tpu.vector_store %arg13[%c48_112, %c0_113], %131 {strides = array<i32>} : memref<72x122xbf16, #tpu.memory_space<vmem>>, vector<8x96xbf16>,
    %133 = vector.extract_strided_slice %118 {offsets = [0, 25], sizes = [8, 96], strides = [1, 1]} : vector<8x122xbf16> to vector<8x96xbf16>
    %c56_114 = arith.constant 56 : index
    %c0_115 = arith.constant 0 : index
    %134 = vector.load %arg13[%c56_114, %c0_115] : memref<72x122xbf16, #tpu.memory_space<vmem>>, vector<8x96xbf16>
    tpu.vector_store %arg13[%c56_114, %c0_115], %133 {strides = array<i32>} : memref<72x122xbf16, #tpu.memory_space<vmem>>, vector<8x96xbf16>,
    %135 = vector.extract_strided_slice %118 {offsets = [0, 26], sizes = [8, 96], strides = [1, 1]} : vector<8x122xbf16> to vector<8x96xbf16>
    %c64_116 = arith.constant 64 : index
    %c0_117 = arith.constant 0 : index
    %136 = vector.load %arg13[%c64_116, %c0_117] : memref<72x122xbf16, #tpu.memory_space<vmem>>, vector<8x96xbf16>
    tpu.vector_store %arg13[%c64_116, %c0_117], %135 {strides = array<i32>} : memref<72x122xbf16, #tpu.memory_space<vmem>>, vector<8x96xbf16>,
    %c1_118 = arith.constant 1 : index
    %c0_119 = arith.constant 0 : index
    %c0_120 = arith.constant 0 : index
    %137 = vector.load %arg9[%c1_118, %c0_119, %c0_120] : memref<2x16x72xbf16, #tpu.memory_space<vmem>>, vector<1x16x72xbf16>
    %138 = vector.shape_cast %137 : vector<1x16x72xbf16> to vector<16x72xbf16>
    %c0_121 = arith.constant 0 : index
    %c0_122 = arith.constant 0 : index
    %139 = vector.load %arg13[%c0_121, %c0_122] : memref<72x122xbf16, #tpu.memory_space<vmem>>, vector<72x96xbf16>
    %cst_123 = arith.constant dense<0.000000e+00> : vector<16x96xf32>
    %140 = tpu.matmul %138, %139, %cst_123 {dimension_numbers = #tpu.dot_dimension_numbers<[1], [0], [0], [1], [0, 0, 1, 1], [], []>} : vector<16x72xbf16>, vector<72x96xbf16>, vector<16x96xf32> -> vector<16x96xf32>
    %c1_124 = arith.constant 1 : index
    %c0_125 = arith.constant 0 : index
    %c0_126 = arith.constant 0 : index
    %141 = vector.load %arg10[%c1_124, %c0_125, %c0_126] : memref<2x16x1xf32, #tpu.memory_space<vmem>>, vector<1x16x1xf32>
    %142 = vector.shape_cast %141 : vector<1x16x1xf32> to vector<16x1xf32>
    %143 = vector.broadcast %142 : vector<16x1xf32> to vector<16x96xf32>
    %144 = arith.addf %140, %143 : vector<16x96xf32>
    %cst_127 = arith.constant 0.000000e+00 : f32
    %145 = vector.broadcast %cst_127 : f32 to vector<16x96xf32>
    %146 = arith.maximumf %144, %145 : vector<16x96xf32>
    %c16_128 = arith.constant 16 : index
    %c0_129 = arith.constant 0 : index
    %147 = vector.load %arg14[%c16_128, %c0_129] : memref<32x96xf32, #tpu.memory_space<vmem>>, vector<16x96xf32>
    tpu.vector_store %arg14[%c16_128, %c0_129], %146 {strides = array<i32>} : memref<32x96xf32, #tpu.memory_space<vmem>>, vector<16x96xf32>,
    %c0_130 = arith.constant 0 : index
    %c0_131 = arith.constant 0 : index
    %c0_132 = arith.constant 0 : index
    %148 = vector.load %arg1[%c0_130, %c0_131, %c0_132] : memref<1x16x256xf32, #tpu.memory_space<vmem>>, vector<1x16x256xf32>
    %149 = vector.shape_cast %148 : vector<1x16x256xf32> to vector<16x256xf32>
    %cst_133 = arith.constant dense<0.000000e+00> : vector<16xf32>
    %150 = vector.multi_reduction <add>, %149, %cst_133 [1] : vector<16x256xf32> to vector<16xf32>
    %151 = vector.shape_cast %150 : vector<16xf32> to vector<16x1xf32>
    %cst_134 = arith.constant 2.560000e+02 : f32
    %152 = vector.broadcast %cst_134 : f32 to vector<16x1xf32>
    %153 = arith.divf %151, %152 : vector<16x1xf32>
    %154 = arith.mulf %149, %149 : vector<16x256xf32>
    %cst_135 = arith.constant dense<0.000000e+00> : vector<16xf32>
    %155 = vector.multi_reduction <add>, %154, %cst_135 [1] : vector<16x256xf32> to vector<16xf32>
    %156 = vector.shape_cast %155 : vector<16xf32> to vector<16x1xf32>
    %cst_136 = arith.constant 2.560000e+02 : f32
    %157 = vector.broadcast %cst_136 : f32 to vector<16x1xf32>
    %158 = arith.divf %156, %157 : vector<16x1xf32>
    %159 = arith.mulf %153, %153 : vector<16x1xf32>
    %160 = arith.subf %158, %159 : vector<16x1xf32>
    %cst_137 = arith.constant 0.000000e+00 : f32
    %161 = vector.broadcast %cst_137 : f32 to vector<16x1xf32>
    %162 = arith.maximumf %160, %161 : vector<16x1xf32>
    %cst_138 = arith.constant 9.99999974E-6 : f32
    %163 = vector.broadcast %cst_138 : f32 to vector<16x1xf32>
    %164 = arith.addf %162, %163 : vector<16x1xf32>
    %165 = math.rsqrt %164 : vector<16x1xf32>
    %cst_139 = arith.constant 0.000000e+00 : f32
    %166 = vector.broadcast %cst_139 : f32 to vector<16x1xf32>
    %167 = arith.subf %166, %153 : vector<16x1xf32>
    %168 = arith.mulf %167, %165 : vector<16x1xf32>
    %c0_140 = arith.constant 0 : index
    %c0_141 = arith.constant 0 : index
    %169 = vector.load %arg11[%c0_140, %c0_141] : memref<12x16xbf16, #tpu.memory_space<vmem>>, vector<12x16xbf16>
    %c0_142 = arith.constant 0 : index
    %c0_143 = arith.constant 0 : index
    %170 = vector.load %arg14[%c0_142, %c0_143] : memref<32x96xf32, #tpu.memory_space<vmem>>, vector<32x12xf32>
    %cst_144 = arith.constant 1.000000e+00 : f32
    %171 = vector.broadcast %cst_144 : f32 to vector<32x12xf32>
    %172 = arith.mulf %171, %170 : vector<32x12xf32>
    %c0_145 = arith.constant 0 : index
    %c12 = arith.constant 12 : index
    %173 = vector.load %arg14[%c0_145, %c12] : memref<32x96xf32, #tpu.memory_space<vmem>>, vector<32x12xf32>
    %cst_146 = arith.constant 0.000000e+00 : f32
    %174 = vector.broadcast %cst_146 : f32 to vector<32x12xf32>
    %175 = arith.mulf %174, %173 : vector<32x12xf32>
    %176 = arith.addf %172, %175 : vector<32x12xf32>
    %177 = arith.truncf %176 : vector<32x12xf32> to vector<32x12xbf16>
    %cst_147 = arith.constant dense<0.000000e+00> : vector<32x16xf32>
    %178 = tpu.matmul %177, %169, %cst_147 {dimension_numbers = #tpu.dot_dimension_numbers<[1], [0], [0], [1], [0, 0, 1, 1], [], []>} : vector<32x12xbf16>, vector<12x16xbf16>, vector<32x16xf32> -> vector<32x16xf32>
    %179 = vector.extract_strided_slice %178 {offsets = [0, 0], sizes = [16, 16], strides = [1, 1]} : vector<32x16xf32> to vector<16x16xf32>
    %180 = math.tanh %179 : vector<16x16xf32>
    %181 = vector.extract_strided_slice %178 {offsets = [16, 0], sizes = [16, 16], strides = [1, 1]} : vector<32x16xf32> to vector<16x16xf32>
    %182 = vector.extract_strided_slice %149 {offsets = [0, 0], sizes = [16, 16], strides = [1, 1]} : vector<16x256xf32> to vector<16x16xf32>
    %183 = vector.broadcast %165 : vector<16x1xf32> to vector<16x16xf32>
    %184 = arith.mulf %182, %183 : vector<16x16xf32>
    %185 = vector.broadcast %168 : vector<16x1xf32> to vector<16x16xf32>
    %186 = arith.addf %184, %185 : vector<16x16xf32>
    %187 = arith.mulf %186, %180 : vector<16x16xf32>
    %188 = arith.addf %187, %181 : vector<16x16xf32>
    %c0_148 = arith.constant 0 : index
    %c0_149 = arith.constant 0 : index
    %c0_150 = arith.constant 0 : index
    %189 = vector.load %arg12[%c0_148, %c0_149, %c0_150] : memref<1x16x256xf32, #tpu.memory_space<vmem>>, vector<1x16x16xf32>
    %190 = vector.shape_cast %189 : vector<1x16x16xf32> to vector<16x16xf32>
    %191 = vector.shape_cast %188 : vector<16x16xf32> to vector<1x16x16xf32>
    tpu.vector_store %arg12[%c0_148, %c0_149, %c0_150], %191 {strides = array<i32>} : memref<1x16x256xf32, #tpu.memory_space<vmem>>, vector<1x16x16xf32>,
    %c0_151 = arith.constant 0 : index
    %c0_152 = arith.constant 0 : index
    %192 = vector.load %arg14[%c0_151, %c0_152] : memref<32x96xf32, #tpu.memory_space<vmem>>, vector<32x12xf32>
    %cst_153 = arith.constant 7.500000e-01 : f32
    %193 = vector.broadcast %cst_153 : f32 to vector<32x12xf32>
    %194 = arith.mulf %193, %192 : vector<32x12xf32>
    %c0_154 = arith.constant 0 : index
    %c12_155 = arith.constant 12 : index
    %195 = vector.load %arg14[%c0_154, %c12_155] : memref<32x96xf32, #tpu.memory_space<vmem>>, vector<32x12xf32>
    %cst_156 = arith.constant 2.500000e-01 : f32
    %196 = vector.broadcast %cst_156 : f32 to vector<32x12xf32>
    %197 = arith.mulf %196, %195 : vector<32x12xf32>
    %198 = arith.addf %194, %197 : vector<32x12xf32>
    %199 = arith.truncf %198 : vector<32x12xf32> to vector<32x12xbf16>
    %cst_157 = arith.constant dense<0.000000e+00> : vector<32x16xf32>
    %200 = tpu.matmul %199, %169, %cst_157 {dimension_numbers = #tpu.dot_dimension_numbers<[1], [0], [0], [1], [0, 0, 1, 1], [], []>} : vector<32x12xbf16>, vector<12x16xbf16>, vector<32x16xf32> -> vector<32x16xf32>
    %201 = vector.extract_strided_slice %200 {offsets = [0, 0], sizes = [16, 16], strides = [1, 1]} : vector<32x16xf32> to vector<16x16xf32>
    %202 = math.tanh %201 : vector<16x16xf32>
    %203 = vector.extract_strided_slice %200 {offsets = [16, 0], sizes = [16, 16], strides = [1, 1]} : vector<32x16xf32> to vector<16x16xf32>
    %204 = vector.extract_strided_slice %149 {offsets = [0, 16], sizes = [16, 16], strides = [1, 1]} : vector<16x256xf32> to vector<16x16xf32>
    %205 = vector.broadcast %165 : vector<16x1xf32> to vector<16x16xf32>
    %206 = arith.mulf %204, %205 : vector<16x16xf32>
    %207 = vector.broadcast %168 : vector<16x1xf32> to vector<16x16xf32>
    %208 = arith.addf %206, %207 : vector<16x16xf32>
    %209 = arith.mulf %208, %202 : vector<16x16xf32>
    %210 = arith.addf %209, %203 : vector<16x16xf32>
    %c0_158 = arith.constant 0 : index
    %c0_159 = arith.constant 0 : index
    %c16_160 = arith.constant 16 : index
    %211 = vector.load %arg12[%c0_158, %c0_159, %c16_160] : memref<1x16x256xf32, #tpu.memory_space<vmem>>, vector<1x16x16xf32>
    %212 = vector.shape_cast %211 : vector<1x16x16xf32> to vector<16x16xf32>
    %213 = vector.shape_cast %210 : vector<16x16xf32> to vector<1x16x16xf32>
    tpu.vector_store %arg12[%c0_158, %c0_159, %c16_160], %213 {strides = array<i32>} : memref<1x16x256xf32, #tpu.memory_space<vmem>>, vector<1x16x16xf32>,
    %c0_161 = arith.constant 0 : index
    %c0_162 = arith.constant 0 : index
    %214 = vector.load %arg14[%c0_161, %c0_162] : memref<32x96xf32, #tpu.memory_space<vmem>>, vector<32x12xf32>
    %cst_163 = arith.constant 2.500000e-01 : f32
    %215 = vector.broadcast %cst_163 : f32 to vector<32x12xf32>
    %216 = arith.mulf %215, %214 : vector<32x12xf32>
    %c0_164 = arith.constant 0 : index
    %c12_165 = arith.constant 12 : index
    %217 = vector.load %arg14[%c0_164, %c12_165] : memref<32x96xf32, #tpu.memory_space<vmem>>, vector<32x12xf32>
    %cst_166 = arith.constant 7.500000e-01 : f32
    %218 = vector.broadcast %cst_166 : f32 to vector<32x12xf32>
    %219 = arith.mulf %218, %217 : vector<32x12xf32>
    %220 = arith.addf %216, %219 : vector<32x12xf32>
    %221 = arith.truncf %220 : vector<32x12xf32> to vector<32x12xbf16>
    %cst_167 = arith.constant dense<0.000000e+00> : vector<32x16xf32>
    %222 = tpu.matmul %221, %169, %cst_167 {dimension_numbers = #tpu.dot_dimension_numbers<[1], [0], [0], [1], [0, 0, 1, 1], [], []>} : vector<32x12xbf16>, vector<12x16xbf16>, vector<32x16xf32> -> vector<32x16xf32>
    %223 = vector.extract_strided_slice %222 {offsets = [0, 0], sizes = [16, 16], strides = [1, 1]} : vector<32x16xf32> to vector<16x16xf32>
    %224 = math.tanh %223 : vector<16x16xf32>
    %225 = vector.extract_strided_slice %222 {offsets = [16, 0], sizes = [16, 16], strides = [1, 1]} : vector<32x16xf32> to vector<16x16xf32>
    %226 = vector.extract_strided_slice %149 {offsets = [0, 32], sizes = [16, 16], strides = [1, 1]} : vector<16x256xf32> to vector<16x16xf32>
    %227 = vector.broadcast %165 : vector<16x1xf32> to vector<16x16xf32>
    %228 = arith.mulf %226, %227 : vector<16x16xf32>
    %229 = vector.broadcast %168 : vector<16x1xf32> to vector<16x16xf32>
    %230 = arith.addf %228, %229 : vector<16x16xf32>
    %231 = arith.mulf %230, %224 : vector<16x16xf32>
    %232 = arith.addf %231, %225 : vector<16x16xf32>
    %c0_168 = arith.constant 0 : index
    %c0_169 = arith.constant 0 : index
    %c32_170 = arith.constant 32 : index
    %233 = vector.load %arg12[%c0_168, %c0_169, %c32_170] : memref<1x16x256xf32, #tpu.memory_space<vmem>>, vector<1x16x16xf32>
    %234 = vector.shape_cast %233 : vector<1x16x16xf32> to vector<16x16xf32>
    %235 = vector.shape_cast %232 : vector<16x16xf32> to vector<1x16x16xf32>
    tpu.vector_store %arg12[%c0_168, %c0_169, %c32_170], %235 {strides = array<i32>} : memref<1x16x256xf32, #tpu.memory_space<vmem>>, vector<1x16x16xf32>,
    %c0_171 = arith.constant 0 : index
    %c12_172 = arith.constant 12 : index
    %236 = vector.load %arg14[%c0_171, %c12_172] : memref<32x96xf32, #tpu.memory_space<vmem>>, vector<32x12xf32>
    %cst_173 = arith.constant 7.500000e-01 : f32
    %237 = vector.broadcast %cst_173 : f32 to vector<32x12xf32>
    %238 = arith.mulf %237, %236 : vector<32x12xf32>
    %c0_174 = arith.constant 0 : index
    %c24_175 = arith.constant 24 : index
    %239 = vector.load %arg14[%c0_174, %c24_175] : memref<32x96xf32, #tpu.memory_space<vmem>>, vector<32x12xf32>
    %cst_176 = arith.constant 2.500000e-01 : f32
    %240 = vector.broadcast %cst_176 : f32 to vector<32x12xf32>
    %241 = arith.mulf %240, %239 : vector<32x12xf32>
    %242 = arith.addf %238, %241 : vector<32x12xf32>
    %243 = arith.truncf %242 : vector<32x12xf32> to vector<32x12xbf16>
    %cst_177 = arith.constant dense<0.000000e+00> : vector<32x16xf32>
    %244 = tpu.matmul %243, %169, %cst_177 {dimension_numbers = #tpu.dot_dimension_numbers<[1], [0], [0], [1], [0, 0, 1, 1], [], []>} : vector<32x12xbf16>, vector<12x16xbf16>, vector<32x16xf32> -> vector<32x16xf32>
    %245 = vector.extract_strided_slice %244 {offsets = [0, 0], sizes = [16, 16], strides = [1, 1]} : vector<32x16xf32> to vector<16x16xf32>
    %246 = math.tanh %245 : vector<16x16xf32>
    %247 = vector.extract_strided_slice %244 {offsets = [16, 0], sizes = [16, 16], strides = [1, 1]} : vector<32x16xf32> to vector<16x16xf32>
    %248 = vector.extract_strided_slice %149 {offsets = [0, 48], sizes = [16, 16], strides = [1, 1]} : vector<16x256xf32> to vector<16x16xf32>
    %249 = vector.broadcast %165 : vector<16x1xf32> to vector<16x16xf32>
    %250 = arith.mulf %248, %249 : vector<16x16xf32>
    %251 = vector.broadcast %168 : vector<16x1xf32> to vector<16x16xf32>
    %252 = arith.addf %250, %251 : vector<16x16xf32>
    %253 = arith.mulf %252, %246 : vector<16x16xf32>
    %254 = arith.addf %253, %247 : vector<16x16xf32>
    %c0_178 = arith.constant 0 : index
    %c0_179 = arith.constant 0 : index
    %c48_180 = arith.constant 48 : index
    %255 = vector.load %arg12[%c0_178, %c0_179, %c48_180] : memref<1x16x256xf32, #tpu.memory_space<vmem>>, vector<1x16x16xf32>
    %256 = vector.shape_cast %255 : vector<1x16x16xf32> to vector<16x16xf32>
    %257 = vector.shape_cast %254 : vector<16x16xf32> to vector<1x16x16xf32>
    tpu.vector_store %arg12[%c0_178, %c0_179, %c48_180], %257 {strides = array<i32>} : memref<1x16x256xf32, #tpu.memory_space<vmem>>, vector<1x16x16xf32>,
    %c0_181 = arith.constant 0 : index
    %c12_182 = arith.constant 12 : index
    %258 = vector.load %arg14[%c0_181, %c12_182] : memref<32x96xf32, #tpu.memory_space<vmem>>, vector<32x12xf32>
    %cst_183 = arith.constant 2.500000e-01 : f32
    %259 = vector.broadcast %cst_183 : f32 to vector<32x12xf32>
    %260 = arith.mulf %259, %258 : vector<32x12xf32>
    %c0_184 = arith.constant 0 : index
    %c24_185 = arith.constant 24 : index
    %261 = vector.load %arg14[%c0_184, %c24_185] : memref<32x96xf32, #tpu.memory_space<vmem>>, vector<32x12xf32>
    %cst_186 = arith.constant 7.500000e-01 : f32
    %262 = vector.broadcast %cst_186 : f32 to vector<32x12xf32>
    %263 = arith.mulf %262, %261 : vector<32x12xf32>
    %264 = arith.addf %260, %263 : vector<32x12xf32>
    %265 = arith.truncf %264 : vector<32x12xf32> to vector<32x12xbf16>
    %cst_187 = arith.constant dense<0.000000e+00> : vector<32x16xf32>
    %266 = tpu.matmul %265, %169, %cst_187 {dimension_numbers = #tpu.dot_dimension_numbers<[1], [0], [0], [1], [0, 0, 1, 1], [], []>} : vector<32x12xbf16>, vector<12x16xbf16>, vector<32x16xf32> -> vector<32x16xf32>
    %267 = vector.extract_strided_slice %266 {offsets = [0, 0], sizes = [16, 16], strides = [1, 1]} : vector<32x16xf32> to vector<16x16xf32>
    %268 = math.tanh %267 : vector<16x16xf32>
    %269 = vector.extract_strided_slice %266 {offsets = [16, 0], sizes = [16, 16], strides = [1, 1]} : vector<32x16xf32> to vector<16x16xf32>
    %270 = vector.extract_strided_slice %149 {offsets = [0, 64], sizes = [16, 16], strides = [1, 1]} : vector<16x256xf32> to vector<16x16xf32>
    %271 = vector.broadcast %165 : vector<16x1xf32> to vector<16x16xf32>
    %272 = arith.mulf %270, %271 : vector<16x16xf32>
    %273 = vector.broadcast %168 : vector<16x1xf32> to vector<16x16xf32>
    %274 = arith.addf %272, %273 : vector<16x16xf32>
    %275 = arith.mulf %274, %268 : vector<16x16xf32>
    %276 = arith.addf %275, %269 : vector<16x16xf32>
    %c0_188 = arith.constant 0 : index
    %c0_189 = arith.constant 0 : index
    %c64_190 = arith.constant 64 : index
    %277 = vector.load %arg12[%c0_188, %c0_189, %c64_190] : memref<1x16x256xf32, #tpu.memory_space<vmem>>, vector<1x16x16xf32>
    %278 = vector.shape_cast %277 : vector<1x16x16xf32> to vector<16x16xf32>
    %279 = vector.shape_cast %276 : vector<16x16xf32> to vector<1x16x16xf32>
    tpu.vector_store %arg12[%c0_188, %c0_189, %c64_190], %279 {strides = array<i32>} : memref<1x16x256xf32, #tpu.memory_space<vmem>>, vector<1x16x16xf32>,
    %c0_191 = arith.constant 0 : index
    %c24_192 = arith.constant 24 : index
    %280 = vector.load %arg14[%c0_191, %c24_192] : memref<32x96xf32, #tpu.memory_space<vmem>>, vector<32x12xf32>
    %cst_193 = arith.constant 7.500000e-01 : f32
    %281 = vector.broadcast %cst_193 : f32 to vector<32x12xf32>
    %282 = arith.mulf %281, %280 : vector<32x12xf32>
    %c0_194 = arith.constant 0 : index
    %c36 = arith.constant 36 : index
    %283 = vector.load %arg14[%c0_194, %c36] : memref<32x96xf32, #tpu.memory_space<vmem>>, vector<32x12xf32>
    %cst_195 = arith.constant 2.500000e-01 : f32
    %284 = vector.broadcast %cst_195 : f32 to vector<32x12xf32>
    %285 = arith.mulf %284, %283 : vector<32x12xf32>
    %286 = arith.addf %282, %285 : vector<32x12xf32>
    %287 = arith.truncf %286 : vector<32x12xf32> to vector<32x12xbf16>
    %cst_196 = arith.constant dense<0.000000e+00> : vector<32x16xf32>
    %288 = tpu.matmul %287, %169, %cst_196 {dimension_numbers = #tpu.dot_dimension_numbers<[1], [0], [0], [1], [0, 0, 1, 1], [], []>} : vector<32x12xbf16>, vector<12x16xbf16>, vector<32x16xf32> -> vector<32x16xf32>
    %289 = vector.extract_strided_slice %288 {offsets = [0, 0], sizes = [16, 16], strides = [1, 1]} : vector<32x16xf32> to vector<16x16xf32>
    %290 = math.tanh %289 : vector<16x16xf32>
    %291 = vector.extract_strided_slice %288 {offsets = [16, 0], sizes = [16, 16], strides = [1, 1]} : vector<32x16xf32> to vector<16x16xf32>
    %292 = vector.extract_strided_slice %149 {offsets = [0, 80], sizes = [16, 16], strides = [1, 1]} : vector<16x256xf32> to vector<16x16xf32>
    %293 = vector.broadcast %165 : vector<16x1xf32> to vector<16x16xf32>
    %294 = arith.mulf %292, %293 : vector<16x16xf32>
    %295 = vector.broadcast %168 : vector<16x1xf32> to vector<16x16xf32>
    %296 = arith.addf %294, %295 : vector<16x16xf32>
    %297 = arith.mulf %296, %290 : vector<16x16xf32>
    %298 = arith.addf %297, %291 : vector<16x16xf32>
    %c0_197 = arith.constant 0 : index
    %c0_198 = arith.constant 0 : index
    %c80 = arith.constant 80 : index
    %299 = vector.load %arg12[%c0_197, %c0_198, %c80] : memref<1x16x256xf32, #tpu.memory_space<vmem>>, vector<1x16x16xf32>
    %300 = vector.shape_cast %299 : vector<1x16x16xf32> to vector<16x16xf32>
    %301 = vector.shape_cast %298 : vector<16x16xf32> to vector<1x16x16xf32>
    tpu.vector_store %arg12[%c0_197, %c0_198, %c80], %301 {strides = array<i32>} : memref<1x16x256xf32, #tpu.memory_space<vmem>>, vector<1x16x16xf32>,
    %c0_199 = arith.constant 0 : index
    %c24_200 = arith.constant 24 : index
    %302 = vector.load %arg14[%c0_199, %c24_200] : memref<32x96xf32, #tpu.memory_space<vmem>>, vector<32x12xf32>
    %cst_201 = arith.constant 2.500000e-01 : f32
    %303 = vector.broadcast %cst_201 : f32 to vector<32x12xf32>
    %304 = arith.mulf %303, %302 : vector<32x12xf32>
    %c0_202 = arith.constant 0 : index
    %c36_203 = arith.constant 36 : index
    %305 = vector.load %arg14[%c0_202, %c36_203] : memref<32x96xf32, #tpu.memory_space<vmem>>, vector<32x12xf32>
    %cst_204 = arith.constant 7.500000e-01 : f32
    %306 = vector.broadcast %cst_204 : f32 to vector<32x12xf32>
    %307 = arith.mulf %306, %305 : vector<32x12xf32>
    %308 = arith.addf %304, %307 : vector<32x12xf32>
    %309 = arith.truncf %308 : vector<32x12xf32> to vector<32x12xbf16>
    %cst_205 = arith.constant dense<0.000000e+00> : vector<32x16xf32>
    %310 = tpu.matmul %309, %169, %cst_205 {dimension_numbers = #tpu.dot_dimension_numbers<[1], [0], [0], [1], [0, 0, 1, 1], [], []>} : vector<32x12xbf16>, vector<12x16xbf16>, vector<32x16xf32> -> vector<32x16xf32>
    %311 = vector.extract_strided_slice %310 {offsets = [0, 0], sizes = [16, 16], strides = [1, 1]} : vector<32x16xf32> to vector<16x16xf32>
    %312 = math.tanh %311 : vector<16x16xf32>
    %313 = vector.extract_strided_slice %310 {offsets = [16, 0], sizes = [16, 16], strides = [1, 1]} : vector<32x16xf32> to vector<16x16xf32>
    %314 = vector.extract_strided_slice %149 {offsets = [0, 96], sizes = [16, 16], strides = [1, 1]} : vector<16x256xf32> to vector<16x16xf32>
    %315 = vector.broadcast %165 : vector<16x1xf32> to vector<16x16xf32>
    %316 = arith.mulf %314, %315 : vector<16x16xf32>
    %317 = vector.broadcast %168 : vector<16x1xf32> to vector<16x16xf32>
    %318 = arith.addf %316, %317 : vector<16x16xf32>
    %319 = arith.mulf %318, %312 : vector<16x16xf32>
    %320 = arith.addf %319, %313 : vector<16x16xf32>
    %c0_206 = arith.constant 0 : index
    %c0_207 = arith.constant 0 : index
    %c96 = arith.constant 96 : index
    %321 = vector.load %arg12[%c0_206, %c0_207, %c96] : memref<1x16x256xf32, #tpu.memory_space<vmem>>, vector<1x16x16xf32>
    %322 = vector.shape_cast %321 : vector<1x16x16xf32> to vector<16x16xf32>
    %323 = vector.shape_cast %320 : vector<16x16xf32> to vector<1x16x16xf32>
    tpu.vector_store %arg12[%c0_206, %c0_207, %c96], %323 {strides = array<i32>} : memref<1x16x256xf32, #tpu.memory_space<vmem>>, vector<1x16x16xf32>,
    %c0_208 = arith.constant 0 : index
    %c36_209 = arith.constant 36 : index
    %324 = vector.load %arg14[%c0_208, %c36_209] : memref<32x96xf32, #tpu.memory_space<vmem>>, vector<32x12xf32>
    %cst_210 = arith.constant 7.500000e-01 : f32
    %325 = vector.broadcast %cst_210 : f32 to vector<32x12xf32>
    %326 = arith.mulf %325, %324 : vector<32x12xf32>
    %c0_211 = arith.constant 0 : index
    %c48_212 = arith.constant 48 : index
    %327 = vector.load %arg14[%c0_211, %c48_212] : memref<32x96xf32, #tpu.memory_space<vmem>>, vector<32x12xf32>
    %cst_213 = arith.constant 2.500000e-01 : f32
    %328 = vector.broadcast %cst_213 : f32 to vector<32x12xf32>
    %329 = arith.mulf %328, %327 : vector<32x12xf32>
    %330 = arith.addf %326, %329 : vector<32x12xf32>
    %331 = arith.truncf %330 : vector<32x12xf32> to vector<32x12xbf16>
    %cst_214 = arith.constant dense<0.000000e+00> : vector<32x16xf32>
    %332 = tpu.matmul %331, %169, %cst_214 {dimension_numbers = #tpu.dot_dimension_numbers<[1], [0], [0], [1], [0, 0, 1, 1], [], []>} : vector<32x12xbf16>, vector<12x16xbf16>, vector<32x16xf32> -> vector<32x16xf32>
    %333 = vector.extract_strided_slice %332 {offsets = [0, 0], sizes = [16, 16], strides = [1, 1]} : vector<32x16xf32> to vector<16x16xf32>
    %334 = math.tanh %333 : vector<16x16xf32>
    %335 = vector.extract_strided_slice %332 {offsets = [16, 0], sizes = [16, 16], strides = [1, 1]} : vector<32x16xf32> to vector<16x16xf32>
    %336 = vector.extract_strided_slice %149 {offsets = [0, 112], sizes = [16, 16], strides = [1, 1]} : vector<16x256xf32> to vector<16x16xf32>
    %337 = vector.broadcast %165 : vector<16x1xf32> to vector<16x16xf32>
    %338 = arith.mulf %336, %337 : vector<16x16xf32>
    %339 = vector.broadcast %168 : vector<16x1xf32> to vector<16x16xf32>
    %340 = arith.addf %338, %339 : vector<16x16xf32>
    %341 = arith.mulf %340, %334 : vector<16x16xf32>
    %342 = arith.addf %341, %335 : vector<16x16xf32>
    %c0_215 = arith.constant 0 : index
    %c0_216 = arith.constant 0 : index
    %c112 = arith.constant 112 : index
    %343 = vector.load %arg12[%c0_215, %c0_216, %c112] : memref<1x16x256xf32, #tpu.memory_space<vmem>>, vector<1x16x16xf32>
    %344 = vector.shape_cast %343 : vector<1x16x16xf32> to vector<16x16xf32>
    %345 = vector.shape_cast %342 : vector<16x16xf32> to vector<1x16x16xf32>
    tpu.vector_store %arg12[%c0_215, %c0_216, %c112], %345 {strides = array<i32>} : memref<1x16x256xf32, #tpu.memory_space<vmem>>, vector<1x16x16xf32>,
    %c0_217 = arith.constant 0 : index
    %c36_218 = arith.constant 36 : index
    %346 = vector.load %arg14[%c0_217, %c36_218] : memref<32x96xf32, #tpu.memory_space<vmem>>, vector<32x12xf32>
    %cst_219 = arith.constant 2.500000e-01 : f32
    %347 = vector.broadcast %cst_219 : f32 to vector<32x12xf32>
    %348 = arith.mulf %347, %346 : vector<32x12xf32>
    %c0_220 = arith.constant 0 : index
    %c48_221 = arith.constant 48 : index
    %349 = vector.load %arg14[%c0_220, %c48_221] : memref<32x96xf32, #tpu.memory_space<vmem>>, vector<32x12xf32>
    %cst_222 = arith.constant 7.500000e-01 : f32
    %350 = vector.broadcast %cst_222 : f32 to vector<32x12xf32>
    %351 = arith.mulf %350, %349 : vector<32x12xf32>
    %352 = arith.addf %348, %351 : vector<32x12xf32>
    %353 = arith.truncf %352 : vector<32x12xf32> to vector<32x12xbf16>
    %cst_223 = arith.constant dense<0.000000e+00> : vector<32x16xf32>
    %354 = tpu.matmul %353, %169, %cst_223 {dimension_numbers = #tpu.dot_dimension_numbers<[1], [0], [0], [1], [0, 0, 1, 1], [], []>} : vector<32x12xbf16>, vector<12x16xbf16>, vector<32x16xf32> -> vector<32x16xf32>
    %355 = vector.extract_strided_slice %354 {offsets = [0, 0], sizes = [16, 16], strides = [1, 1]} : vector<32x16xf32> to vector<16x16xf32>
    %356 = math.tanh %355 : vector<16x16xf32>
    %357 = vector.extract_strided_slice %354 {offsets = [16, 0], sizes = [16, 16], strides = [1, 1]} : vector<32x16xf32> to vector<16x16xf32>
    %358 = vector.extract_strided_slice %149 {offsets = [0, 128], sizes = [16, 16], strides = [1, 1]} : vector<16x256xf32> to vector<16x16xf32>
    %359 = vector.broadcast %165 : vector<16x1xf32> to vector<16x16xf32>
    %360 = arith.mulf %358, %359 : vector<16x16xf32>
    %361 = vector.broadcast %168 : vector<16x1xf32> to vector<16x16xf32>
    %362 = arith.addf %360, %361 : vector<16x16xf32>
    %363 = arith.mulf %362, %356 : vector<16x16xf32>
    %364 = arith.addf %363, %357 : vector<16x16xf32>
    %c0_224 = arith.constant 0 : index
    %c0_225 = arith.constant 0 : index
    %c128 = arith.constant 128 : index
    %365 = vector.load %arg12[%c0_224, %c0_225, %c128] : memref<1x16x256xf32, #tpu.memory_space<vmem>>, vector<1x16x16xf32>
    %366 = vector.shape_cast %365 : vector<1x16x16xf32> to vector<16x16xf32>
    %367 = vector.shape_cast %364 : vector<16x16xf32> to vector<1x16x16xf32>
    tpu.vector_store %arg12[%c0_224, %c0_225, %c128], %367 {strides = array<i32>} : memref<1x16x256xf32, #tpu.memory_space<vmem>>, vector<1x16x16xf32>,
    %c0_226 = arith.constant 0 : index
    %c48_227 = arith.constant 48 : index
    %368 = vector.load %arg14[%c0_226, %c48_227] : memref<32x96xf32, #tpu.memory_space<vmem>>, vector<32x12xf32>
    %cst_228 = arith.constant 7.500000e-01 : f32
    %369 = vector.broadcast %cst_228 : f32 to vector<32x12xf32>
    %370 = arith.mulf %369, %368 : vector<32x12xf32>
    %c0_229 = arith.constant 0 : index
    %c60 = arith.constant 60 : index
    %371 = vector.load %arg14[%c0_229, %c60] : memref<32x96xf32, #tpu.memory_space<vmem>>, vector<32x12xf32>
    %cst_230 = arith.constant 2.500000e-01 : f32
    %372 = vector.broadcast %cst_230 : f32 to vector<32x12xf32>
    %373 = arith.mulf %372, %371 : vector<32x12xf32>
    %374 = arith.addf %370, %373 : vector<32x12xf32>
    %375 = arith.truncf %374 : vector<32x12xf32> to vector<32x12xbf16>
    %cst_231 = arith.constant dense<0.000000e+00> : vector<32x16xf32>
    %376 = tpu.matmul %375, %169, %cst_231 {dimension_numbers = #tpu.dot_dimension_numbers<[1], [0], [0], [1], [0, 0, 1, 1], [], []>} : vector<32x12xbf16>, vector<12x16xbf16>, vector<32x16xf32> -> vector<32x16xf32>
    %377 = vector.extract_strided_slice %376 {offsets = [0, 0], sizes = [16, 16], strides = [1, 1]} : vector<32x16xf32> to vector<16x16xf32>
    %378 = math.tanh %377 : vector<16x16xf32>
    %379 = vector.extract_strided_slice %376 {offsets = [16, 0], sizes = [16, 16], strides = [1, 1]} : vector<32x16xf32> to vector<16x16xf32>
    %380 = vector.extract_strided_slice %149 {offsets = [0, 144], sizes = [16, 16], strides = [1, 1]} : vector<16x256xf32> to vector<16x16xf32>
    %381 = vector.broadcast %165 : vector<16x1xf32> to vector<16x16xf32>
    %382 = arith.mulf %380, %381 : vector<16x16xf32>
    %383 = vector.broadcast %168 : vector<16x1xf32> to vector<16x16xf32>
    %384 = arith.addf %382, %383 : vector<16x16xf32>
    %385 = arith.mulf %384, %378 : vector<16x16xf32>
    %386 = arith.addf %385, %379 : vector<16x16xf32>
    %c0_232 = arith.constant 0 : index
    %c0_233 = arith.constant 0 : index
    %c144 = arith.constant 144 : index
    %387 = vector.load %arg12[%c0_232, %c0_233, %c144] : memref<1x16x256xf32, #tpu.memory_space<vmem>>, vector<1x16x16xf32>
    %388 = vector.shape_cast %387 : vector<1x16x16xf32> to vector<16x16xf32>
    %389 = vector.shape_cast %386 : vector<16x16xf32> to vector<1x16x16xf32>
    tpu.vector_store %arg12[%c0_232, %c0_233, %c144], %389 {strides = array<i32>} : memref<1x16x256xf32, #tpu.memory_space<vmem>>, vector<1x16x16xf32>,
    %c0_234 = arith.constant 0 : index
    %c48_235 = arith.constant 48 : index
    %390 = vector.load %arg14[%c0_234, %c48_235] : memref<32x96xf32, #tpu.memory_space<vmem>>, vector<32x12xf32>
    %cst_236 = arith.constant 2.500000e-01 : f32
    %391 = vector.broadcast %cst_236 : f32 to vector<32x12xf32>
    %392 = arith.mulf %391, %390 : vector<32x12xf32>
    %c0_237 = arith.constant 0 : index
    %c60_238 = arith.constant 60 : index
    %393 = vector.load %arg14[%c0_237, %c60_238] : memref<32x96xf32, #tpu.memory_space<vmem>>, vector<32x12xf32>
    %cst_239 = arith.constant 7.500000e-01 : f32
    %394 = vector.broadcast %cst_239 : f32 to vector<32x12xf32>
    %395 = arith.mulf %394, %393 : vector<32x12xf32>
    %396 = arith.addf %392, %395 : vector<32x12xf32>
    %397 = arith.truncf %396 : vector<32x12xf32> to vector<32x12xbf16>
    %cst_240 = arith.constant dense<0.000000e+00> : vector<32x16xf32>
    %398 = tpu.matmul %397, %169, %cst_240 {dimension_numbers = #tpu.dot_dimension_numbers<[1], [0], [0], [1], [0, 0, 1, 1], [], []>} : vector<32x12xbf16>, vector<12x16xbf16>, vector<32x16xf32> -> vector<32x16xf32>
    %399 = vector.extract_strided_slice %398 {offsets = [0, 0], sizes = [16, 16], strides = [1, 1]} : vector<32x16xf32> to vector<16x16xf32>
    %400 = math.tanh %399 : vector<16x16xf32>
    %401 = vector.extract_strided_slice %398 {offsets = [16, 0], sizes = [16, 16], strides = [1, 1]} : vector<32x16xf32> to vector<16x16xf32>
    %402 = vector.extract_strided_slice %149 {offsets = [0, 160], sizes = [16, 16], strides = [1, 1]} : vector<16x256xf32> to vector<16x16xf32>
    %403 = vector.broadcast %165 : vector<16x1xf32> to vector<16x16xf32>
    %404 = arith.mulf %402, %403 : vector<16x16xf32>
    %405 = vector.broadcast %168 : vector<16x1xf32> to vector<16x16xf32>
    %406 = arith.addf %404, %405 : vector<16x16xf32>
    %407 = arith.mulf %406, %400 : vector<16x16xf32>
    %408 = arith.addf %407, %401 : vector<16x16xf32>
    %c0_241 = arith.constant 0 : index
    %c0_242 = arith.constant 0 : index
    %c160 = arith.constant 160 : index
    %409 = vector.load %arg12[%c0_241, %c0_242, %c160] : memref<1x16x256xf32, #tpu.memory_space<vmem>>, vector<1x16x16xf32>
    %410 = vector.shape_cast %409 : vector<1x16x16xf32> to vector<16x16xf32>
    %411 = vector.shape_cast %408 : vector<16x16xf32> to vector<1x16x16xf32>
    tpu.vector_store %arg12[%c0_241, %c0_242, %c160], %411 {strides = array<i32>} : memref<1x16x256xf32, #tpu.memory_space<vmem>>, vector<1x16x16xf32>,
    %c0_243 = arith.constant 0 : index
    %c60_244 = arith.constant 60 : index
    %412 = vector.load %arg14[%c0_243, %c60_244] : memref<32x96xf32, #tpu.memory_space<vmem>>, vector<32x12xf32>
    %cst_245 = arith.constant 7.500000e-01 : f32
    %413 = vector.broadcast %cst_245 : f32 to vector<32x12xf32>
    %414 = arith.mulf %413, %412 : vector<32x12xf32>
    %c0_246 = arith.constant 0 : index
    %c72 = arith.constant 72 : index
    %415 = vector.load %arg14[%c0_246, %c72] : memref<32x96xf32, #tpu.memory_space<vmem>>, vector<32x12xf32>
    %cst_247 = arith.constant 2.500000e-01 : f32
    %416 = vector.broadcast %cst_247 : f32 to vector<32x12xf32>
    %417 = arith.mulf %416, %415 : vector<32x12xf32>
    %418 = arith.addf %414, %417 : vector<32x12xf32>
    %419 = arith.truncf %418 : vector<32x12xf32> to vector<32x12xbf16>
    %cst_248 = arith.constant dense<0.000000e+00> : vector<32x16xf32>
    %420 = tpu.matmul %419, %169, %cst_248 {dimension_numbers = #tpu.dot_dimension_numbers<[1], [0], [0], [1], [0, 0, 1, 1], [], []>} : vector<32x12xbf16>, vector<12x16xbf16>, vector<32x16xf32> -> vector<32x16xf32>
    %421 = vector.extract_strided_slice %420 {offsets = [0, 0], sizes = [16, 16], strides = [1, 1]} : vector<32x16xf32> to vector<16x16xf32>
    %422 = math.tanh %421 : vector<16x16xf32>
    %423 = vector.extract_strided_slice %420 {offsets = [16, 0], sizes = [16, 16], strides = [1, 1]} : vector<32x16xf32> to vector<16x16xf32>
    %424 = vector.extract_strided_slice %149 {offsets = [0, 176], sizes = [16, 16], strides = [1, 1]} : vector<16x256xf32> to vector<16x16xf32>
    %425 = vector.broadcast %165 : vector<16x1xf32> to vector<16x16xf32>
    %426 = arith.mulf %424, %425 : vector<16x16xf32>
    %427 = vector.broadcast %168 : vector<16x1xf32> to vector<16x16xf32>
    %428 = arith.addf %426, %427 : vector<16x16xf32>
    %429 = arith.mulf %428, %422 : vector<16x16xf32>
    %430 = arith.addf %429, %423 : vector<16x16xf32>
    %c0_249 = arith.constant 0 : index
    %c0_250 = arith.constant 0 : index
    %c176 = arith.constant 176 : index
    %431 = vector.load %arg12[%c0_249, %c0_250, %c176] : memref<1x16x256xf32, #tpu.memory_space<vmem>>, vector<1x16x16xf32>
    %432 = vector.shape_cast %431 : vector<1x16x16xf32> to vector<16x16xf32>
    %433 = vector.shape_cast %430 : vector<16x16xf32> to vector<1x16x16xf32>
    tpu.vector_store %arg12[%c0_249, %c0_250, %c176], %433 {strides = array<i32>} : memref<1x16x256xf32, #tpu.memory_space<vmem>>, vector<1x16x16xf32>,
    %c0_251 = arith.constant 0 : index
    %c60_252 = arith.constant 60 : index
    %434 = vector.load %arg14[%c0_251, %c60_252] : memref<32x96xf32, #tpu.memory_space<vmem>>, vector<32x12xf32>
    %cst_253 = arith.constant 2.500000e-01 : f32
    %435 = vector.broadcast %cst_253 : f32 to vector<32x12xf32>
    %436 = arith.mulf %435, %434 : vector<32x12xf32>
    %c0_254 = arith.constant 0 : index
    %c72_255 = arith.constant 72 : index
    %437 = vector.load %arg14[%c0_254, %c72_255] : memref<32x96xf32, #tpu.memory_space<vmem>>, vector<32x12xf32>
    %cst_256 = arith.constant 7.500000e-01 : f32
    %438 = vector.broadcast %cst_256 : f32 to vector<32x12xf32>
    %439 = arith.mulf %438, %437 : vector<32x12xf32>
    %440 = arith.addf %436, %439 : vector<32x12xf32>
    %441 = arith.truncf %440 : vector<32x12xf32> to vector<32x12xbf16>
    %cst_257 = arith.constant dense<0.000000e+00> : vector<32x16xf32>
    %442 = tpu.matmul %441, %169, %cst_257 {dimension_numbers = #tpu.dot_dimension_numbers<[1], [0], [0], [1], [0, 0, 1, 1], [], []>} : vector<32x12xbf16>, vector<12x16xbf16>, vector<32x16xf32> -> vector<32x16xf32>
    %443 = vector.extract_strided_slice %442 {offsets = [0, 0], sizes = [16, 16], strides = [1, 1]} : vector<32x16xf32> to vector<16x16xf32>
    %444 = math.tanh %443 : vector<16x16xf32>
    %445 = vector.extract_strided_slice %442 {offsets = [16, 0], sizes = [16, 16], strides = [1, 1]} : vector<32x16xf32> to vector<16x16xf32>
    %446 = vector.extract_strided_slice %149 {offsets = [0, 192], sizes = [16, 16], strides = [1, 1]} : vector<16x256xf32> to vector<16x16xf32>
    %447 = vector.broadcast %165 : vector<16x1xf32> to vector<16x16xf32>
    %448 = arith.mulf %446, %447 : vector<16x16xf32>
    %449 = vector.broadcast %168 : vector<16x1xf32> to vector<16x16xf32>
    %450 = arith.addf %448, %449 : vector<16x16xf32>
    %451 = arith.mulf %450, %444 : vector<16x16xf32>
    %452 = arith.addf %451, %445 : vector<16x16xf32>
    %c0_258 = arith.constant 0 : index
    %c0_259 = arith.constant 0 : index
    %c192 = arith.constant 192 : index
    %453 = vector.load %arg12[%c0_258, %c0_259, %c192] : memref<1x16x256xf32, #tpu.memory_space<vmem>>, vector<1x16x16xf32>
    %454 = vector.shape_cast %453 : vector<1x16x16xf32> to vector<16x16xf32>
    %455 = vector.shape_cast %452 : vector<16x16xf32> to vector<1x16x16xf32>
    tpu.vector_store %arg12[%c0_258, %c0_259, %c192], %455 {strides = array<i32>} : memref<1x16x256xf32, #tpu.memory_space<vmem>>, vector<1x16x16xf32>,
    %c0_260 = arith.constant 0 : index
    %c72_261 = arith.constant 72 : index
    %456 = vector.load %arg14[%c0_260, %c72_261] : memref<32x96xf32, #tpu.memory_space<vmem>>, vector<32x12xf32>
    %cst_262 = arith.constant 7.500000e-01 : f32
    %457 = vector.broadcast %cst_262 : f32 to vector<32x12xf32>
    %458 = arith.mulf %457, %456 : vector<32x12xf32>
    %c0_263 = arith.constant 0 : index
    %c84 = arith.constant 84 : index
    %459 = vector.load %arg14[%c0_263, %c84] : memref<32x96xf32, #tpu.memory_space<vmem>>, vector<32x12xf32>
    %cst_264 = arith.constant 2.500000e-01 : f32
    %460 = vector.broadcast %cst_264 : f32 to vector<32x12xf32>
    %461 = arith.mulf %460, %459 : vector<32x12xf32>
    %462 = arith.addf %458, %461 : vector<32x12xf32>
    %463 = arith.truncf %462 : vector<32x12xf32> to vector<32x12xbf16>
    %cst_265 = arith.constant dense<0.000000e+00> : vector<32x16xf32>
    %464 = tpu.matmul %463, %169, %cst_265 {dimension_numbers = #tpu.dot_dimension_numbers<[1], [0], [0], [1], [0, 0, 1, 1], [], []>} : vector<32x12xbf16>, vector<12x16xbf16>, vector<32x16xf32> -> vector<32x16xf32>
    %465 = vector.extract_strided_slice %464 {offsets = [0, 0], sizes = [16, 16], strides = [1, 1]} : vector<32x16xf32> to vector<16x16xf32>
    %466 = math.tanh %465 : vector<16x16xf32>
    %467 = vector.extract_strided_slice %464 {offsets = [16, 0], sizes = [16, 16], strides = [1, 1]} : vector<32x16xf32> to vector<16x16xf32>
    %468 = vector.extract_strided_slice %149 {offsets = [0, 208], sizes = [16, 16], strides = [1, 1]} : vector<16x256xf32> to vector<16x16xf32>
    %469 = vector.broadcast %165 : vector<16x1xf32> to vector<16x16xf32>
    %470 = arith.mulf %468, %469 : vector<16x16xf32>
    %471 = vector.broadcast %168 : vector<16x1xf32> to vector<16x16xf32>
    %472 = arith.addf %470, %471 : vector<16x16xf32>
    %473 = arith.mulf %472, %466 : vector<16x16xf32>
    %474 = arith.addf %473, %467 : vector<16x16xf32>
    %c0_266 = arith.constant 0 : index
    %c0_267 = arith.constant 0 : index
    %c208 = arith.constant 208 : index
    %475 = vector.load %arg12[%c0_266, %c0_267, %c208] : memref<1x16x256xf32, #tpu.memory_space<vmem>>, vector<1x16x16xf32>
    %476 = vector.shape_cast %475 : vector<1x16x16xf32> to vector<16x16xf32>
    %477 = vector.shape_cast %474 : vector<16x16xf32> to vector<1x16x16xf32>
    tpu.vector_store %arg12[%c0_266, %c0_267, %c208], %477 {strides = array<i32>} : memref<1x16x256xf32, #tpu.memory_space<vmem>>, vector<1x16x16xf32>,
    %c0_268 = arith.constant 0 : index
    %c72_269 = arith.constant 72 : index
    %478 = vector.load %arg14[%c0_268, %c72_269] : memref<32x96xf32, #tpu.memory_space<vmem>>, vector<32x12xf32>
    %cst_270 = arith.constant 2.500000e-01 : f32
    %479 = vector.broadcast %cst_270 : f32 to vector<32x12xf32>
    %480 = arith.mulf %479, %478 : vector<32x12xf32>
    %c0_271 = arith.constant 0 : index
    %c84_272 = arith.constant 84 : index
    %481 = vector.load %arg14[%c0_271, %c84_272] : memref<32x96xf32, #tpu.memory_space<vmem>>, vector<32x12xf32>
    %cst_273 = arith.constant 7.500000e-01 : f32
    %482 = vector.broadcast %cst_273 : f32 to vector<32x12xf32>
    %483 = arith.mulf %482, %481 : vector<32x12xf32>
    %484 = arith.addf %480, %483 : vector<32x12xf32>
    %485 = arith.truncf %484 : vector<32x12xf32> to vector<32x12xbf16>
    %cst_274 = arith.constant dense<0.000000e+00> : vector<32x16xf32>
    %486 = tpu.matmul %485, %169, %cst_274 {dimension_numbers = #tpu.dot_dimension_numbers<[1], [0], [0], [1], [0, 0, 1, 1], [], []>} : vector<32x12xbf16>, vector<12x16xbf16>, vector<32x16xf32> -> vector<32x16xf32>
    %487 = vector.extract_strided_slice %486 {offsets = [0, 0], sizes = [16, 16], strides = [1, 1]} : vector<32x16xf32> to vector<16x16xf32>
    %488 = math.tanh %487 : vector<16x16xf32>
    %489 = vector.extract_strided_slice %486 {offsets = [16, 0], sizes = [16, 16], strides = [1, 1]} : vector<32x16xf32> to vector<16x16xf32>
    %490 = vector.extract_strided_slice %149 {offsets = [0, 224], sizes = [16, 16], strides = [1, 1]} : vector<16x256xf32> to vector<16x16xf32>
    %491 = vector.broadcast %165 : vector<16x1xf32> to vector<16x16xf32>
    %492 = arith.mulf %490, %491 : vector<16x16xf32>
    %493 = vector.broadcast %168 : vector<16x1xf32> to vector<16x16xf32>
    %494 = arith.addf %492, %493 : vector<16x16xf32>
    %495 = arith.mulf %494, %488 : vector<16x16xf32>
    %496 = arith.addf %495, %489 : vector<16x16xf32>
    %c0_275 = arith.constant 0 : index
    %c0_276 = arith.constant 0 : index
    %c224 = arith.constant 224 : index
    %497 = vector.load %arg12[%c0_275, %c0_276, %c224] : memref<1x16x256xf32, #tpu.memory_space<vmem>>, vector<1x16x16xf32>
    %498 = vector.shape_cast %497 : vector<1x16x16xf32> to vector<16x16xf32>
    %499 = vector.shape_cast %496 : vector<16x16xf32> to vector<1x16x16xf32>
    tpu.vector_store %arg12[%c0_275, %c0_276, %c224], %499 {strides = array<i32>} : memref<1x16x256xf32, #tpu.memory_space<vmem>>, vector<1x16x16xf32>,
    %c0_277 = arith.constant 0 : index
    %c84_278 = arith.constant 84 : index
    %500 = vector.load %arg14[%c0_277, %c84_278] : memref<32x96xf32, #tpu.memory_space<vmem>>, vector<32x12xf32>
    %501 = arith.truncf %500 : vector<32x12xf32> to vector<32x12xbf16>
    %cst_279 = arith.constant dense<0.000000e+00> : vector<32x16xf32>
    %502 = tpu.matmul %501, %169, %cst_279 {dimension_numbers = #tpu.dot_dimension_numbers<[1], [0], [0], [1], [0, 0, 1, 1], [], []>} : vector<32x12xbf16>, vector<12x16xbf16>, vector<32x16xf32> -> vector<32x16xf32>
    %503 = vector.extract_strided_slice %502 {offsets = [0, 0], sizes = [16, 16], strides = [1, 1]} : vector<32x16xf32> to vector<16x16xf32>
    %504 = math.tanh %503 : vector<16x16xf32>
    %505 = vector.extract_strided_slice %502 {offsets = [16, 0], sizes = [16, 16], strides = [1, 1]} : vector<32x16xf32> to vector<16x16xf32>
    %506 = vector.extract_strided_slice %149 {offsets = [0, 240], sizes = [16, 16], strides = [1, 1]} : vector<16x256xf32> to vector<16x16xf32>
    %507 = vector.broadcast %165 : vector<16x1xf32> to vector<16x16xf32>
    %508 = arith.mulf %506, %507 : vector<16x16xf32>
    %509 = vector.broadcast %168 : vector<16x1xf32> to vector<16x16xf32>
    %510 = arith.addf %508, %509 : vector<16x16xf32>
    %511 = arith.mulf %510, %504 : vector<16x16xf32>
    %512 = arith.addf %511, %505 : vector<16x16xf32>
    %c0_280 = arith.constant 0 : index
    %c0_281 = arith.constant 0 : index
    %c240 = arith.constant 240 : index
    %513 = vector.load %arg12[%c0_280, %c0_281, %c240] : memref<1x16x256xf32, #tpu.memory_space<vmem>>, vector<1x16x16xf32>
    %514 = vector.shape_cast %513 : vector<1x16x16xf32> to vector<16x16xf32>
    %515 = vector.shape_cast %512 : vector<16x16xf32> to vector<1x16x16xf32>
    tpu.vector_store %arg12[%c0_280, %c0_281, %c240], %515 {strides = array<i32>} : memref<1x16x256xf32, #tpu.memory_space<vmem>>, vector<1x16x16xf32>,
    return
  }
  func.func @transform_0(%arg0: i32) -> (i32, i32, i32) {
    %c0_i32 = arith.constant 0 : i32
    %c0_i32_0 = arith.constant 0 : i32
    %c0_i32_1 = arith.constant 0 : i32
    return %arg0, %c0_i32, %c0_i32_0 : i32, i32, i32
  }
  func.func @transform_1(%arg0: i32) -> (i32, i32, i32) {
    %c0_i32 = arith.constant 0 : i32
    %c0_i32_0 = arith.constant 0 : i32
    %c0_i32_1 = arith.constant 0 : i32
    return %arg0, %c0_i32, %c0_i32_0 : i32, i32, i32
  }
  func.func @transform_2(%arg0: i32) -> (i32, i32) {
    %c0_i32 = arith.constant 0 : i32
    %c0_i32_0 = arith.constant 0 : i32
    %c0_i32_1 = arith.constant 0 : i32
    return %c0_i32, %c0_i32_0 : i32, i32
  }
  func.func @transform_3(%arg0: i32) -> (i32, i32) {
    %c0_i32 = arith.constant 0 : i32
    %c0_i32_0 = arith.constant 0 : i32
    %c0_i32_1 = arith.constant 0 : i32
    return %c0_i32, %c0_i32_0 : i32, i32
  }
  func.func @transform_4(%arg0: i32) -> (i32, i32, i32) {
    %c0_i32 = arith.constant 0 : i32
    %c0_i32_0 = arith.constant 0 : i32
    %c0_i32_1 = arith.constant 0 : i32
    %c0_i32_2 = arith.constant 0 : i32
    return %c0_i32, %c0_i32_0, %c0_i32_1 : i32, i32, i32
  }
  func.func @transform_5(%arg0: i32) -> (i32, i32, i32) {
    %c0_i32 = arith.constant 0 : i32
    %c0_i32_0 = arith.constant 0 : i32
    %c0_i32_1 = arith.constant 0 : i32
    %c0_i32_2 = arith.constant 0 : i32
    return %c0_i32, %c0_i32_0, %c0_i32_1 : i32, i32, i32
  }
  func.func @transform_6(%arg0: i32) -> (i32, i32, i32) {
    %c0_i32 = arith.constant 0 : i32
    %c0_i32_0 = arith.constant 0 : i32
    %c0_i32_1 = arith.constant 0 : i32
    %c0_i32_2 = arith.constant 0 : i32
    return %c0_i32, %c0_i32_0, %c0_i32_1 : i32, i32, i32
  }
  func.func @transform_7(%arg0: i32) -> (i32, i32, i32) {
    %c0_i32 = arith.constant 0 : i32
    %c0_i32_0 = arith.constant 0 : i32
    %c0_i32_1 = arith.constant 0 : i32
    %c0_i32_2 = arith.constant 0 : i32
    return %c0_i32, %c0_i32_0, %c0_i32_1 : i32, i32, i32
  }
  func.func @transform_8(%arg0: i32) -> (i32, i32, i32) {
    %c0_i32 = arith.constant 0 : i32
    %c0_i32_0 = arith.constant 0 : i32
    %c0_i32_1 = arith.constant 0 : i32
    %c0_i32_2 = arith.constant 0 : i32
    return %c0_i32, %c0_i32_0, %c0_i32_1 : i32, i32, i32
  }
  func.func @transform_9(%arg0: i32) -> (i32, i32, i32) {
    %c0_i32 = arith.constant 0 : i32
    %c0_i32_0 = arith.constant 0 : i32
    %c0_i32_1 = arith.constant 0 : i32
    %c0_i32_2 = arith.constant 0 : i32
    return %c0_i32, %c0_i32_0, %c0_i32_1 : i32, i32, i32
  }
  func.func @transform_10(%arg0: i32) -> (i32, i32) {
    %c0_i32 = arith.constant 0 : i32
    %c0_i32_0 = arith.constant 0 : i32
    %c0_i32_1 = arith.constant 0 : i32
    return %c0_i32, %c0_i32_0 : i32, i32
  }
  func.func @transform_11(%arg0: i32) -> (i32, i32, i32) {
    %c0_i32 = arith.constant 0 : i32
    %c0_i32_0 = arith.constant 0 : i32
    %c0_i32_1 = arith.constant 0 : i32
    return %arg0, %c0_i32, %c0_i32_0 : i32, i32, i32
  }
}

</mosaic_0001>

<bundles_post_ra>
// kernel: feature_aware_norm_forward.1
= control target key start
LH: loop header
LB: loop body
LE: loop exit
PB: predicated region body
PF: predicated region fallthrough
CT: control target
= control target key end

     0   :  { %s3740_s17 = smov 0   ;;  %s4565_s0 = inlined_call_operand.vmem [shape: f32[2,16,256], index: 0, kind: input, shape index: {}]   ;;  %s4566_s1 = inlined_call_operand.vmem [shape: bf16[2,16,148], index: 1, kind: input, shape index: {}]   ;;  %s4567_s2 = inlined_call_operand.vmem [shape: bf16[16,16], index: 2, kind: input, shape index: {}]   ;;  %s4568_s3 = inlined_call_operand.vmem [shape: f32[16,1], index: 3, kind: input, shape index: {}]   ;;  %s4569_s4 = inlined_call_operand.vmem [shape: bf16[2,16,72], index: 4, kind: input, shape index: {}]   ;;  %s4570_s5 = inlined_call_operand.vmem [shape: f32[2,16,1], index: 5, kind: input, shape index: {}]   ;;  %s4571_s6 = inlined_call_operand.vmem [shape: bf16[2,8,16], index: 6, kind: input, shape index: {}]   ;;  %s4572_s7 = inlined_call_operand.vmem [shape: f32[2,8,1], index: 7, kind: input, shape index: {}]   ;;  %s4573_s8 = inlined_call_operand.vmem [shape: bf16[2,16,72], index: 8, kind: input, shape index: {}]   ;;  %s4574_s9 = inlined_call_operand.vmem [shape: f32[2,16,1], index: 9, kind: input, shape index: {}]   ;;  %s4575_s10 = inlined_call_operand.vmem [shape: bf16[12,16], index: 10, kind: input, shape index: {}]   ;;  %s4576_s11 = inlined_call_operand.vmem [shape: f32[2,16,256], index: 11, kind: output, shape index: {}]  }
   0x1 LB: > { %s3163_s18 = sadd.s32 4294967295, %s3656_s17   ;;  %p3167_p0 = scmp.ge.s32.totalorder %s3656_s17, 1  ;;  %s3656_s17 = sphi %s3740_s17, %s21_s17  }
   0x2   : > { %p347_p1 = scmp.lt.s32.totalorder %s3656_s17, 3 }
   0x4   : > { %p348_p2 = pnand %p3167_p0, %p347_p1 }
   0x5   : > { %p392_p3 = scmp.lt.s32.totalorder (!%p348_p2), %s3163_s18, 1  ;;  %v3658_v0 = vmov (!%p348_p2), 0   ;;  %v412_v1 = vld [vmem:[%s4568_s3] sm:$0xff] (!%p348_p2)  ;;  %v413_v2 = vld [vmem:[%s4568_s3 + $0x8] sm:$0xff] (!%p348_p2)  ;;  %vm439_vm0 = vcmask (!%p348_p2), 130048   ;;  %v3659_v13 = vmov (!%p348_p2), 0.0  }
   0x6   : > { %351 = sbr.rel (%p348_p2) target bundleno = 2448 (0x990), region = 64  ;;  %475 = vmatprep.mubr.bf16.mxu0 (!%p348_p2), %v3658_v0  ;;  %3554 = vset.pattern.permute.xlu0 (!%p348_p2), %v3658_v0  ;;  %v3559_v5 = vld [vmem:[%s4567_s2] sm:$0xff] (!%p348_p2)   ;;  %vm492_vm1 = vcmask (!%p348_p2), 994304   ;;  %s3660_s29 = smov (!%p348_p2), 126   ;;  %v562_v27 = vld [vmem:[%s4570_s5 + $0x8] sm:$0xff] (!%p348_p2)  ;;  %vm3668_vm2 = vmmov (!%p348_p2), 0  }
   0x7   : > { %416 = vperm.xlu0 (!%p348_p2), %3554, %v412_v1   ;;  %3555 = vset.pattern.permute.xlu1 (!%p348_p2), %v3658_v0  ;;  %s3661_s30 = smov (!%p348_p2), 127   ;;  %s3662_s12 = smov (!%p348_p2), 114   ;;  %v561_v25 = vld [vmem:[%s4570_s5] sm:$0xff] (!%p348_p2)  ;;  %vm525_vm3 = vcmask (!%p348_p2), 932864   ;;  %vm511_vm4 = vcmask (!%p348_p2), 949248   ;;  %vm539_vm5 = vcmask (!%p348_p2), 842752  }
   0x8   : > { %3344 = vmatprep.subr.bf16.mxu1 (!%p348_p2), %v3659_v13  ;;  %s3663_s13 = smov (!%p348_p2), 116   ;;  %s3664_s14 = smov (!%p348_p2), 103   ;;  %v658_v26 = vld [vmem:[%s4572_s7] sm:$0xff] (!%p348_p2)  ;;  %3354 = vmatprep.mubr.msk.bf16.mxu1 (!%p348_p2), %vm3668_vm2, %v3659_v13  ;;  %vm518_vm6 = vcmask (!%p348_p2), 941056   ;;  %vm532_vm7 = vcmask (!%p348_p2), 850944   ;;  %vm546_vm8 = vcmask (!%p348_p2), 834560  }
   0x9   : > { %s3665_s15 = smov (!%p348_p2), 115   ;;  %s3666_s20 = smov (!%p348_p2), 104   ;;  %vm609_vm9 = vcmask (!%p348_p2), 1043456   ;;  %v3565_v55 = vld [vmem:[%s4569_s4] sm:$0xff] (!%p348_p2)   ;;  %vm605_vm10 = vcmask (!%p348_p2), 588800   ;;  %vm709_vm11 = vcmask (!%p348_p2), 781312  }
   0xa   : > { %vm850_vm12 = vcmask (!%p348_p2), 785408   ;;  %vm1284_vm13 = vcmask (!%p348_p2), 97280   ;;  %vm1291_vm14 = vcmask (!%p348_p2), 1045504   ;;  %s3669_s19 = smov (!%p348_p2), 92   ;;  %s3670_s21 = smov (!%p348_p2), 80   ;;  %vm1467_vm15 = vcmask (!%p348_p2), 261248  }
   0xb   : > { %421 = vperm.xlu0 (!%p348_p2), %3554, %v413_v2   ;;  %s3671_s22 = smov (!%p348_p2), 68   ;;  %s3672_s24 = smov (!%p348_p2), 56  }
   0xc   : > { %s3673_s25 = smov (!%p348_p2), 44   ;;  %s3678_s28 = smov (!%p348_p2), 96  }
   0xd   : > { %s4578_s18 = smov (!%p392_p3, %s3163_s18), 1  ;;  %s3679_s16 = smov 112  }
   0xe   : > { %s3260_s23 = sshll.u32 %s4578_s18, 4 }
   0xf   : > { %s401_s26 = scalar_lea.vmem %s4566_s1, %s3260_s23  ;;  %s3667_s23 = smov 102  }
  0x10   : > { %v3556_v3 = vld [vmem:[%s401_s26 + $0x4] ss:$8 sps:$4 sm:$0xff]   ;;  %v3558_v4 = vld [vmem:[%s401_s26] ss:$8 sps:$4 sm:$0xff]   ;;  %s3259_s26 = sshll.u32 %s4578_s18, 5  ;;  %s3676_s18 = smov 48  }
  0x11   : > { %443 = vmatprep.subr.bf16.mxu0 %v3556_v3  ;;  %v656_v3 = vld [vmem:[%s4571_s6] sm:$0xf] }
  0x12   : > { %444 = vmatpush1.bf16.msra.mxu0 %v3558_v4 }
  0x13   : > { %3358 = vmatprep.subr.bf16.mxu0 %v3659_v13 }
  0x15   : > { %3177 = vmatmul.mubr.msk.bf16.vlgmr.msra.gmra.mrb[0].mxu0 %vm439_vm0, %v3559_v5 }
  0x16   : > { %3360 = vmatprep.mubr.msk.bf16.mxu0 %vm3668_vm2, %v3659_v13 }
  0x86   : > { %v417_v6 = vpop.permute.xlu0 %416 }
  0x8a   : > { %v422_v10 = vpop.permute.xlu0 %421 }
  0xe8   : > { %v477_v7 = vpop.f32.mrb[0].mxu0 }
  0xe9   : > { %v478_v8 = vadd.f32 %v477_v7, %v417_v6  ;;  %v479_v9 = vpop.f32.mrb[1].mxu0 }
  0xea   : > { %v480_v11 = vadd.f32 %v479_v9, %v417_v6  ;;  %v481_v12 = vpop.f32.mrb[2].mxu0 }
  0xeb   : > { %v486_v14 = vmax.f32 %v478_v8, 0.0  ;;  %v482_v15 = vadd.f32 %v481_v12, %v422_v10  ;;  %v483_v16 = vpop.f32.mrb[3].mxu0  ;;  %v3201_v12 = vld [vmem:[%s4570_s5 + $0x18] sm:$0xff] }
  0xec   : > { %v487_v17 = vmax.f32 %v480_v11, 0.0  ;;  %v484_v18 = vadd.f32 %v483_v16, %v422_v10 }
  0xed   : > { %v488_v19 = vmax.f32 %v482_v15, 0.0  ;;  %v3262_v20 = vpack.c.bf16 %v486_v14, %v486_v14  ;;  %v3210_v15 = vld [vmem:[%s4572_s7 + $0x8] sm:$0xff] }
  0xee   : > { %v3263_v21 = vpack.c.bf16 %v487_v17, %v486_v14  ;;  %v489_v22 = vmax.f32 %v484_v18, 0.0 }
  0xef   : > { %v490_v23 = vpack.c.bf16 %v488_v19, %v486_v14  ;;  %501 = vrot.lane.b32.xlu0 %v3262_v20, %s3660_s29  ;;  %497 = vrot.lane.b32.xlu1 %v3262_v20, %s3661_s30  ;;  %v3790_v28 = vpack.c.bf16 %v488_v19, %v488_v19  ;;  %v3200_v14 = vld [vmem:[%s4570_s5 + $0x10] sm:$0xff] }
  0xf0   : > { %v3768_v24 = vpack.c.bf16 %v489_v22, %v488_v19 }
  0xf1   : > { %493 = vst.msk [vmem:[#allocation2] sm:$0xf] %vm492_vm1, %v490_v23 }
  0xf3   : > { %522 = vrot.lane.b32.xlu0 %v3263_v21, %s3662_s12  ;;  %508 = vrot.lane.b32.xlu1 %v3263_v21, %s3663_s13 }
  0xf7   : > { %536 = vrot.lane.b32.xlu0 %v3263_v21, %s3664_s14  ;;  %515 = vrot.lane.b32.xlu1 %v3263_v21, %s3665_s15 }
  0xfb   : > { %565 = vperm.xlu0 %3554, %v561_v25   ;;  %529 = vrot.lane.b32.xlu1 %v3263_v21, %s3666_s20 }
  0xff   : > { %661 = vperm.xlu0 %3554, %v658_v26   ;;  %543 = vrot.lane.b32.xlu1 %v3263_v21, %s3667_s23 }
 0x103   : > { %857 = vrot.lane.b32.xlu0 %v3790_v28, %s3661_s30  ;;  %570 = vperm.xlu1 %3555, %v562_v27  }
 0x107   : > { %861 = vrot.lane.b32.xlu0 %v3790_v28, %s3660_s29  ;;  %867 = vrot.lane.b32.xlu1 %v3768_v24, %s3663_s13 }
 0x10b   : > { %879 = vrot.lane.b32.xlu0 %v3768_v24, %s3662_s12  ;;  %873 = vrot.lane.b32.xlu1 %v3768_v24, %s3665_s15 }
 0x161   : > { %v502_v29 = vpop.permute.xlu0 %501  ;;  %v498_v30 = vpop.permute.xlu1 %497 }
 0x162   : > { %504 = vst.msk [vmem:[#allocation2 + $0x8] sm:$0xf] %vm492_vm1, %v502_v29  ;;  %500 = vst.msk [vmem:[#allocation2 + $0x4] sm:$0xf] %vm492_vm1, %v498_v30 }
 0x165   : > { %v523_v31 = vpop.permute.xlu0 %522  ;;  %v509_v32 = vpop.permute.xlu1 %508 }
 0x166   : > { %v524_v33 = vrot.slane %v523_v31, 4  ;;  %v510_v34 = vrot.slane %v509_v32, 4 }
 0x168   : > { %v526_v35 = vsel %vm525_vm3, %v523_v31, %v524_v33  ;;  %v512_v36 = vsel %vm511_vm4, %v509_v32, %v510_v34 }
 0x169   : > { %528 = vst.msk [vmem:[#allocation2 + $0x14] sm:$0xf] %vm492_vm1, %v526_v35  ;;  %514 = vst.msk [vmem:[#allocation2 + $0xc] sm:$0xf] %vm492_vm1, %v512_v36  ;;  %v537_v37 = vpop.permute.xlu0 %536  ;;  %v516_v38 = vpop.permute.xlu1 %515  ;;  %v3560_v39 = vld [vmem:[#allocation2] sm:$0xff]  }
 0x16a   : > { %v538_v40 = vrot.slane %v537_v37, 4  ;;  %v517_v41 = vrot.slane %v516_v38, 4  ;;  %3345 = vmatpush3.bf16.msra.mxu1 %v3560_v39 }
 0x16b   : > { %3346 = vmatprep.subr.bf16.mxu1 %v3659_v13 }
 0x16c   : > { %v540_v42 = vsel %vm539_vm5, %v537_v37, %v538_v40  ;;  %v519_v43 = vsel %vm518_vm6, %v516_v38, %v517_v41 }
 0x16d   : > { %542 = vst.msk [vmem:[#allocation2 + $0x1c] sm:$0xf] %vm492_vm1, %v540_v42  ;;  %521 = vst.msk [vmem:[#allocation2 + $0x10] sm:$0xf] %vm492_vm1, %v519_v43  ;;  %v530_v44 = vpop.permute.xlu1 %529 }
 0x16e   : > { %v531_v45 = vrot.slane %v530_v44, 4 }
 0x170   : > { %v533_v46 = vsel %vm532_vm7, %v530_v44, %v531_v45  ;;  %v3561_v47 = vld [vmem:[#allocation2 + $0x8] sm:$0xff]  }
 0x171   : > { %535 = vst.msk [vmem:[#allocation2 + $0x18] sm:$0xf] %vm492_vm1, %v533_v46  ;;  %v544_v48 = vpop.permute.xlu1 %543  ;;  %3347 = vmatpush3.bf16.msra.mxu1 %v3561_v47 }
 0x172   : > { %v545_v49 = vrot.slane %v544_v48, 4  ;;  %3348 = vmatprep.subr.bf16.mxu1 %v3659_v13 }
 0x174   : > { %v547_v50 = vsel %vm546_vm8, %v544_v48, %v545_v49  ;;  %v3562_v51 = vld [vmem:[#allocation2 + $0x10] sm:$0xff]  }
 0x175   : > { %549 = vst.msk [vmem:[#allocation2 + $0x20] sm:$0xf] %vm492_vm1, %v547_v50  ;;  %3349 = vmatpush3.bf16.msra.mxu1 %v3562_v51 }
 0x176   : > { %3350 = vmatprep.subr.bf16.mxu1 %v3659_v13 }
 0x178   : > { %v3563_v52 = vld [vmem:[#allocation2 + $0x18] sm:$0xff]  }
 0x179   : > { %3351 = vmatpush3.bf16.msra.mxu1 %v3563_v52 }
 0x17a   : > { %3352 = vmatprep.subr.bf16.mxu1 %v3659_v13  ;;  %v566_v56 = vpop.permute.xlu0 %565 }
 0x17c   : > { %v3564_v53 = vld [vmem:[#allocation2 + $0x20] ss:$0 sps:$4 sm:$0xff]  }
 0x17d   : > { %v611_v54 = vsel %vm609_vm9, %v3564_v53, 0 }
 0x17e   : > { %3353 = vmatpush3.bf16.msra.mxu1 %v611_v54  ;;  %v662_v4 = vpop.permute.xlu0 %661 }
 0x17f   : > { %3378 = vmatprep.subr.bf16.mxu1 %v3659_v13 }
 0x181   : > { %3355 = vmatmul.mubr.msk.bf16.vlgmr.msra.gmra.mrb[0].mxu1 %vm605_vm10, %v3565_v55 }
 0x182   : > { %3388 = vmatprep.mubr.msk.bf16.mxu1 %vm3668_vm2, %v3659_v13  ;;  %v571_v60 = vpop.permute.xlu1 %570  ;;  %v858_v16 = vpop.permute.xlu0 %857 }
 0x186   : > { %v862_v17 = vpop.permute.xlu0 %861  ;;  %v868_v18 = vpop.permute.xlu1 %867 }
 0x187   : > { %v869_v25 = vrot.slane %v868_v18, 4 }
 0x189   : > { %v870_v32 = vsel %vm511_vm4, %v868_v18, %v869_v25  ;;  %v758_v25 = vld [vmem:[%s4574_s9 + $0x8] sm:$0xff]  ;;  %vm2061_vm4 = vcmask 917248  }
 0x18a   : > { %v880_v19 = vpop.permute.xlu0 %879  ;;  %v874_v20 = vpop.permute.xlu1 %873 }
 0x18b   : > { %v875_v26 = vrot.slane %v874_v20, 4  ;;  %v881_v33 = vrot.slane %v880_v19, 4 }
 0x18d   : > { %v876_v34 = vsel %vm518_vm6, %v874_v20, %v875_v26  ;;  %v882_v41 = vsel %vm525_vm3, %v880_v19, %v881_v33  ;;  %v757_v26 = vld [vmem:[%s4574_s9] sm:$0xff]  ;;  %vm1941_vm3 = vcmask 786048  }
 0x254   : > { %v647_v57 = vpop.f32.mrb[0].mxu1 }
 0x255   : > { %v648_v58 = vadd.f32 %v647_v57, %v566_v56  ;;  %v3356_v59 = vpop.f32.mrb[1].mxu1 }
 0x256   : > { %v650_v61 = vpop.f32.mrb[2].mxu1 }
 0x257   : > { %v651_v62 = vadd.f32 %v650_v61, %v571_v60  ;;  %v3357_v63 = vpop.f32.mrb[3].mxu1  ;;  %v654_v0 = vmax.f32 %v648_v58, 0.0 }
 0x258   : > { %v3573_v63 = vld [vmem:[%s4573_s8] sm:$0xff]  }
 0x259   : > { %v655_v1 = vmax.f32 %v651_v62, 0.0  ;;  %v3572_v62 = vld [vmem:[%s4569_s4 + $0x8] sm:$0xff]  }
 0x25b   : > { %v657_v2 = vpack.c.bf16 %v655_v1, %v654_v0 }
 0x25d   : > { %3359 = vmatpush3.bf16.msra.mxu0 %v657_v2 }
 0x25e   : > { %3364 = vmatprep.subr.bf16.mxu0 %v3659_v13 }
 0x260   : > { %3361 = vmatmul.mubr.msk.bf16.vlgmr.msra.gmra.mrb[4].mxu0 %vm439_vm0, %v656_v3 }
 0x261   : > { %3374 = vmatprep.mubr.msk.bf16.mxu0 %vm3668_vm2, %v3659_v13 }
 0x333   : > { %v701_v5 = vpop.f32.mrb[4].mxu0 }
 0x334   : > { %v702_v6 = vadd.f32 %v701_v5, %v662_v4  ;;  %v3362_v7 = vpop.f32.mrb[5].mxu0 }
 0x335   : > { %v704_v8 = vpop.f32.mrb[6].mxu0 }
 0x336   : > { %v707_v9 = vmax.f32 %v702_v6, 0.0  ;;  %v3363_v10 = vpop.f32.mrb[7].mxu0 }
 0x338   : > { %v708_v11 = vpack.c.bf16 %v707_v9, %v707_v9 }
 0x33a   : > { %718 = vrot.lane.b32.xlu0 %v708_v11, %s3660_s29  ;;  %714 = vrot.lane.b32.xlu1 %v708_v11, %s3661_s30  ;;  %710 = vst.msk [vmem:[#allocation2] sm:$0xf] %vm709_vm11, %v708_v11 }
 0x33e   : > { %726 = vrot.lane.b32.xlu0 %v708_v11, %s3665_s15  ;;  %722 = vrot.lane.b32.xlu1 %v708_v11, %s3663_s13 }
 0x342   : > { %734 = vrot.lane.b32.xlu0 %v708_v11, %s3666_s20  ;;  %730 = vrot.lane.b32.xlu1 %v708_v11, %s3662_s12 }
 0x346   : > { %885 = vrot.lane.b32.xlu0 %v3768_v24, %s3666_s20  ;;  %738 = vrot.lane.b32.xlu1 %v708_v11, %s3664_s14 }
 0x34a   : > { %897 = vrot.lane.b32.xlu0 %v3768_v24, %s3667_s23  ;;  %742 = vrot.lane.b32.xlu1 %v708_v11, %s3667_s23  ;;  %v3209_v11 = vld [vmem:[%s4571_s6 + $0x4] sm:$0xf] }
 0x34e   : > { %925 = vperm.xlu0 %3554, %v3201_v12   ;;  %891 = vrot.lane.b32.xlu1 %v3768_v24, %s3664_s14 }
 0x352   : > { %920 = vperm.xlu1 %3555, %v3200_v14  }
 0x356   : > { %1016 = vperm.xlu1 %3555, %v3210_v15  }
 0x3ac   : > { %v719_v21 = vpop.permute.xlu0 %718  ;;  %v715_v22 = vpop.permute.xlu1 %714 }
 0x3ad   : > { %721 = vst.msk [vmem:[#allocation2 + $0x8] sm:$0xf] %vm709_vm11, %v719_v21  ;;  %717 = vst.msk [vmem:[#allocation2 + $0x4] sm:$0xf] %vm709_vm11, %v715_v22 }
 0x3b0   : > { %v727_v23 = vpop.permute.xlu0 %726  ;;  %v723_v24 = vpop.permute.xlu1 %722 }
 0x3b1   : > { %729 = vst.msk [vmem:[#allocation2 + $0x10] sm:$0xf] %vm709_vm11, %v727_v23  ;;  %725 = vst.msk [vmem:[#allocation2 + $0xc] sm:$0xf] %vm709_vm11, %v723_v24 }
 0x3b4   : > { %v750_v27 = vld [vmem:[#allocation2 + $0x8] sm:$0xf]  ;;  %v749_v29 = vld [vmem:[#allocation2] sm:$0xff]   ;;  %v735_v30 = vpop.permute.xlu0 %734  ;;  %v731_v31 = vpop.permute.xlu1 %730 }
 0x3b5   : > { %864 = vst.msk [vmem:[#allocation2 + $0x8] sm:$0xf] %vm492_vm1, %v862_v17  ;;  %860 = vst.msk [vmem:[#allocation2 + $0x4] sm:$0xf] %vm492_vm1, %v858_v16  ;;  %3365 = vmatpush3.bf16.msra.mxu0 %v749_v29  ;;  %v3215_v29 = vld [vmem:[%s4574_s9 + $0x10] sm:$0xff] }
 0x3b6   : > { %737 = vst.msk [vmem:[#allocation2 + $0x18] sm:$0xf] %vm709_vm11, %v735_v30  ;;  %733 = vst.msk [vmem:[#allocation2 + $0x14] sm:$0xf] %vm709_vm11, %v731_v31  ;;  %3366 = vmatprep.subr.bf16.mxu0 %v3659_v13 }
 0x3b7   : > { %856 = vst.msk [vmem:[#allocation2] sm:$0xf] %vm492_vm1, %v3790_v28 }
 0x3b8   : > { %v752_v35 = vld [vmem:[#allocation2 + $0x10] sm:$0xf]  ;;  %v751_v36 = vld [vmem:[#allocation2 + $0xc] sm:$0xf]  ;;  %v886_v37 = vpop.permute.xlu0 %885  ;;  %v739_v38 = vpop.permute.xlu1 %738 }
 0x3b9   : > { %878 = vst.msk [vmem:[#allocation2 + $0x10] sm:$0xf] %vm492_vm1, %v876_v34  ;;  %872 = vst.msk [vmem:[#allocation2 + $0xc] sm:$0xf] %vm492_vm1, %v870_v32  ;;  %v887_v39 = vrot.slane %v886_v37, 4  ;;  %v3191_v28 = vcombine.low %v750_v27, %v751_v36  ;;  %v3216_v27 = vld [vmem:[%s4574_s9 + $0x18] sm:$0xff] }
 0x3ba   : > { %741 = vst.msk [vmem:[#allocation2 + $0x1c] sm:$0xf] %vm709_vm11, %v739_v38 }
 0x3bb   : > { %v888_v40 = vsel %vm532_vm7, %v886_v37, %v887_v39  ;;  %3367 = vmatpush3.bf16.msra.mxu0 %v3191_v28 }
 0x3bc   : > { %v743_v44 = vpop.permute.xlu1 %742  ;;  %3368 = vmatprep.subr.bf16.mxu0 %v3659_v13  ;;  %v898_v47 = vpop.permute.xlu0 %897 }
 0x3bd   : > { %v753_v42 = vld [vmem:[#allocation2 + $0x14] sm:$0xf]  ;;  %v754_v43 = vld [vmem:[#allocation2 + $0x18] sm:$0xf]  ;;  %745 = vst.msk [vmem:[#allocation2 + $0x20] sm:$0xf] %vm709_vm11, %v743_v44 }
 0x3be   : > { %884 = vst.msk [vmem:[#allocation2 + $0x14] sm:$0xf] %vm492_vm1, %v882_v41  ;;  %890 = vst.msk [vmem:[#allocation2 + $0x18] sm:$0xf] %vm492_vm1, %v888_v40  ;;  %v3192_v45 = vcombine.low %v752_v35, %v753_v42  ;;  %v3566_v46 = vld [vmem:[#allocation2] sm:$0xff]   ;;  %v899_v51 = vrot.slane %v898_v47, 4 }
 0x3bf   : > { %3379 = vmatpush3.bf16.msra.mxu1 %v3566_v46 }
 0x3c0   : > { %3369 = vmatpush3.bf16.msra.mxu0 %v3192_v45  ;;  %v892_v49 = vpop.permute.xlu1 %891  ;;  %3380 = vmatprep.subr.bf16.mxu1 %v3659_v13  ;;  %v3567_v50 = vld [vmem:[#allocation2 + $0x8] sm:$0xff]   ;;  %v900_v56 = vsel %vm546_vm8, %v898_v47, %v899_v51 }
 0x3c1   : > { %v755_v48 = vld [vmem:[#allocation2 + $0x1c] sm:$0xf]  ;;  %3370 = vmatprep.subr.bf16.mxu0 %v3659_v13  ;;  %v893_v52 = vrot.slane %v892_v49, 4 }
 0x3c2   : > { %v3193_v53 = vcombine.low %v754_v43, %v755_v48  ;;  %v3579_v43 = vld [vmem:[%s4573_s8 + $0x8] sm:$0xff]  }
 0x3c3   : > { %v894_v54 = vsel %vm539_vm5, %v892_v49, %v893_v52  ;;  %3381 = vmatpush3.bf16.msra.mxu1 %v3567_v50  ;;  %vm2181_vm5 = vcmask 1048448  }
 0x3c4   : > { %3371 = vmatpush3.bf16.msra.mxu0 %v3193_v53  ;;  %896 = vst.msk [vmem:[#allocation2 + $0x1c] sm:$0xf] %vm492_vm1, %v894_v54  ;;  %3382 = vmatprep.subr.bf16.mxu1 %v3659_v13  ;;  %v3569_v57 = vld [vmem:[#allocation2 + $0x20] ss:$0 sps:$4 sm:$0xff]  }
 0x3c5   : > { %3372 = vmatprep.subr.bf16.mxu0 %v3659_v13  ;;  %v3568_v55 = vld [vmem:[#allocation2 + $0x10] sm:$0xff]   ;;  %902 = vst.msk [vmem:[#allocation2 + $0x20] sm:$0xf] %vm492_vm1, %v900_v56  ;;  %v805_v58 = vsel %vm609_vm9, %v3569_v57, 0  ;;  %vm1701_vm1 = vcmask 523648  }
 0x3c7   : > { %3383 = vmatpush3.bf16.msra.mxu1 %v3568_v55 }
 0x3c8   : > { %3373 = vmatpush3.bf16.msra.mxu0 %v805_v58  ;;  %3384 = vmatprep.subr.bf16.mxu1 %v3659_v13 }
 0x3c9   : > { %3392 = vmatprep.subr.bf16.mxu0 %v3659_v13 }
 0x3cb   : > { %v3570_v59 = vld [vmem:[#allocation2 + $0x18] sm:$0xff]   ;;  %3375 = vmatmul.mubr.msk.bf16.vlgmr.msra.gmra.mrb[8].mxu0 %vm605_vm10, %v3573_v63 }
 0x3cc   : > { %3385 = vmatpush3.bf16.msra.mxu1 %v3570_v59  ;;  %v3571_v60 = vld [vmem:[#allocation2 + $0x20] ss:$0 sps:$4 sm:$0xff]   ;;  %3394 = vmatprep.mubr.msk.bf16.mxu0 %vm3668_vm2, %v3659_v13 }
 0x3cd   : > { %3386 = vmatprep.subr.bf16.mxu1 %v3659_v13  ;;  %v964_v61 = vsel %vm609_vm9, %v3571_v60, 0  ;;  %v926_v4 = vpop.permute.xlu0 %925 }
 0x3d0   : > { %3387 = vmatpush3.bf16.msra.mxu1 %v964_v61 }
 0x3d1   : > { %v921_v0 = vpop.permute.xlu1 %920 }
 0x3d3   : > { %3389 = vmatmul.mubr.msk.bf16.vlgmr.msra.gmra.mrb[4].mxu1 %vm605_vm10, %v3572_v62 }
 0x3d5   : > { %v1017_v17 = vpop.permute.xlu1 %1016 }
 0x49e   : > { %v3911_v12 = vpop.f32.mrb[8].mxu0 }
 0x49f   : > { %v3376_v14 = vpop.f32.mrb[9].mxu0 }
 0x4a0   : > { %v844_v15 = vpop.f32.mrb[10].mxu0 }
 0x4a1   : > { %v3377_v16 = vpop.f32.mrb[11].mxu0 }
 0x4a6   : > { %v1000_v1 = vpop.f32.mrb[4].mxu1 }
 0x4a7   : > { %v1001_v2 = vadd.f32 %v1000_v1, %v921_v0  ;;  %v3390_v3 = vpop.f32.mrb[5].mxu1 }
 0x4a8   : > { %v1003_v5 = vpop.f32.mrb[6].mxu1 }
 0x4a9   : > { %v1004_v6 = vadd.f32 %v1003_v5, %v926_v4  ;;  %v3391_v7 = vpop.f32.mrb[7].mxu1  ;;  %v1007_v8 = vmax.f32 %v1001_v2, 0.0 }
 0x4ab   : > { %v1008_v9 = vmax.f32 %v1004_v6, 0.0 }
 0x4ad   : > { %v1011_v10 = vpack.c.bf16 %v1008_v9, %v1007_v8 }
 0x4af   : > { %3393 = vmatpush3.bf16.msra.mxu0 %v1011_v10 }
 0x4b0   : > { %3398 = vmatprep.subr.bf16.mxu0 %v3659_v13 }
 0x4b2   : > { %3395 = vmatmul.mubr.msk.bf16.vlgmr.msra.gmra.mrb[12].mxu0 %vm439_vm0, %v3209_v11 }
 0x4b3   : > { %3408 = vmatprep.mubr.msk.bf16.mxu0 %vm3668_vm2, %v3659_v13  ;;  %vm1821_vm2 = vcmask 654848  }
 0x585   : > { %v1056_v18 = vpop.f32.mrb[12].mxu0 }
 0x586   : > { %v1057_v19 = vadd.f32 %v1056_v18, %v1017_v17  ;;  %v3396_v20 = vpop.f32.mrb[13].mxu0 }
 0x587   : > { %v1059_v21 = vpop.f32.mrb[14].mxu0 }
 0x588   : > { %v1062_v22 = vmax.f32 %v1057_v19, 0.0  ;;  %v3397_v23 = vpop.f32.mrb[15].mxu0 }
 0x58a   : > { %v1063_v24 = vpack.c.bf16 %v1062_v22, %v1062_v22 }
 0x58c   : > { %1064 = vst.msk [vmem:[#allocation2] sm:$0xf] %vm709_vm11, %v1063_v24  ;;  %1072 = vrot.lane.b32.xlu1 %v1063_v24, %s3660_s29  ;;  %1068 = vrot.lane.b32.xlu0 %v1063_v24, %s3661_s30 }
 0x590   : > { %1080 = vrot.lane.b32.xlu1 %v1063_v24, %s3665_s15  ;;  %1076 = vrot.lane.b32.xlu0 %v1063_v24, %s3663_s13  ;;  %s396_s15 = scalar_lea.vmem %s4565_s0, %s3259_s26 }
 0x594   : > { %1088 = vrot.lane.b32.xlu1 %v1063_v24, %s3666_s20  ;;  %1084 = vrot.lane.b32.xlu0 %v1063_v24, %s3662_s12  ;;  %s4405_s12 = scalar_lea.vmem %s4576_s11, %s3259_s26 }
 0x598   : > { %1096 = vrot.lane.b32.xlu1 %v1063_v24, %s3667_s23  ;;  %1092 = vrot.lane.b32.xlu0 %v1063_v24, %s3664_s14  ;;  %s3675_s14 = smov 32   ;;  %s3677_s23 = smov 64  }
 0x59c   : > { %766 = vperm.xlu1 %3555, %v758_v25   ;;  %761 = vperm.xlu0 %3554, %v757_v26  }
 0x5a0   : > { %1122 = vperm.xlu1 %3555, %v3216_v27   ;;  %1117 = vperm.xlu0 %3554, %v3215_v29  }
 0x5fe   : > { %v1073_v30 = vpop.permute.xlu1 %1072  ;;  %v1069_v31 = vpop.permute.xlu0 %1068 }
 0x5ff   : > { %1075 = vst.msk [vmem:[#allocation2 + $0x8] sm:$0xf] %vm709_vm11, %v1073_v30  ;;  %1071 = vst.msk [vmem:[#allocation2 + $0x4] sm:$0xf] %vm709_vm11, %v1069_v31 }
 0x602   : > { %v1081_v32 = vpop.permute.xlu1 %1080  ;;  %v1077_v33 = vpop.permute.xlu0 %1076 }
 0x603   : > { %1083 = vst.msk [vmem:[#allocation2 + $0x10] sm:$0xf] %vm709_vm11, %v1081_v32  ;;  %1079 = vst.msk [vmem:[#allocation2 + $0xc] sm:$0xf] %vm709_vm11, %v1077_v33 }
 0x606   : > { %v1089_v34 = vpop.permute.xlu1 %1088  ;;  %v1085_v35 = vpop.permute.xlu0 %1084  ;;  %v3574_v36 = vld [vmem:[#allocation2] sm:$0xff]  }
 0x607   : > { %1091 = vst.msk [vmem:[#allocation2 + $0x18] sm:$0xf] %vm709_vm11, %v1089_v34  ;;  %1087 = vst.msk [vmem:[#allocation2 + $0x14] sm:$0xf] %vm709_vm11, %v1085_v35  ;;  %3399 = vmatpush3.bf16.msra.mxu0 %v3574_v36 }
 0x608   : > { %3400 = vmatprep.subr.bf16.mxu0 %v3659_v13 }
 0x60a   : > { %v1097_v37 = vpop.permute.xlu1 %1096  ;;  %v1093_v38 = vpop.permute.xlu0 %1092  ;;  %v3575_v39 = vld [vmem:[#allocation2 + $0x8] sm:$0xff]  }
 0x60b   : > { %1099 = vst.msk [vmem:[#allocation2 + $0x20] sm:$0xf] %vm709_vm11, %v1097_v37  ;;  %1095 = vst.msk [vmem:[#allocation2 + $0x1c] sm:$0xf] %vm709_vm11, %v1093_v38  ;;  %3401 = vmatpush3.bf16.msra.mxu0 %v3575_v39  ;;  %v4128_v38 = vld [vmem:[%s4575_s10] sm:$0x3f]  }
 0x60c   : > { %3402 = vmatprep.subr.bf16.mxu0 %v3659_v13  ;;  %3508 = vmatprep.subr.msk.bf16.mxu1 %vm1291_vm14, %v4128_v38  ;;  %v4136_v39 = vsel %vm1291_vm14, %v4128_v38, 0 }
 0x60d   : > { %3413 = vmatpush3.bf16.msra.mxu1 %v4136_v39 }
 0x60e   : > { %v3576_v28 = vld [vmem:[#allocation2 + $0x10] sm:$0xff]   ;;  %3509 = vmatprep.subr.msk.bf16.mxu1 %vm1291_vm14, %v4128_v38 }
 0x60f   : > { %3403 = vmatpush3.bf16.msra.mxu0 %v3576_v28 }
 0x610   : > { %3404 = vmatprep.subr.bf16.mxu0 %v3659_v13 }
 0x612   : > { %v3577_v40 = vld [vmem:[#allocation2 + $0x18] sm:$0xff]   ;;  %v3578_v41 = vld [vmem:[#allocation2 + $0x20] ss:$0 sps:$4 sm:$0xff]  }
 0x613   : > { %3405 = vmatpush3.bf16.msra.mxu0 %v3577_v40  ;;  %v1161_v42 = vsel %vm609_vm9, %v3578_v41, 0 }
 0x614   : > { %3406 = vmatprep.subr.bf16.mxu0 %v3659_v13 }
 0x617   : > { %3407 = vmatpush3.bf16.msra.mxu0 %v1161_v42 }
 0x618   : > { %3511 = vmatprep.subr.msk.bf16.mxu0 %vm1291_vm14, %v4128_v38 }
 0x61a   : > { %3409 = vmatmul.mubr.msk.bf16.vlgmr.msra.gmra.mrb[16].mxu0 %vm605_vm10, %v3579_v43 }
 0x61b   : > { %v767_v44 = vpop.permute.xlu1 %766  ;;  %v762_v45 = vpop.permute.xlu0 %761  ;;  %3431 = vmatpush3.bf16.msra.mxu0 %v4136_v39 }
 0x61c   : > { %v845_v46 = vadd.f32 %v844_v15, %v767_v44  ;;  %v842_v47 = vadd.f32 %v3911_v12, %v762_v45  ;;  %3513 = vmatprep.subr.msk.bf16.mxu0 %vm1291_vm14, %v4128_v38 }
 0x61e   : > { %v849_v48 = vmax.f32 %v845_v46, 0.0  ;;  %v848_v49 = vmax.f32 %v842_v47, 0.0 }
 0x61f   : > { %v1123_v57 = vpop.permute.xlu1 %1122  ;;  %v1118_v58 = vpop.permute.xlu0 %1117 }
 0x620   : > { %852 = vst.msk [vmem:[#allocation3 + $0x8] sm:$0xff] %vm850_vm12, %v849_v48  ;;  %851 = vst.msk [vmem:[#allocation3] sm:$0xff] %vm850_vm12, %v848_v49 }
 0x627   : > { %v3954_v13 = vld [vmem:[#allocation3 + $0x8] sm:$0xff]  ;;  %v3956_v50 = vld [vmem:[#allocation3] sm:$0xff] }
 0x628   : > { %v3959_v51 = vmul.f32 0.25, %v3954_v13  ;;  %v3962_v52 = vmul.f32 0.25, %v3956_v50  ;;  %v3969_v53 = vmul.f32 0.75, %v3954_v13  ;;  %v3972_v54 = vmul.f32 0.75, %v3956_v50 }
 0x629   : > { %v1254_v55 = vmul.f32 0.0, %v3954_v13  ;;  %v1253_v56 = vmul.f32 0.0, %v3956_v50 }
 0x62a   : > { %1602 = vrot.lane.b32.xlu1 %v3959_v51, %s3663_s13  ;;  %1600 = vrot.lane.b32.xlu0 %v3962_v52, %s3663_s13 }
 0x62e   : > { %1722 = vrot.lane.b32.xlu1 %v3969_v53, %s3663_s13  ;;  %1720 = vrot.lane.b32.xlu0 %v3972_v54, %s3663_s13 }
 0x632   : > { %1842 = vrot.lane.b32.xlu1 %v3959_v51, %s3663_s13  ;;  %1840 = vrot.lane.b32.xlu0 %v3962_v52, %s3663_s13 }
 0x636   : > { %1962 = vrot.lane.b32.xlu1 %v3969_v53, %s3663_s13  ;;  %1960 = vrot.lane.b32.xlu0 %v3972_v54, %s3663_s13 }
 0x63a   : > { %2082 = vrot.lane.b32.xlu1 %v3959_v51, %s3663_s13  ;;  %2080 = vrot.lane.b32.xlu0 %v3962_v52, %s3663_s13 }
 0x63e   : > { %2202 = vrot.lane.b32.xlu1 %v3969_v53, %s3663_s13  ;;  %2200 = vrot.lane.b32.xlu0 %v3972_v54, %s3663_s13 }
 0x642   : > { %2309 = vrot.lane.b32.xlu1 %v3959_v51, %s3663_s13  ;;  %2307 = vrot.lane.b32.xlu0 %v3962_v52, %s3663_s13 }
 0x646   : > { %2428 = vrot.lane.b32.xlu1 %v3969_v53, %s3663_s13  ;;  %2426 = vrot.lane.b32.xlu0 %v3972_v54, %s3663_s13 }
 0x64a   : > { %2547 = vrot.lane.b32.xlu1 %v3959_v51, %s3663_s13  ;;  %2545 = vrot.lane.b32.xlu0 %v3962_v52, %s3663_s13 }
 0x64e   : > { %2666 = vrot.lane.b32.xlu1 %v3969_v53, %s3663_s13  ;;  %2664 = vrot.lane.b32.xlu0 %v3972_v54, %s3663_s13 }
 0x652   : > { %2785 = vrot.lane.b32.xlu1 %v3959_v51, %s3663_s13  ;;  %2783 = vrot.lane.b32.xlu0 %v3962_v52, %s3663_s13 }
 0x656   : > { %1263 = vrot.lane.b32.xlu1 %v1254_v55, %s3663_s13  ;;  %1261 = vrot.lane.b32.xlu0 %v1253_v56, %s3663_s13 }
 0x65a   : > { %2904 = vrot.lane.b32.xlu1 %v3969_v53, %s3663_s13  ;;  %2902 = vrot.lane.b32.xlu0 %v3972_v54, %s3663_s13 }
 0x65e   : > { %1374 = vrot.lane.b32.xlu1 %v3959_v51, %s3663_s13  ;;  %1372 = vrot.lane.b32.xlu0 %v3962_v52, %s3663_s13 }
 0x69c   : > { %v4026_v59 = vpop.permute.xlu1 %1602  ;;  %v4028_v60 = vpop.permute.xlu0 %1600 }
 0x69d   : > { %v1613_v41 = vadd.f32 %v3969_v53, %v4026_v59  ;;  %v1612_v42 = vadd.f32 %v3972_v54, %v4028_v60 }
 0x69f   : > { %v1616_v43 = vpack.c.bf16 %v1613_v41, %v1612_v42 }
 0x6a0   : > { %v4030_v61 = vpop.permute.xlu1 %1722  ;;  %v4032_v62 = vpop.permute.xlu0 %1720 }
 0x6a1   : > { %v1733_v44 = vadd.f32 %v4030_v61, %v3959_v51  ;;  %v1732_v45 = vadd.f32 %v4032_v62, %v3962_v52 }
 0x6a3   : > { %v1736_v46 = vpack.c.bf16 %v1733_v44, %v1732_v45 }
 0x6a4   : > { %v4034_v63 = vpop.permute.xlu1 %1842  ;;  %v4036_v0 = vpop.permute.xlu0 %1840 }
 0x6a5   : > { %v1853_v47 = vadd.f32 %v4034_v63, %v3969_v53  ;;  %v1852_v48 = vadd.f32 %v4036_v0, %v3972_v54 }
 0x6a7   : > { %v1856_v49 = vpack.c.bf16 %v1853_v47, %v1852_v48 }
 0x6a8   : > { %v4038_v1 = vpop.permute.xlu1 %1962  ;;  %v4040_v2 = vpop.permute.xlu0 %1960 }
 0x6a9   : > { %v1973_v55 = vadd.f32 %v4038_v1, %v3959_v51  ;;  %v1972_v56 = vadd.f32 %v4040_v2, %v3962_v52 }
 0x6ac   : > { %v4042_v3 = vpop.permute.xlu1 %2082  ;;  %v4044_v4 = vpop.permute.xlu0 %2080 }
 0x6ad   : > { %v2092_v59 = vadd.f32 %v4044_v4, %v3972_v54 }
 0x6b0   : > { %v4046_v5 = vpop.permute.xlu1 %2202  ;;  %v4048_v6 = vpop.permute.xlu0 %2200 }
 0x6b1   : > { %v2213_v61 = vadd.f32 %v4046_v5, %v3959_v51  ;;  %v2212_v62 = vadd.f32 %v4048_v6, %v3962_v52 }
 0x6b3   : > { %v2216_v63 = vpack.c.bf16 %v2213_v61, %v2212_v62  ;;  %v4259_v62 = vld [vmem:[%s396_s15] sm:$0xff] }
 0x6b4   : > { %v4050_v7 = vpop.permute.xlu1 %2309  ;;  %v4052_v8 = vpop.permute.xlu0 %2307 }
 0x6b5   : > { %v2320_v0 = vadd.f32 %v4050_v7, %v3969_v53  ;;  %v2319_v1 = vadd.f32 %v4052_v8, %v3972_v54 }
 0x6b7   : > { %v2323_v2 = vpack.c.bf16 %v2320_v0, %v2319_v1 }
 0x6b8   : > { %v4054_v9 = vpop.permute.xlu1 %2428  ;;  %v4056_v10 = vpop.permute.xlu0 %2426 }
 0x6b9   : > { %v2438_v4 = vadd.f32 %v4056_v10, %v3962_v52 }
 0x6bc   : > { %v4058_v11 = vpop.permute.xlu1 %2547  ;;  %v4060_v12 = vpop.permute.xlu0 %2545 }
 0x6bd   : > { %v2558_v6 = vadd.f32 %v4058_v11, %v3969_v53  ;;  %v2557_v7 = vadd.f32 %v4060_v12, %v3972_v54 }
 0x6bf   : > { %v2561_v8 = vpack.c.bf16 %v2558_v6, %v2557_v7 }
 0x6c0   : > { %v4062_v14 = vpop.permute.xlu1 %2666  ;;  %v4064_v15 = vpop.permute.xlu0 %2664 }
 0x6c4   : > { %v4066_v16 = vpop.permute.xlu1 %2785  ;;  %v4068_v17 = vpop.permute.xlu0 %2783 }
 0x6c5   : > { %v2795_v11 = vadd.f32 %v4068_v17, %v3972_v54 }
 0x6c8   : > { %v1264_v18 = vpop.permute.xlu1 %1263  ;;  %v1262_v19 = vpop.permute.xlu0 %1261 }
 0x6c9   : > { %v1274_v20 = vadd.f32 %v3954_v13, %v1264_v18  ;;  %v1273_v21 = vadd.f32 %v3956_v50, %v1262_v19  ;;  %v2677_v18 = vadd.f32 %v4062_v14, %v3959_v51  ;;  %v2796_v19 = vadd.f32 %v4066_v16, %v3969_v53 }
 0x6ca   : > { %v3009_v16 = vpack.c.bf16 %v3954_v13, %v3956_v50 }
 0x6cb   : > { %v1277_v22 = vpack.c.bf16 %v1274_v20, %v1273_v21  ;;  %v2799_v21 = vpack.c.bf16 %v2796_v19, %v2795_v11 }
 0x6cc   : > { %v2905_v12 = vpop.permute.xlu1 %2904  ;;  %v2903_v20 = vpop.permute.xlu0 %2902 }
 0x6cd   : > { %3414 = vmatprep.mubr.msk.bf16.mxu1 %vm1284_vm13, %v1277_v22  ;;  %v2915_v14 = vadd.f32 %v2905_v12, %v3959_v51  ;;  %v2914_v22 = vadd.f32 %v2903_v20, %v3962_v52 }
 0x6d0   : > { %v4236_v17 = vpop.permute.xlu1 %1374 }
 0x6ed   : > { %v1197_v23 = vpop.f32.mrb[16].mxu0 }
 0x6ee   : > { %v1198_v24 = vadd.f32 %v1197_v23, %v1118_v58  ;;  %v3410_v25 = vpop.f32.mrb[17].mxu0  ;;  %v2093_v58 = vadd.f32 %v4042_v3, %v3969_v53  ;;  %v2439_v3 = vadd.f32 %v4054_v9, %v3959_v51  ;;  %v2676_v9 = vadd.f32 %v4064_v15, %v3962_v52  ;;  %v4232_v23 = vpop.permute.xlu0 %1372 }
 0x6ef   : > { %v1200_v26 = vpop.f32.mrb[18].mxu0  ;;  %v2918_v15 = vpack.c.bf16 %v2915_v14, %v2914_v22 }
 0x6f0   : > { %v1204_v27 = vmax.f32 %v1198_v24, 0.0  ;;  %v1201_v29 = vadd.f32 %v1200_v26, %v1123_v57  ;;  %v3411_v30 = vpop.f32.mrb[19].mxu0  ;;  %v1976_v57 = vpack.c.bf16 %v1973_v55, %v1972_v56  ;;  %v2096_v60 = vpack.c.bf16 %v2093_v58, %v2092_v59 }
 0x6f1   : > { %v2442_v5 = vpack.c.bf16 %v2439_v3, %v2438_v4  ;;  %v2680_v10 = vpack.c.bf16 %v2677_v18, %v2676_v9  ;;  %v4274_v18 = vld [vmem:[%s396_s15 + $0x18] sm:$0xff] }
 0x6f2   : > { %1206 = vst.msk [vmem:[#allocation3 + $0x10] sm:$0xff] %vm850_vm12, %v1204_v27  ;;  %v1205_v31 = vmax.f32 %v1201_v29, 0.0 }
 0x6f4   : > { %1207 = vst.msk [vmem:[#allocation3 + $0x18] sm:$0xff] %vm850_vm12, %v1205_v31 }
 0x6f9   : > { %v4075_v32 = vld [vmem:[#allocation3 + $0x10] sm:$0xff] }
 0x6fa   : > { %v4078_v33 = vmul.f32 0.25, %v4075_v32  ;;  %v4090_v36 = vmul.f32 0.75, %v4075_v32  ;;  %v1255_v28 = vmul.f32 0.0, %v4075_v32 }
 0x6fb   : > { %v4080_v34 = vld [vmem:[#allocation3 + $0x18] sm:$0xff] }
 0x6fc   : > { %1604 = vrot.lane.b32.xlu0 %v4078_v33, %s3663_s13  ;;  %v4085_v35 = vmul.f32 0.25, %v4080_v34  ;;  %v4095_v37 = vmul.f32 0.75, %v4080_v34  ;;  %v1256_v40 = vmul.f32 0.0, %v4080_v34 }
 0x6fe   : > { %1606 = vrot.lane.b32.xlu1 %v4085_v35, %s3663_s13 }
 0x700   : > { %1724 = vrot.lane.b32.xlu0 %v4090_v36, %s3663_s13 }
 0x702   : > { %1726 = vrot.lane.b32.xlu1 %v4095_v37, %s3663_s13 }
 0x704   : > { %1844 = vrot.lane.b32.xlu0 %v4078_v33, %s3663_s13 }
 0x706   : > { %1846 = vrot.lane.b32.xlu1 %v4085_v35, %s3663_s13 }
 0x708   : > { %1964 = vrot.lane.b32.xlu0 %v4090_v36, %s3663_s13 }
 0x70a   : > { %1966 = vrot.lane.b32.xlu1 %v4095_v37, %s3663_s13 }
 0x70c   : > { %2084 = vrot.lane.b32.xlu0 %v4078_v33, %s3663_s13 }
 0x70e   : > { %2086 = vrot.lane.b32.xlu1 %v4085_v35, %s3663_s13 }
 0x710   : > { %2204 = vrot.lane.b32.xlu0 %v4090_v36, %s3663_s13 }
 0x712   : > { %2206 = vrot.lane.b32.xlu1 %v4095_v37, %s3663_s13 }
 0x714   : > { %2311 = vrot.lane.b32.xlu0 %v4078_v33, %s3663_s13 }
 0x716   : > { %2313 = vrot.lane.b32.xlu1 %v4085_v35, %s3663_s13 }
 0x718   : > { %2430 = vrot.lane.b32.xlu0 %v4090_v36, %s3663_s13 }
 0x71a   : > { %2432 = vrot.lane.b32.xlu1 %v4095_v37, %s3663_s13 }
 0x71c   : > { %2549 = vrot.lane.b32.xlu0 %v4078_v33, %s3663_s13 }
 0x71e   : > { %2551 = vrot.lane.b32.xlu1 %v4085_v35, %s3663_s13 }
 0x720   : > { %2668 = vrot.lane.b32.xlu0 %v4090_v36, %s3663_s13 }
 0x722   : > { %2670 = vrot.lane.b32.xlu1 %v4095_v37, %s3663_s13 }
 0x724   : > { %2787 = vrot.lane.b32.xlu0 %v4078_v33, %s3663_s13 }
 0x726   : > { %2789 = vrot.lane.b32.xlu1 %v4085_v35, %s3663_s13 }
 0x728   : > { %1265 = vrot.lane.b32.xlu0 %v1255_v28, %s3663_s13 }
 0x72a   : > { %1267 = vrot.lane.b32.xlu1 %v1256_v40, %s3663_s13 }
 0x72c   : > { %2906 = vrot.lane.b32.xlu0 %v4090_v36, %s3663_s13 }
 0x72e   : > { %2908 = vrot.lane.b32.xlu1 %v4095_v37, %s3663_s13 }
 0x730   : > { %1376 = vrot.lane.b32.xlu0 %v4078_v33, %s3663_s13 }
 0x732   : > { %1378 = vrot.lane.b32.xlu1 %v4085_v35, %s3663_s13 }
 0x734   : > { %1486 = vrot.lane.b32.xlu0 %v3972_v54, %s3663_s13 }
 0x736   : > { %1488 = vrot.lane.b32.xlu1 %v3969_v53, %s3663_s13 }
 0x738   : > { %1490 = vrot.lane.b32.xlu0 %v4090_v36, %s3663_s13 }
 0x73a   : > { %1492 = vrot.lane.b32.xlu1 %v4095_v37, %s3663_s13 }
 0x73c   : > { %1620 = vrot.lane.b32.xlu0 %v1616_v43, %s3663_s13 }
 0x740   : > { %1740 = vrot.lane.b32.xlu0 %v1736_v46, %s3663_s13 }
 0x744   : > { %1860 = vrot.lane.b32.xlu0 %v1856_v49, %s3666_s20 }
 0x748   : > { %1980 = vrot.lane.b32.xlu0 %v1976_v57, %s3666_s20 }
 0x74c   : > { %2100 = vrot.lane.b32.xlu0 %v2096_v60, %s3669_s19 }
 0x750   : > { %2220 = vrot.lane.b32.xlu0 %v2216_v63, %s3669_s19  ;;  %v4261_v63 = vld [vmem:[%s396_s15 + $0x8] sm:$0xff] }
 0x751   : > { %v1212_v4 = vadd.f32 %v4261_v63, %v4259_v62  ;;  %v1222_v6 = vmul.f32 %v4261_v63, %v4261_v63 }
 0x754   : > { %2327 = vrot.lane.b32.xlu0 %v2323_v2, %s3670_s21 }
 0x758   : > { %2446 = vrot.lane.b32.xlu0 %v2442_v5, %s3670_s21  ;;  %v1221_v5 = vmul.f32 %v4259_v62, %v4259_v62 }
 0x75a   : > { %v1225_v12 = vadd.f32 %v1222_v6, %v1221_v5 }
 0x75c   : > { %2565 = vrot.lane.b32.xlu0 %v2561_v8, %s3671_s22  ;;  %v4272_v8 = vld [vmem:[%s396_s15 + $0x10] sm:$0xff] }
 0x75d   : > { %v1223_v20 = vmul.f32 %v4272_v8, %v4272_v8 }
 0x760   : > { %2684 = vrot.lane.b32.xlu0 %v2680_v10, %s3671_s22 }
 0x764   : > { %2803 = vrot.lane.b32.xlu0 %v2799_v21, %s3672_s24  ;;  %v1224_v21 = vmul.f32 %v4274_v18, %v4274_v18 }
 0x768   : > { %2922 = vrot.lane.b32.xlu0 %v2918_v15, %s3672_s24 }
 0x76c   : > { %3013 = vrot.lane.b32.xlu0 %v3009_v16, %s3673_s25 }
 0x76e   : > { %v1605_v24 = vpop.permute.xlu0 %1604 }
 0x76f   : > { %v1614_v26 = vadd.f32 %v4090_v36, %v1605_v24 }
 0x770   : > { %v1607_v25 = vpop.permute.xlu1 %1606 }
 0x771   : > { %v1615_v27 = vadd.f32 %v4095_v37, %v1607_v25  ;;  %v1228_v25 = vadd.f32 %v1224_v21, %v1223_v20 }
 0x772   : > { %v1725_v29 = vpop.permute.xlu0 %1724 }
 0x773   : > { %v1617_v30 = vpack.c.bf16 %v1615_v27, %v1614_v26  ;;  %v1734_v28 = vadd.f32 %v1725_v29, %v4078_v33 }
 0x774   : > { %v1727_v31 = vpop.permute.xlu1 %1726 }
 0x775   : > { %v1735_v40 = vadd.f32 %v1727_v31, %v4085_v35  ;;  %1622 = vrot.lane.b32.xlu1 %v1617_v30, %s3663_s13 }
 0x776   : > { %v1845_v13 = vpop.permute.xlu0 %1844 }
 0x777   : > { %v1737_v50 = vpack.c.bf16 %v1735_v40, %v1734_v28  ;;  %v1854_v42 = vadd.f32 %v1845_v13, %v4090_v36 }
 0x778   : > { %v1847_v41 = vpop.permute.xlu1 %1846 }
 0x779   : > { %v1855_v43 = vadd.f32 %v1847_v41, %v4095_v37  ;;  %1742 = vrot.lane.b32.xlu1 %v1737_v50, %s3663_s13  ;;  %s3674_s13 = smov 16  }
 0x77a   : > { %v1965_v44 = vpop.permute.xlu0 %1964 }
 0x77b   : > { %v1857_v45 = vpack.c.bf16 %v1855_v43, %v1854_v42  ;;  %v1974_v47 = vadd.f32 %v1965_v44, %v4078_v33 }
 0x77c   : > { %v1967_v46 = vpop.permute.xlu1 %1966 }
 0x77d   : > { %v1975_v48 = vadd.f32 %v1967_v46, %v4085_v35  ;;  %1862 = vrot.lane.b32.xlu1 %v1857_v45, %s3666_s20 }
 0x77e   : > { %v2085_v49 = vpop.permute.xlu0 %2084 }
 0x77f   : > { %v1977_v55 = vpack.c.bf16 %v1975_v48, %v1974_v47  ;;  %v2094_v57 = vadd.f32 %v2085_v49, %v4090_v36  ;;  %v1385_v47 = vadd.f32 %v3969_v53, %v4236_v17  ;;  %v1384_v48 = vadd.f32 %v3972_v54, %v4232_v23 }
 0x780   : > { %v2087_v56 = vpop.permute.xlu1 %2086 }
 0x781   : > { %v2095_v58 = vadd.f32 %v2087_v56, %v4095_v37  ;;  %1982 = vrot.lane.b32.xlu1 %v1977_v55, %s3666_s20 }
 0x782   : > { %v2205_v59 = vpop.permute.xlu0 %2204 }
 0x783   : > { %v2097_v60 = vpack.c.bf16 %v2095_v58, %v2094_v57  ;;  %v2214_v0 = vadd.f32 %v2205_v59, %v4078_v33  ;;  %v1388_v59 = vpack.c.bf16 %v1385_v47, %v1384_v48 }
 0x784   : > { %v2207_v61 = vpop.permute.xlu1 %2206 }
 0x785   : > { %v2215_v1 = vadd.f32 %v2207_v61, %v4085_v35  ;;  %2102 = vrot.lane.b32.xlu1 %v2097_v60, %s3669_s19 }
 0x786   : > { %v2312_v2 = vpop.permute.xlu0 %2311 }
 0x787   : > { %v2217_v3 = vpack.c.bf16 %v2215_v1, %v2214_v0  ;;  %v2321_v9 = vadd.f32 %v2312_v2, %v4090_v36 }
 0x788   : > { %v2314_v7 = vpop.permute.xlu1 %2313 }
 0x789   : > { %v2322_v10 = vadd.f32 %v2314_v7, %v4095_v37  ;;  %2222 = vrot.lane.b32.xlu1 %v2217_v3, %s3669_s19 }
 0x78a   : > { %v2431_v19 = vpop.permute.xlu0 %2430 }
 0x78b   : > { %v2324_v11 = vpack.c.bf16 %v2322_v10, %v2321_v9  ;;  %1213 = vadd.xlane.f32.xlu0 %v1212_v4  ;;  %v2440_v22 = vadd.f32 %v2431_v19, %v4078_v33  ;;  %v3010_v4 = vpack.c.bf16 %v4080_v34, %v4075_v32 }
 0x78c   : > { %v2433_v14 = vpop.permute.xlu1 %2432 }
 0x78d   : > { %v2441_v15 = vadd.f32 %v2433_v14, %v4085_v35  ;;  %2329 = vrot.lane.b32.xlu1 %v2324_v11, %s3670_s21 }
 0x78e   : > { %v2550_v16 = vpop.permute.xlu0 %2549 }
 0x78f   : > { %v2443_v24 = vpack.c.bf16 %v2441_v15, %v2440_v22  ;;  %1226 = vadd.xlane.f32.xlu0 %v1225_v12  ;;  %v2559_v27 = vadd.f32 %v2550_v16, %v4090_v36 }
 0x790   : > { %v2552_v26 = vpop.permute.xlu1 %2551 }
 0x791   : > { %v2560_v29 = vadd.f32 %v2552_v26, %v4095_v37  ;;  %2448 = vrot.lane.b32.xlu1 %v2443_v24, %s3670_s21 }
 0x792   : > { %v2669_v30 = vpop.permute.xlu0 %2668 }
 0x793   : > { %v2562_v31 = vpack.c.bf16 %v2560_v29, %v2559_v27  ;;  %1229 = vadd.xlane.f32.xlu0 %v1228_v25  ;;  %v2678_v40 = vadd.f32 %v2669_v30, %v4078_v33 }
 0x794   : > { %v2671_v28 = vpop.permute.xlu1 %2670 }
 0x795   : > { %v2679_v13 = vadd.f32 %v2671_v28, %v4085_v35  ;;  %2567 = vrot.lane.b32.xlu1 %v2562_v31, %s3671_s22 }
 0x796   : > { %v2788_v50 = vpop.permute.xlu0 %2787 }
 0x797   : > { %v2681_v41 = vpack.c.bf16 %v2679_v13, %v2678_v40  ;;  %v2797_v43 = vadd.f32 %v2788_v50, %v4090_v36 }
 0x798   : > { %v2790_v42 = vpop.permute.xlu1 %2789 }
 0x799   : > { %v2798_v44 = vadd.f32 %v2790_v42, %v4095_v37  ;;  %2686 = vrot.lane.b32.xlu1 %v2681_v41, %s3671_s22 }
 0x79a   : > { %v1266_v45 = vpop.permute.xlu0 %1265 }
 0x79b   : > { %v2800_v46 = vpack.c.bf16 %v2798_v44, %v2797_v43  ;;  %v1275_v55 = vadd.f32 %v4075_v32, %v1266_v45 }
 0x79c   : > { %v1268_v49 = vpop.permute.xlu1 %1267 }
 0x79d   : > { %v1276_v56 = vadd.f32 %v4080_v34, %v1268_v49  ;;  %2805 = vrot.lane.b32.xlu1 %v2800_v46, %s3672_s24 }
 0x79e   : > { %v2907_v57 = vpop.permute.xlu0 %2906 }
 0x79f   : > { %v1278_v58 = vpack.c.bf16 %v1276_v56, %v1275_v55  ;;  %v2916_v61 = vadd.f32 %v2907_v57, %v4078_v33 }
 0x7a0   : > { %v2909_v60 = vpop.permute.xlu1 %2908 }
 0x7a1   : > { %v2917_v0 = vadd.f32 %v2909_v60, %v4085_v35  ;;  %3415 = vmatmul.mubr.msk.bf16.vlgmr.msra.gmra.mrb[8].mxu1 %vm1284_vm13, %v1278_v58 }
 0x7a2   : > { %v1377_v53 = vpop.permute.xlu0 %1376  ;;  %3420 = vmatprep.mubr.msk.bf16.mxu1 %vm1284_vm13, %v1388_v59  ;;  %3419 = vmatpush3.bf16.msra.mxu1 %v4136_v39 }
 0x7a3   : > { %v2919_v54 = vpack.c.bf16 %v2917_v0, %v2916_v61  ;;  %3510 = vmatprep.subr.msk.bf16.mxu1 %vm1291_vm14, %v4128_v38  ;;  %v1386_v17 = vadd.f32 %v4090_v36, %v1377_v53 }
 0x7a4   : > { %v1379_v23 = vpop.permute.xlu1 %1378 }
 0x7a5   : > { %v1387_v1 = vadd.f32 %v4095_v37, %v1379_v23  ;;  %2924 = vrot.lane.b32.xlu1 %v2919_v54, %s3672_s24 }
 0x7a6   : > { %v1487_v2 = vpop.permute.xlu0 %1486 }
 0x7a7   : > { %v1389_v3 = vpack.c.bf16 %v1387_v1, %v1386_v17  ;;  %v1498_v6 = vadd.f32 %v3962_v52, %v1487_v2 }
 0x7a8   : > { %v1489_v5 = vpop.permute.xlu1 %1488 }
 0x7a9   : > { %v1499_v7 = vadd.f32 %v3959_v51, %v1489_v5  ;;  %3015 = vrot.lane.b32.xlu1 %v3010_v4, %s3673_s25  ;;  %3421 = vmatmul.mubr.msk.bf16.vlgmr.msra.gmra.mrb[12].mxu1 %vm1284_vm13, %v1389_v3 }
 0x7aa   : > { %v1491_v9 = vpop.permute.xlu0 %1490  ;;  %3425 = vmatpush3.bf16.msra.mxu1 %v4136_v39 }
 0x7ab   : > { %v1502_v36 = vpack.c.bf16 %v1499_v7, %v1498_v6  ;;  %3512 = vmatprep.subr.msk.bf16.mxu1 %vm1291_vm14, %v4128_v38  ;;  %v1500_v10 = vadd.f32 %v4078_v33, %v1491_v9  ;;  %v1215_v33 = vadd.f32 %v4274_v18, %v4272_v8 }
 0x7ac   : > { %v1493_v37 = vpop.permute.xlu1 %1492 }
 0x7ad   : > { %v1501_v32 = vadd.f32 %v4085_v35, %v1493_v37  ;;  %3426 = vmatprep.mubr.msk.bf16.mxu1 %vm1284_vm13, %v1502_v36 }
 0x7ae   : > { %v1621_v52 = vpop.permute.xlu0 %1620 }
 0x7af   : > { %v1503_v51 = vpack.c.bf16 %v1501_v32, %v1500_v10  ;;  %3432 = vmatprep.mubr.msk.bf16.mxu0 %vm1284_vm13, %v1621_v52 }
 0x7b1   : > { %3427 = vmatmul.mubr.msk.bf16.vlgmr.msra.gmra.mrb[16].mxu1 %vm1284_vm13, %v1503_v51 }
 0x7b2   : > { %v1741_v34 = vpop.permute.xlu0 %1740  ;;  %3437 = vmatpush3.bf16.msra.mxu1 %v4136_v39 }
 0x7b3   : > { %3438 = vmatprep.mubr.msk.bf16.mxu1 %vm1284_vm13, %v1741_v34  ;;  %3514 = vmatprep.subr.msk.bf16.mxu1 %vm1291_vm14, %v4128_v38 }
 0x7b6   : > { %v1861_v35 = vpop.permute.xlu0 %1860 }
 0x7ba   : > { %v1981_v19 = vpop.permute.xlu0 %1980 }
 0x7be   : > { %v2101_v11 = vpop.permute.xlu0 %2100 }
 0x7c2   : > { %v2221_v12 = vpop.permute.xlu0 %2220 }
 0x7c6   : > { %v2328_v14 = vpop.permute.xlu0 %2327 }
 0x7ca   : > { %v2447_v15 = vpop.permute.xlu0 %2446 }
 0x7cd   : > { %1216 = vadd.xlane.f32.xlu1 %v1215_v33 }
 0x7ce   : > { %v2566_v25 = vpop.permute.xlu0 %2565 }
 0x7d2   : > { %v2685_v27 = vpop.permute.xlu0 %2684 }
 0x7d6   : > { %v2804_v31 = vpop.permute.xlu0 %2803 }
 0x7da   : > { %v2923_v40 = vpop.permute.xlu0 %2922 }
 0x7de   : > { %v3014_v41 = vpop.permute.xlu0 %3013 }
 0x7e7   : > { %v1623_v20 = vpop.permute.xlu1 %1622 }
 0x7e8   : > { %3433 = vmatmul.mubr.msk.bf16.vlgmr.msra.gmra.mrb[20].mxu0 %vm1284_vm13, %v1623_v20 }
 0x7e9   : > { %3444 = vmatprep.mubr.msk.bf16.mxu0 %vm1284_vm13, %v1861_v35  ;;  %3443 = vmatpush3.bf16.msra.mxu0 %v4136_v39 }
 0x7ea   : > { %3515 = vmatprep.subr.msk.bf16.mxu0 %vm1291_vm14, %v4128_v38 }
 0x7eb   : > { %v1743_v21 = vpop.permute.xlu1 %1742 }
 0x7ec   : > { %3439 = vmatmul.mubr.msk.bf16.vlgmr.msra.gmra.mrb[20].mxu1 %vm1284_vm13, %v1743_v21 }
 0x7ed   : > { %3450 = vmatprep.mubr.msk.bf16.mxu1 %vm1284_vm13, %v1981_v19  ;;  %3449 = vmatpush3.bf16.msra.mxu1 %v4136_v39 }
 0x7ee   : > { %3516 = vmatprep.subr.msk.bf16.mxu1 %vm1291_vm14, %v4128_v38 }
 0x7ef   : > { %v1863_v22 = vpop.permute.xlu1 %1862 }
 0x7f0   : > { %3445 = vmatmul.mubr.msk.bf16.vlgmr.msra.gmra.mrb[24].mxu0 %vm1284_vm13, %v1863_v22 }
 0x7f1   : > { %3456 = vmatprep.mubr.msk.bf16.mxu0 %vm1284_vm13, %v2101_v11  ;;  %3455 = vmatpush3.bf16.msra.mxu0 %v4136_v39 }
 0x7f2   : > { %3517 = vmatprep.subr.msk.bf16.mxu0 %vm1291_vm14, %v4128_v38 }
 0x7f3   : > { %v1983_v16 = vpop.permute.xlu1 %1982 }
 0x7f4   : > { %3451 = vmatmul.mubr.msk.bf16.vlgmr.msra.gmra.mrb[24].mxu1 %vm1284_vm13, %v1983_v16 }
 0x7f5   : > { %3462 = vmatprep.mubr.msk.bf16.mxu1 %vm1284_vm13, %v2221_v12  ;;  %3461 = vmatpush3.bf16.msra.mxu1 %v4136_v39 }
 0x7f6   : > { %3518 = vmatprep.subr.msk.bf16.mxu1 %vm1291_vm14, %v4128_v38 }
 0x7f7   : > { %v2103_v24 = vpop.permute.xlu1 %2102 }
 0x7f8   : > { %3457 = vmatmul.mubr.msk.bf16.vlgmr.msra.gmra.mrb[28].mxu0 %vm1284_vm13, %v2103_v24 }
 0x7f9   : > { %3468 = vmatprep.mubr.msk.bf16.mxu0 %vm1284_vm13, %v2328_v14  ;;  %3467 = vmatpush3.bf16.msra.mxu0 %v4136_v39 }
 0x7fa   : > { %3519 = vmatprep.subr.msk.bf16.mxu0 %vm1291_vm14, %v4128_v38 }
 0x7fb   : > { %v2223_v26 = vpop.permute.xlu1 %2222 }
 0x7fc   : > { %3463 = vmatmul.mubr.msk.bf16.vlgmr.msra.gmra.mrb[28].mxu1 %vm1284_vm13, %v2223_v26 }
 0x7fd   : > { %3474 = vmatprep.mubr.msk.bf16.mxu1 %vm1284_vm13, %v2447_v15  ;;  %3473 = vmatpush3.bf16.msra.mxu1 %v4136_v39 }
 0x7fe   : > { %3520 = vmatprep.subr.msk.bf16.mxu1 %vm1291_vm14, %v4128_v38 }
 0x7ff   : > { %v2330_v29 = vpop.permute.xlu1 %2329 }
 0x800   : > { %3469 = vmatmul.mubr.msk.bf16.vlgmr.msra.gmra.mrb[32].mxu0 %vm1284_vm13, %v2330_v29 }
 0x801   : > { %3480 = vmatprep.mubr.msk.bf16.mxu0 %vm1284_vm13, %v2566_v25  ;;  %3479 = vmatpush3.bf16.msra.mxu0 %v4136_v39 }
 0x802   : > { %3521 = vmatprep.subr.msk.bf16.mxu0 %vm1291_vm14, %v4128_v38 }
 0x803   : > { %v2449_v30 = vpop.permute.xlu1 %2448 }
 0x804   : > { %3475 = vmatmul.mubr.msk.bf16.vlgmr.msra.gmra.mrb[32].mxu1 %vm1284_vm13, %v2449_v30 }
 0x805   : > { %3486 = vmatprep.mubr.msk.bf16.mxu1 %vm1284_vm13, %v2685_v27  ;;  %3485 = vmatpush3.bf16.msra.mxu1 %v4136_v39 }
 0x806   : > { %3522 = vmatprep.subr.msk.bf16.mxu1 %vm1291_vm14, %v4128_v38 }
 0x807   : > { %v2568_v28 = vpop.permute.xlu1 %2567 }
 0x808   : > { %3481 = vmatmul.mubr.msk.bf16.vlgmr.msra.gmra.mrb[36].mxu0 %vm1284_vm13, %v2568_v28 }
 0x809   : > { %3492 = vmatprep.mubr.msk.bf16.mxu0 %vm1284_vm13, %v2804_v31  ;;  %3491 = vmatpush3.bf16.msra.mxu0 %v4136_v39 }
 0x80a   : > { %3523 = vmatprep.subr.msk.bf16.mxu0 %vm1291_vm14, %v4128_v38 }
 0x80b   : > { %v2687_v13 = vpop.permute.xlu1 %2686 }
 0x80c   : > { %3487 = vmatmul.mubr.msk.bf16.vlgmr.msra.gmra.mrb[36].mxu1 %vm1284_vm13, %v2687_v13 }
 0x80d   : > { %3498 = vmatprep.mubr.msk.bf16.mxu1 %vm1284_vm13, %v2923_v40  ;;  %3497 = vmatpush3.bf16.msra.mxu1 %v4136_v39 }
 0x80f   : > { %v2806_v50 = vpop.permute.xlu1 %2805 }
 0x810   : > { %3493 = vmatmul.mubr.msk.bf16.vlgmr.msra.gmra.mrb[40].mxu0 %vm1284_vm13, %v2806_v50 }
 0x811   : > { %3504 = vmatprep.mubr.msk.bf16.mxu0 %vm1284_vm13, %v3014_v41  ;;  %3503 = vmatpush3.bf16.msra.mxu0 %v4136_v39 }
 0x817   : > { %v2925_v42 = vpop.permute.xlu1 %2924 }
 0x818   : > { %3499 = vmatmul.mubr.msk.bf16.vlgmr.msra.gmra.mrb[40].mxu1 %vm1284_vm13, %v2925_v42  ;;  %v1214_v43 = vpop.xlane.xlu0 %1213 }
 0x819   : > { %v1219_v38 = vmul.f32 0.00390625, %v1214_v43 }
 0x81b   : > { %v3016_v44 = vpop.permute.xlu1 %3015  ;;  %v1233_v45 = vmul.f32 %v1219_v38, %v1219_v38  ;;  %v1243_v56 = vsub.f32 0.0, %v1219_v38 }
 0x81c   : > { %3505 = vmatmul.mubr.msk.bf16.vlgmr.msra.gmra.mrb[44].mxu0 %vm1284_vm13, %v3016_v44  ;;  %v1227_v46 = vpop.xlane.xlu0 %1226 }
 0x81d   : > { %v1231_v47 = vmul.f32 0.00390625, %v1227_v46 }
 0x81f   : > { %v1235_v48 = vsub.f32 %v1231_v47, %v1233_v45 }
 0x820   : > { %v1230_v60 = vpop.xlane.xlu0 %1229 }
 0x821   : > { %v1237_v49 = vmax.f32 %v1235_v48, 0.0  ;;  %v1232_v53 = vmul.f32 0.00390625, %v1230_v60 }
 0x823   : > { %v1239_v55 = vadd.f32 1e-05, %v1237_v49 }
 0x825   : > { %3582 = vrsqrt.f32 %v1239_v55 }
 0x82f   : > { %v3583_v57 = vpop.eup %3582 }
 0x830   : > { %v1245_v58 = vmul.f32 %v3583_v57, %v1243_v56  ;;  %v2281_v39 = vmul.f32 %v3583_v57, %v4261_v63  ;;  %v1346_v37 = vmul.f32 %v3583_v57, %v4259_v62 }
 0x832   : > { %v4386_v59 = vadd.f32 %v2281_v39, %v1245_v58  ;;  %v4393_v52 = vadd.f32 %v1346_v37, %v1245_v58 }
 0x85a   : > { %v1217_v61 = vpop.xlane.xlu1 %1216 }
 0x85b   : > { %v1220_v0 = vmul.f32 0.00390625, %v1217_v61 }
 0x85d   : > { %v1234_v54 = vmul.f32 %v1220_v0, %v1220_v0  ;;  %v1244_v2 = vsub.f32 0.0, %v1220_v0 }
 0x85f   : > { %v1236_v23 = vsub.f32 %v1232_v53, %v1234_v54 }
 0x861   : > { %v1238_v17 = vmax.f32 %v1236_v23, 0.0 }
 0x863   : > { %v1240_v1 = vadd.f32 1e-05, %v1238_v17 }
 0x865   : > { %3584 = vrsqrt.f32 %v1240_v1 }
 0x86f   : > { %v3585_v3 = vpop.eup %3584 }
 0x870   : > { %v1246_v4 = vmul.f32 %v3585_v3, %v1244_v2  ;;  %v2282_v5 = vmul.f32 %v3585_v3, %v4274_v18  ;;  %v1347_v10 = vmul.f32 %v3585_v3, %v4272_v8 }
 0x872   : > { %v4389_v6 = vadd.f32 %v2282_v5, %v1246_v4  ;;  %v4396_v34 = vadd.f32 %v1347_v10, %v1246_v4 }
 0x874   : > { %v3416_v7 = vpop.f32.mrb[8].mxu1 }
 0x875   : > { %v1329_v63 = vpop.f32.mrb[9].mxu1 }
 0x876   : > { %3586 = vtanh.f32 %v1329_v63  ;;  %v3417_v9 = vpop.f32.mrb[10].mxu1 }
 0x877   : > { %v1332_v36 = vpop.f32.mrb[11].mxu1 }
 0x878   : > { %3588 = vtanh.f32 %v1332_v36 }
 0x87c   : > { %v3422_v32 = vpop.f32.mrb[12].mxu1 }
 0x87d   : > { %v1430_v51 = vpop.f32.mrb[13].mxu1  ;;  %1459 = vrot.lane.b32.xlu1 %v3422_v32, %s3674_s13 }
 0x87e   : > { %v3423_v18 = vpop.f32.mrb[14].mxu1  ;;  %3590 = vtanh.f32 %v1430_v51 }
 0x87f   : > { %v1433_v33 = vpop.f32.mrb[15].mxu1 }
 0x880   : > { %v3587_v35 = vpop.eup %3586  ;;  %3592 = vtanh.f32 %v1433_v33 }
 0x881   : > { %v1350_v19 = vmul.f32 %v3587_v35, %v4393_v52  ;;  %1461 = vrot.lane.b32.xlu1 %v3423_v18, %s3674_s13 }
 0x882   : > { %v3589_v62 = vpop.eup %3588 }
 0x883   : > { %v1352_v8 = vadd.f32 %v3416_v7, %v1350_v19  ;;  %v1351_v11 = vmul.f32 %v3589_v62, %v4396_v34 }
 0x884   : > { %v3428_v12 = vpop.f32.mrb[16].mxu1 }
 0x885   : > { %1354 = vst.msk [vmem:[%s4405_s12] sm:$0xff] %vm439_vm0, %v1352_v8  ;;  %v1353_v20 = vadd.f32 %v3417_v9, %v1351_v11  ;;  %v1544_v21 = vpop.f32.mrb[17].mxu1  ;;  %1573 = vrot.lane.b32.xlu0 %v3428_v12, %s3675_s14 }
 0x886   : > { %3594 = vtanh.f32 %v1544_v21  ;;  %v3429_v14 = vpop.f32.mrb[18].mxu1 }
 0x887   : > { %1355 = vst.msk [vmem:[%s4405_s12 + $0x10] sm:$0xff] %vm439_vm0, %v1353_v20  ;;  %v1547_v22 = vpop.f32.mrb[19].mxu1  ;;  %1575 = vrot.lane.b32.xlu1 %v3429_v14, %s3675_s14 }
 0x888   : > { %3596 = vtanh.f32 %v1547_v22  ;;  %v3591_v15 = vpop.eup %3590 }
 0x88a   : > { %v3593_v16 = vpop.eup %3592 }
 0x88b   : > { %1449 = vrot.lane.b32.xlu1 %v3591_v15, %s3674_s13  ;;  %1451 = vrot.lane.b32.xlu0 %v3593_v16, %s3674_s13 }
 0x890   : > { %v3595_v24 = vpop.eup %3594 }
 0x891   : > { %1563 = vrot.lane.b32.xlu0 %v3595_v24, %s3675_s14 }
 0x892   : > { %v3597_v25 = vpop.eup %3596 }
 0x893   : > { %1565 = vrot.lane.b32.xlu1 %v3597_v25, %s3675_s14 }
 0x8bb   : > { %v3434_v26 = vpop.f32.mrb[20].mxu0 }
 0x8bc   : > { %v1664_v27 = vpop.f32.mrb[21].mxu0  ;;  %1693 = vrot.lane.b32.xlu0 %v3434_v26, %s3676_s18 }
 0x8bd   : > { %v3435_v29 = vpop.f32.mrb[22].mxu0  ;;  %3598 = vtanh.f32 %v1664_v27 }
 0x8be   : > { %v1667_v30 = vpop.f32.mrb[23].mxu0  ;;  %1695 = vrot.lane.b32.xlu1 %v3435_v29, %s3676_s18 }
 0x8bf   : > { %v3440_v31 = vpop.f32.mrb[20].mxu1  ;;  %3600 = vtanh.f32 %v1667_v30 }
 0x8c0   : > { %v1784_v28 = vpop.f32.mrb[21].mxu1  ;;  %1813 = vrot.lane.b32.xlu0 %v3440_v31, %s3677_s23 }
 0x8c1   : > { %v3441_v40 = vpop.f32.mrb[22].mxu1  ;;  %3602 = vtanh.f32 %v1784_v28 }
 0x8c2   : > { %v1787_v13 = vpop.f32.mrb[23].mxu1  ;;  %1815 = vrot.lane.b32.xlu1 %v3441_v40, %s3677_s23 }
 0x8c3   : > { %v3446_v50 = vpop.f32.mrb[24].mxu0  ;;  %3604 = vtanh.f32 %v1787_v13 }
 0x8c4   : > { %v1904_v41 = vpop.f32.mrb[25].mxu0  ;;  %1933 = vrot.lane.b32.xlu0 %v3446_v50, %s3670_s21 }
 0x8c5   : > { %v3447_v42 = vpop.f32.mrb[26].mxu0  ;;  %3606 = vtanh.f32 %v1904_v41 }
 0x8c6   : > { %v1907_v43 = vpop.f32.mrb[27].mxu0  ;;  %1935 = vrot.lane.b32.xlu1 %v3447_v42, %s3670_s21 }
 0x8c7   : > { %v3452_v38 = vpop.f32.mrb[24].mxu1  ;;  %v3599_v47 = vpop.eup %3598  ;;  %3608 = vtanh.f32 %v1907_v43 }
 0x8c8   : > { %v2024_v44 = vpop.f32.mrb[25].mxu1  ;;  %2053 = vrot.lane.b32.xlu0 %v3452_v38, %s3678_s28 }
 0x8c9   : > { %v3453_v45 = vpop.f32.mrb[26].mxu1  ;;  %v3601_v55 = vpop.eup %3600  ;;  %3610 = vtanh.f32 %v2024_v44 }
 0x8ca   : > { %v2027_v46 = vpop.f32.mrb[27].mxu1  ;;  %2055 = vrot.lane.b32.xlu1 %v3453_v45, %s3678_s28 }
 0x8cb   : > { %v3458_v48 = vpop.f32.mrb[28].mxu0  ;;  %v3603_v58 = vpop.eup %3602 }
 0x8cc   : > { %v2144_v49 = vpop.f32.mrb[29].mxu0  ;;  %1683 = vrot.lane.b32.xlu0 %v3599_v47, %s3676_s18 }
 0x8cd   : > { %v3459_v56 = vpop.f32.mrb[30].mxu0  ;;  %v3605_v61 = vpop.eup %3604 }
 0x8ce   : > { %v2147_v57 = vpop.f32.mrb[31].mxu0  ;;  %1685 = vrot.lane.b32.xlu1 %v3601_v55, %s3676_s18 }
 0x8cf   : > { %v3464_v39 = vpop.f32.mrb[28].mxu1  ;;  %v3607_v2 = vpop.eup %3606 }
 0x8d0   : > { %v2264_v60 = vpop.f32.mrb[29].mxu1  ;;  %1803 = vrot.lane.b32.xlu0 %v3603_v58, %s3677_s23 }
 0x8d1   : > { %3612 = vtanh.f32 %v2264_v60  ;;  %v3465_v0 = vpop.f32.mrb[30].mxu1  ;;  %v3609_v5 = vpop.eup %3608 }
 0x8d2   : > { %3614 = vtanh.f32 %v2027_v46  ;;  %v2267_v53 = vpop.f32.mrb[31].mxu1  ;;  %1805 = vrot.lane.b32.xlu1 %v3605_v61, %s3677_s23 }
 0x8d3   : > { %3616 = vtanh.f32 %v2267_v53  ;;  %v3470_v54 = vpop.f32.mrb[32].mxu0  ;;  %v3611_v63 = vpop.eup %3610 }
 0x8d4   : > { %v2371_v23 = vpop.f32.mrb[33].mxu0  ;;  %2173 = vrot.lane.b32.xlu0 %v3458_v48, %s3679_s16  ;;  %3618 = vtanh.f32 %v2144_v49 }
 0x8d5   : > { %v3471_v17 = vpop.f32.mrb[34].mxu0  ;;  %3620 = vtanh.f32 %v2147_v57 }
 0x8d6   : > { %v2374_v1 = vpop.f32.mrb[35].mxu0  ;;  %2175 = vrot.lane.b32.xlu1 %v3459_v56, %s3679_s16  ;;  %3622 = vtanh.f32 %v2371_v23 }
 0x8d7   : > { %v3476_v3 = vpop.f32.mrb[32].mxu1  ;;  %3624 = vtanh.f32 %v2374_v1 }
 0x8d8   : > { %v2490_v4 = vpop.f32.mrb[33].mxu1  ;;  %1923 = vrot.lane.b32.xlu0 %v3607_v2, %s3670_s21 }
 0x8d9   : > { %v3477_v7 = vpop.f32.mrb[34].mxu1  ;;  %3626 = vtanh.f32 %v2490_v4 }
 0x8da   : > { %v2493_v9 = vpop.f32.mrb[35].mxu1  ;;  %1925 = vrot.lane.b32.xlu1 %v3609_v5, %s3670_s21 }
 0x8db   : > { %v3613_v36 = vpop.eup %3612  ;;  %v3482_v37 = vpop.f32.mrb[36].mxu0  ;;  %3628 = vtanh.f32 %v2493_v9 }
 0x8dc   : > { %v3615_v10 = vpop.eup %3614  ;;  %v2285_v32 = vmul.f32 %v3613_v36, %v4386_v59  ;;  %v2609_v51 = vpop.f32.mrb[37].mxu0  ;;  %2043 = vrot.lane.b32.xlu0 %v3611_v63, %s3678_s28 }
 0x8dd   : > { %v3617_v18 = vpop.eup %3616  ;;  %v3483_v33 = vpop.f32.mrb[38].mxu0  ;;  %3630 = vtanh.f32 %v2609_v51 }
 0x8de   : > { %v2287_v35 = vadd.f32 %v3464_v39, %v2285_v32  ;;  %v2286_v19 = vmul.f32 %v3617_v18, %v4389_v6  ;;  %v2612_v62 = vpop.f32.mrb[39].mxu0  ;;  %2045 = vrot.lane.b32.xlu1 %v3615_v10, %s3678_s28  ;;  %v3619_v24 = vpop.eup %3618 }
 0x8df   : > { %v3488_v8 = vpop.f32.mrb[36].mxu1  ;;  %v3621_v25 = vpop.eup %3620  ;;  %3632 = vtanh.f32 %v2612_v62 }
 0x8e0   : > { %2289 = vst.msk [vmem:[%s4405_s12 + $0x8] sm:$0xff] %vm439_vm0, %v2287_v35  ;;  %v2288_v11 = vadd.f32 %v3465_v0, %v2286_v19  ;;  %v2728_v12 = vpop.f32.mrb[37].mxu1  ;;  %2400 = vrot.lane.b32.xlu0 %v3470_v54, %s3674_s13  ;;  %v3623_v41 = vpop.eup %3622 }
 0x8e1   : > { %v3489_v20 = vpop.f32.mrb[38].mxu1  ;;  %v3625_v42 = vpop.eup %3624  ;;  %3634 = vtanh.f32 %v2728_v12 }
 0x8e2   : > { %2290 = vst.msk [vmem:[%s4405_s12 + $0x18] sm:$0xff] %vm439_vm0, %v2288_v11  ;;  %v2731_v21 = vpop.f32.mrb[39].mxu1  ;;  %2402 = vrot.lane.b32.xlu1 %v3471_v17, %s3674_s13  ;;  %vm1581_vm0 = vcmask 392448  }
 0x8e3   : > { %v3494_v14 = vpop.f32.mrb[40].mxu0  ;;  %v3627_v38 = vpop.eup %3626  ;;  %3636 = vtanh.f32 %v2731_v21 }
 0x8e4   : > { %v2847_v22 = vpop.f32.mrb[41].mxu0  ;;  %2519 = vrot.lane.b32.xlu0 %v3476_v3, %s3675_s14 }
 0x8e5   : > { %v3495_v15 = vpop.f32.mrb[42].mxu0  ;;  %v3629_v44 = vpop.eup %3628  ;;  %3638 = vtanh.f32 %v2847_v22 }
 0x8e6   : > { %v2850_v16 = vpop.f32.mrb[43].mxu0  ;;  %2521 = vrot.lane.b32.xlu1 %v3477_v7, %s3675_s14 }
 0x8e7   : > { %v3631_v58 = vpop.eup %3630  ;;  %3640 = vtanh.f32 %v2850_v16 }
 0x8e8   : > { %2163 = vrot.lane.b32.xlu0 %v3619_v24, %s3679_s16 }
 0x8e9   : > { %v3633_v61 = vpop.eup %3632 }
 0x8ea   : > { %2165 = vrot.lane.b32.xlu1 %v3621_v25, %s3679_s16 }
 0x8eb   : > { %v3500_v26 = vpop.f32.mrb[40].mxu1  ;;  %v3635_v23 = vpop.eup %3634 }
 0x8ec   : > { %v2966_v27 = vpop.f32.mrb[41].mxu1  ;;  %2638 = vrot.lane.b32.xlu0 %v3482_v37, %s3676_s18 }
 0x8ed   : > { %v3501_v29 = vpop.f32.mrb[42].mxu1  ;;  %3642 = vtanh.f32 %v2966_v27  ;;  %v3637_v1 = vpop.eup %3636 }
 0x8ee   : > { %v2969_v30 = vpop.f32.mrb[43].mxu1  ;;  %2640 = vrot.lane.b32.xlu1 %v3483_v33, %s3676_s18 }
 0x8ef   : > { %v4450_v31 = vpop.f32.mrb[44].mxu0  ;;  %v1460_v28 = vpop.permute.xlu1 %1459  ;;  %3644 = vtanh.f32 %v2969_v30 }
 0x8f0   : > { %v3057_v40 = vpop.f32.mrb[45].mxu0  ;;  %2757 = vrot.lane.b32.xlu0 %v3488_v8, %s3677_s23  ;;  %v3639_v2 = vpop.eup %3638 }
 0x8f1   : > { %v4453_v13 = vpop.f32.mrb[46].mxu0  ;;  %3646 = vtanh.f32 %v3057_v40  ;;  %v3641_v3 = vpop.eup %3640 }
 0x8f2   : > { %v3060_v50 = vpop.f32.mrb[47].mxu0  ;;  %2759 = vrot.lane.b32.xlu1 %v3489_v20, %s3677_s23 }
 0x8f3   : > { %v1462_v43 = vpop.permute.xlu1 %1461  ;;  %3648 = vtanh.f32 %v3060_v50 }
 0x8f4   : > { %2390 = vrot.lane.b32.xlu0 %v3623_v41, %s3674_s13 }
 0x8f6   : > { %2392 = vrot.lane.b32.xlu1 %v3625_v42, %s3674_s13 }
 0x8f7   : > { %v1574_v45 = vpop.permute.xlu0 %1573  ;;  %v3643_v4 = vpop.eup %3642 }
 0x8f8   : > { %2509 = vrot.lane.b32.xlu0 %v3627_v38, %s3675_s14 }
 0x8f9   : > { %v1576_v46 = vpop.permute.xlu1 %1575  ;;  %v3645_v5 = vpop.eup %3644 }
 0x8fa   : > { %2511 = vrot.lane.b32.xlu1 %v3629_v44, %s3675_s14 }
 0x8fb   : > { %v3647_v7 = vpop.eup %3646 }
 0x8fc   : > { %2876 = vrot.lane.b32.xlu0 %v3494_v14, %s3670_s21 }
 0x8fd   : > { %v1450_v47 = vpop.permute.xlu1 %1449  ;;  %v1452_v48 = vpop.permute.xlu0 %1451 }
 0x8fe   : > { %v1455_v49 = vmul.f32 %v1450_v47, %v4393_v52  ;;  %v1456_v55 = vmul.f32 %v1452_v48, %v4396_v34  ;;  %2878 = vrot.lane.b32.xlu1 %v3495_v15, %s3670_s21  ;;  %v3649_v63 = vpop.eup %3648 }
 0x900   : > { %v1465_v56 = vadd.f32 %v1460_v28, %v1455_v49  ;;  %v1466_v57 = vadd.f32 %v1462_v43, %v1456_v55  ;;  %2995 = vrot.lane.b32.xlu0 %v3500_v26, %s3678_s28 }
 0x902   : > { %1468 = vst.msk [vmem:[%s4405_s12] sm:$0xff] %vm1467_vm15, %v1465_v56  ;;  %1469 = vst.msk [vmem:[%s4405_s12 + $0x10] sm:$0xff] %vm1467_vm15, %v1466_v57  ;;  %2997 = vrot.lane.b32.xlu1 %v3501_v29, %s3678_s28 }
 0x903   : > { %v1564_v39 = vpop.permute.xlu0 %1563 }
 0x904   : > { %v1569_v60 = vmul.f32 %v1564_v39, %v4393_v52  ;;  %2628 = vrot.lane.b32.xlu0 %v3631_v58, %s3676_s18 }
 0x905   : > { %v1566_v0 = vpop.permute.xlu1 %1565 }
 0x906   : > { %v1579_v53 = vadd.f32 %v1574_v45, %v1569_v60  ;;  %v1570_v54 = vmul.f32 %v1566_v0, %v4396_v34  ;;  %2630 = vrot.lane.b32.xlu1 %v3633_v61, %s3676_s18 }
 0x908   : > { %1582 = vst.msk [vmem:[%s4405_s12] sm:$0xff] %vm1581_vm0, %v1579_v53  ;;  %v1580_v17 = vadd.f32 %v1576_v46, %v1570_v54  ;;  %2747 = vrot.lane.b32.xlu0 %v3635_v23, %s3677_s23 }
 0x90a   : > { %1583 = vst.msk [vmem:[%s4405_s12 + $0x10] sm:$0xff] %vm1581_vm0, %v1580_v17  ;;  %2749 = vrot.lane.b32.xlu1 %v3637_v1, %s3677_s23 }
 0x90c   : > { %2866 = vrot.lane.b32.xlu0 %v3639_v2, %s3670_s21 }
 0x90e   : > { %2868 = vrot.lane.b32.xlu1 %v3641_v3, %s3670_s21 }
 0x910   : > { %2985 = vrot.lane.b32.xlu0 %v3643_v4, %s3678_s28 }
 0x912   : > { %2987 = vrot.lane.b32.xlu1 %v3645_v5, %s3678_s28 }
 0x914   : > { %3076 = vrot.lane.b32.xlu0 %v3647_v7, %s3679_s16 }
 0x916   : > { %3078 = vrot.lane.b32.xlu1 %v3649_v63, %s3679_s16 }
 0x918   : > { %3086 = vrot.lane.b32.xlu0 %v4450_v31, %s3679_s16 }
 0x91a   : > { %3088 = vrot.lane.b32.xlu1 %v4453_v13, %s3679_s16 }
 0x92e   : > { %v1694_v9 = vpop.permute.xlu0 %1693 }
 0x930   : > { %v1696_v36 = vpop.permute.xlu1 %1695 }
 0x932   : > { %v1814_v37 = vpop.permute.xlu0 %1813 }
 0x934   : > { %v1816_v10 = vpop.permute.xlu1 %1815 }
 0x936   : > { %v1934_v32 = vpop.permute.xlu0 %1933 }
 0x938   : > { %v1936_v51 = vpop.permute.xlu1 %1935 }
 0x93a   : > { %v2054_v18 = vpop.permute.xlu0 %2053 }
 0x93c   : > { %v2056_v33 = vpop.permute.xlu1 %2055 }
 0x93e   : > { %v1684_v35 = vpop.permute.xlu0 %1683 }
 0x93f   : > { %v1689_v19 = vmul.f32 %v1684_v35, %v4393_v52 }
 0x940   : > { %v1686_v62 = vpop.permute.xlu1 %1685 }
 0x941   : > { %v1699_v8 = vadd.f32 %v1694_v9, %v1689_v19  ;;  %v1690_v11 = vmul.f32 %v1686_v62, %v4396_v34 }
 0x942   : > { %v1804_v12 = vpop.permute.xlu0 %1803 }
 0x943   : > { %1702 = vst.msk [vmem:[%s4405_s12] sm:$0xff] %vm1701_vm1, %v1699_v8  ;;  %v1700_v20 = vadd.f32 %v1696_v36, %v1690_v11  ;;  %v1809_v21 = vmul.f32 %v1804_v12, %v4393_v52 }
 0x944   : > { %v1806_v14 = vpop.permute.xlu1 %1805 }
 0x945   : > { %1703 = vst.msk [vmem:[%s4405_s12 + $0x10] sm:$0xff] %vm1701_vm1, %v1700_v20  ;;  %v1819_v22 = vadd.f32 %v1814_v37, %v1809_v21  ;;  %v1810_v15 = vmul.f32 %v1806_v14, %v4396_v34 }
 0x946   : > { %v2174_v16 = vpop.permute.xlu0 %2173 }
 0x947   : > { %1822 = vst.msk [vmem:[%s4405_s12] sm:$0xff] %vm1821_vm2, %v1819_v22  ;;  %v1820_v24 = vadd.f32 %v1816_v10, %v1810_v15 }
 0x948   : > { %v2176_v25 = vpop.permute.xlu1 %2175 }
 0x949   : > { %1823 = vst.msk [vmem:[%s4405_s12 + $0x10] sm:$0xff] %vm1821_vm2, %v1820_v24 }
 0x94a   : > { %v1924_v26 = vpop.permute.xlu0 %1923 }
 0x94b   : > { %v1929_v27 = vmul.f32 %v1924_v26, %v4393_v52 }
 0x94c   : > { %v1926_v29 = vpop.permute.xlu1 %1925 }
 0x94d   : > { %v1939_v30 = vadd.f32 %v1934_v32, %v1929_v27  ;;  %v1930_v31 = vmul.f32 %v1926_v29, %v4396_v34 }
 0x94e   : > { %v2044_v28 = vpop.permute.xlu0 %2043 }
 0x94f   : > { %1942 = vst.msk [vmem:[%s4405_s12] sm:$0xff] %vm1941_vm3, %v1939_v30  ;;  %v1940_v40 = vadd.f32 %v1936_v51, %v1930_v31  ;;  %v2049_v13 = vmul.f32 %v2044_v28, %v4393_v52 }
 0x950   : > { %v2046_v50 = vpop.permute.xlu1 %2045 }
 0x951   : > { %1943 = vst.msk [vmem:[%s4405_s12 + $0x10] sm:$0xff] %vm1941_vm3, %v1940_v40  ;;  %v2059_v41 = vadd.f32 %v2054_v18, %v2049_v13  ;;  %v2050_v42 = vmul.f32 %v2046_v50, %v4396_v34 }
 0x952   : > { %v2401_v43 = vpop.permute.xlu0 %2400 }
 0x953   : > { %2062 = vst.msk [vmem:[%s4405_s12] sm:$0xff] %vm2061_vm4, %v2059_v41  ;;  %v2060_v38 = vadd.f32 %v2056_v33, %v2050_v42 }
 0x954   : > { %v2403_v44 = vpop.permute.xlu1 %2402 }
 0x955   : > { %2063 = vst.msk [vmem:[%s4405_s12 + $0x10] sm:$0xff] %vm2061_vm4, %v2060_v38 }
 0x956   : > { %v2520_v45 = vpop.permute.xlu0 %2519 }
 0x958   : > { %v2522_v46 = vpop.permute.xlu1 %2521 }
 0x95a   : > { %v2164_v47 = vpop.permute.xlu0 %2163 }
 0x95b   : > { %v2169_v48 = vmul.f32 %v2164_v47, %v4393_v52 }
 0x95c   : > { %v2166_v49 = vpop.permute.xlu1 %2165 }
 0x95d   : > { %v2179_v55 = vadd.f32 %v2174_v16, %v2169_v48  ;;  %v2170_v56 = vmul.f32 %v2166_v49, %v4396_v34 }
 0x95e   : > { %v2639_v57 = vpop.permute.xlu0 %2638 }
 0x95f   : > { %2182 = vst.msk [vmem:[%s4405_s12] sm:$0xff] %vm2181_vm5, %v2179_v55  ;;  %v2180_v58 = vadd.f32 %v2176_v25, %v2170_v56 }
 0x960   : > { %v2641_v39 = vpop.permute.xlu1 %2640 }
 0x961   : > { %2183 = vst.msk [vmem:[%s4405_s12 + $0x10] sm:$0xff] %vm2181_vm5, %v2180_v58 }
 0x962   : > { %v2758_v60 = vpop.permute.xlu0 %2757 }
 0x964   : > { %v2760_v61 = vpop.permute.xlu1 %2759 }
 0x966   : > { %v2391_v0 = vpop.permute.xlu0 %2390 }
 0x967   : > { %v2396_v52 = vmul.f32 %v2391_v0, %v4386_v59 }
 0x968   : > { %v2393_v53 = vpop.permute.xlu1 %2392 }
 0x969   : > { %v2406_v54 = vadd.f32 %v2401_v43, %v2396_v52  ;;  %v2397_v23 = vmul.f32 %v2393_v53, %v4389_v6 }
 0x96a   : > { %v2510_v34 = vpop.permute.xlu0 %2509 }
 0x96b   : > { %2408 = vst.msk [vmem:[%s4405_s12 + $0x8] sm:$0xff] %vm1467_vm15, %v2406_v54  ;;  %v2407_v17 = vadd.f32 %v2403_v44, %v2397_v23  ;;  %v2515_v1 = vmul.f32 %v2510_v34, %v4386_v59 }
 0x96c   : > { %v2512_v2 = vpop.permute.xlu1 %2511 }
 0x96d   : > { %2409 = vst.msk [vmem:[%s4405_s12 + $0x18] sm:$0xff] %vm1467_vm15, %v2407_v17  ;;  %v2525_v3 = vadd.f32 %v2520_v45, %v2515_v1  ;;  %v2516_v4 = vmul.f32 %v2512_v2, %v4389_v6 }
 0x96e   : > { %v2877_v5 = vpop.permute.xlu0 %2876 }
 0x96f   : > { %2527 = vst.msk [vmem:[%s4405_s12 + $0x8] sm:$0xff] %vm1581_vm0, %v2525_v3  ;;  %v2526_v7 = vadd.f32 %v2522_v46, %v2516_v4 }
 0x970   : > { %v2879_v63 = vpop.permute.xlu1 %2878 }
 0x971   : > { %2528 = vst.msk [vmem:[%s4405_s12 + $0x18] sm:$0xff] %vm1581_vm0, %v2526_v7 }
 0x972   : > { %v2996_v9 = vpop.permute.xlu0 %2995 }
 0x974   : > { %v2998_v36 = vpop.permute.xlu1 %2997 }
 0x976   : > { %v2629_v37 = vpop.permute.xlu0 %2628 }
 0x977   : > { %v2634_v10 = vmul.f32 %v2629_v37, %v4386_v59 }
 0x978   : > { %v2631_v32 = vpop.permute.xlu1 %2630 }
 0x979   : > { %v2644_v51 = vadd.f32 %v2639_v57, %v2634_v10  ;;  %v2635_v18 = vmul.f32 %v2631_v32, %v4389_v6 }
 0x97a   : > { %v2748_v33 = vpop.permute.xlu0 %2747 }
 0x97b   : > { %2646 = vst.msk [vmem:[%s4405_s12 + $0x8] sm:$0xff] %vm1701_vm1, %v2644_v51  ;;  %v2645_v35 = vadd.f32 %v2641_v39, %v2635_v18  ;;  %v2753_v19 = vmul.f32 %v2748_v33, %v4386_v59 }
 0x97c   : > { %v2750_v62 = vpop.permute.xlu1 %2749 }
 0x97d   : > { %2647 = vst.msk [vmem:[%s4405_s12 + $0x18] sm:$0xff] %vm1701_vm1, %v2645_v35  ;;  %v2763_v8 = vadd.f32 %v2758_v60, %v2753_v19  ;;  %v2754_v11 = vmul.f32 %v2750_v62, %v4389_v6 }
 0x97e   : > { %v2867_v12 = vpop.permute.xlu0 %2866 }
 0x97f   : > { %2765 = vst.msk [vmem:[%s4405_s12 + $0x8] sm:$0xff] %vm1821_vm2, %v2763_v8  ;;  %v2764_v20 = vadd.f32 %v2760_v61, %v2754_v11  ;;  %v2872_v21 = vmul.f32 %v2867_v12, %v4386_v59 }
 0x980   : > { %v2869_v14 = vpop.permute.xlu1 %2868 }
 0x981   : > { %2766 = vst.msk [vmem:[%s4405_s12 + $0x18] sm:$0xff] %vm1821_vm2, %v2764_v20  ;;  %v2882_v22 = vadd.f32 %v2877_v5, %v2872_v21  ;;  %v2873_v15 = vmul.f32 %v2869_v14, %v4389_v6 }
 0x982   : > { %v2986_v16 = vpop.permute.xlu0 %2985 }
 0x983   : > { %2884 = vst.msk [vmem:[%s4405_s12 + $0x8] sm:$0xff] %vm1941_vm3, %v2882_v22  ;;  %v2883_v24 = vadd.f32 %v2879_v63, %v2873_v15  ;;  %v2991_v25 = vmul.f32 %v2986_v16, %v4386_v59 }
 0x984   : > { %v2988_v26 = vpop.permute.xlu1 %2987 }
 0x985   : > { %2885 = vst.msk [vmem:[%s4405_s12 + $0x18] sm:$0xff] %vm1941_vm3, %v2883_v24  ;;  %v3001_v27 = vadd.f32 %v2996_v9, %v2991_v25  ;;  %v2992_v29 = vmul.f32 %v2988_v26, %v4389_v6 }
 0x986   : > { %v3077_v30 = vpop.permute.xlu0 %3076 }
 0x987   : > { %3003 = vst.msk [vmem:[%s4405_s12 + $0x8] sm:$0xff] %vm2061_vm4, %v3001_v27  ;;  %v3002_v31 = vadd.f32 %v2998_v36, %v2992_v29  ;;  %v3082_v40 = vmul.f32 %v3077_v30, %v4386_v59 }
 0x988   : > { %v3079_v28 = vpop.permute.xlu1 %3078 }
 0x989   : > { %3004 = vst.msk [vmem:[%s4405_s12 + $0x18] sm:$0xff] %vm2061_vm4, %v3002_v31  ;;  %v3083_v50 = vmul.f32 %v3079_v28, %v4389_v6 }
 0x98a   : > { %v3087_v13 = vpop.permute.xlu0 %3086 }
 0x98b   : > { %v3092_v41 = vadd.f32 %v3087_v13, %v3082_v40 }
 0x98c   : > { %v3089_v42 = vpop.permute.xlu1 %3088 }
 0x98d   : > { %3094 = vst.msk [vmem:[%s4405_s12 + $0x8] sm:$0xff] %vm2181_vm5, %v3092_v41  ;;  %v3093_v43 = vadd.f32 %v3089_v42, %v3083_v50 }
 0x98f   : > { %3095 = vst.msk [vmem:[%s4405_s12 + $0x18] sm:$0xff] %vm2181_vm5, %v3093_v43 }
 0x990 PF: > { %s21_s17 = sadd.s32 1, %s3656_s17  }
 0x991   : > { %p18_p4 = scmp.ge.s32.totalorder %s21_s17, 4  }
 0x993   :  { %20 = sbr.rel (!%p18_p4) target bundleno = 1 (0x1), region = 103 }

</bundles_post_ra>
